<compile_context>
chip_gen: v6e
topology: v6e:2x2x1
jax: 0.10.0
libtpu: 0.0.40
codegen_flags: <defaults>
</compile_context>

<pallas_src>
import jax
import jax.numpy as jnp
from jax import lax
from jax.experimental import pallas as pl
from jax.experimental.pallas import tpu as pltpu

GPAD = 128  # lane width of each fused gate group (gate order: r, z, n)


# -----------------------------------------------------------------------------
# Fused kernel factory.
#
# Input refs (all full-array VMEM blocks):
#   tok     (T*Bp, 1)  int32   time-major token ids (batch padded with pad_idx)
#   emb     (Vp, E)    f32     embedding table (vocab padded to sublanes)
#   per layer: wih_f (D_in, 3*GPAD), whh_f (2H, 3*GPAD), bi_f (1, 3*GPAD),
#              bhn   (1, 2H)
#   head   : gamma (1, 2H), beta (1, 2H), w1 (2H, H), b1 (1, H),
#            w2p (H, Cpad), b2p (1, Cpad)
# Output:  logits (T*Bp, Cpad)                (lane-dense)
# Scratch: h_scr (T*Bp, 2H) f32, gi_scr (T*Bp, 3*GPAD) f32
#
# Fused layouts (lane columns, per gate group g in {r,z,n}):
#   [g*128 + 0 : g*128 + H)   -> forward direction
#   [g*128 + H : g*128 + 2H)  -> backward direction
#   [g*128 + 2H: (g+1)*128)   -> zero padding
# whh_f is block-diagonal over directions; bi_f already holds b_ih (+ b_hh for
# the r/z gates); b_hn stays separate (it sits inside r * (Whn h + b_hn)).
# -----------------------------------------------------------------------------
def make_fused_kernel(num_layers, T):
    def kernel(*refs):
        # ---- unpack ----------------------------------------------------------
        tok_ref, emb_ref = refs[0], refs[1]
        idx = 2
        layers = []
        for _ in range(num_layers):
            layers.append(tuple(refs[idx:idx + 4]))  # wih_f, whh_f, bi_f, bhn
            idx += 4
        gamma_ref, beta_ref, w1_ref, b1_ref, w2_ref, b2_ref = refs[idx:idx + 6]
        out_ref = refs[idx + 6]
        h_scr, gi_scr = refs[idx + 7], refs[idx + 8]

        R = tok_ref.shape[0]              # T * Bp
        Bp = R // T
        Vp = emb_ref.shape[0]
        H = layers[0][1].shape[0] // 2
        H2 = 2 * H

        h_scr[...] = jnp.zeros_like(h_scr)    # hygiene: no uninitialized reads

        # ---- embedding lookup as a one-hot MXU matmul (off critical path) ----
        onehot = (tok_ref[...] ==
                  lax.broadcasted_iota(jnp.int32, (R, Vp), 1)).astype(jnp.float32)
        x = jnp.dot(onehot, emb_ref[...],
                    preferred_element_type=jnp.float32)            # (R, E)

        # Loop-invariant fwd/bwd lane masks (hoisted; JAX does not CSE these).
        lane3 = lax.broadcasted_iota(jnp.int32, (Bp, 3 * GPAD), 1)
        fwd3 = (lane3 & (GPAD - 1)) < H                            # fwd lanes
        lane1 = lax.broadcasted_iota(jnp.int32, (Bp, H2), 1)
        fwd1 = lane1 < H

        # ---- GRU stack --------------------------------------------------------
        for (wih_ref, whh_ref, bi_ref, bhn_ref) in layers:
            # (a) hoisted fused input projection: ONE matmul per layer, stored
            #     to VMEM scratch and sliced per step.
            gi_scr[...] = (jnp.dot(x, wih_ref[...],
                                   preferred_element_type=jnp.float32)
                           + bi_ref[...])                          # (R, 3*GPAD)

            # (b) recurrence: one block-diagonal matmul per unrolled step.
            whh = whh_ref[...]                                     # (2H, 3*GPAD)
            bhn_b = jnp.broadcast_to(bhn_ref[...], (Bp, H2))       # hoisted
            h2 = jnp.zeros((Bp, H2), jnp.float32)                  # [fwd | bwd]
            for t in range(T):
                # fwd consumes time t, bwd consumes time T-1-t (both off the
                # recurrent chain: loaded from gi_scr, selected per lane half).
                gt = gi_scr[pl.ds(t * Bp, Bp), :]
                gb = gi_scr[pl.ds((T - 1 - t) * Bp, Bp), :]
                g = jnp.where(fwd3, gt, gb)                        # (Bp, 3*GPAD)

                gh = jnp.dot(h2, whh,
                             preferred_element_type=jnp.float32)   # (Bp, 3*GPAD)
                r = jax.nn.sigmoid(g[:, 0:H2] + gh[:, 0:H2])
                z = jax.nn.sigmoid(g[:, GPAD:GPAD + H2]
                                   + gh[:, GPAD:GPAD + H2])
                n = jnp.tanh(g[:, 2 * GPAD:2 * GPAD + H2]
                             + r * (gh[:, 2 * GPAD:2 * GPAD + H2] + bhn_b))
                h2 = (1.0 - z) * n + z * h2

                # Scatter into the time-ordered hidden scratch:
                #   fwd half -> rows of time t, bwd half -> rows of time T-1-t.
                rf = pl.ds(t * Bp, Bp)
                rb = pl.ds((T - 1 - t) * Bp, Bp)
                h_scr[rf, :] = jnp.where(fwd1, h2, h_scr[rf, :])
                h_scr[rb, :] = jnp.where(fwd1, h_scr[rb, :], h2)

            x = h_scr[...]                                         # (R, 2H)

        # ---- head: LayerNorm(2H) -> Linear(2H,H) -> Dropout(id) -> Linear ---
        mu = jnp.mean(x, axis=-1, keepdims=True)
        xc = x - mu
        var = jnp.mean(xc * xc, axis=-1, keepdims=True)
        xn = xc * lax.rsqrt(var + 1e-5) * gamma_ref[...] + beta_ref[...]
        h1 = (jnp.dot(xn, w1_ref[...], preferred_element_type=jnp.float32)
              + b1_ref[...])
        # Dropout is identity at inference (eval) time.
        logits = (jnp.dot(h1, w2_ref[...], preferred_element_type=jnp.float32)
                  + b2_ref[...])                                   # (R, Cpad)
        out_ref[...] = logits.astype(out_ref.dtype)

    return kernel


# -----------------------------------------------------------------------------
# Logical parameter init (deterministic, synthetic) in PyTorch-like layout.
# -----------------------------------------------------------------------------
def init_params(key, vocab, emb_dim, hidden, num_layers, num_class, pad_idx):
    keys = iter(jax.random.split(key, 64))

    def u(shape):
        return jax.random.uniform(next(keys), shape, jnp.float32, -0.1, 0.1)

    H = hidden
    emb = u((vocab, emb_dim)).at[pad_idx].set(0.0)
    gru = []
    d_in = emb_dim
    for _ in range(num_layers):
        gru.append(dict(w_ih=u((2, 3, d_in, H)),   # (dir, gate r/z/n, D_in, H)
                        w_hh=u((2, 3, H, H)),
                        b_ih=u((2, 3, H)),
                        b_hh=u((2, 3, H))))
        d_in = 2 * H
    return dict(embeddings=emb, gru=gru,
                gamma=jnp.ones((1, 2 * H), jnp.float32),
                beta=jnp.zeros((1, 2 * H), jnp.float32),
                w1=u((2 * H, H)), b1=u((1, H)),
                w2=u((H, num_class)), b2=u((1, num_class)))


# -----------------------------------------------------------------------------
# Pack logical params into the fused kernel layout (runs once, outside kernel).
# -----------------------------------------------------------------------------
def pack_params(params, hidden, num_class):
    H = hidden
    emb = params["embeddings"]
    V, _ = emb.shape
    Vp = ((V + 7) // 8) * 8
    c_pad = ((num_class + 127) // 128) * 128

    layers = []
    for lp in params["gru"]:
        w_ih, w_hh = lp["w_ih"], lp["w_hh"]
        b_ih, b_hh = lp["b_ih"], lp["b_hh"]
        d_in = w_ih.shape[2]
        wih_f = jnp.zeros((d_in, 3 * GPAD), jnp.float32)
        whh_f = jnp.zeros((2 * H, 3 * GPAD), jnp.float32)
        bi_f = jnp.zeros((1, 3 * GPAD), jnp.float32)
        for g in range(3):
            c0 = g * GPAD
            wih_f = wih_f.at[:, c0:c0 + H].set(w_ih[0, g])
            wih_f = wih_f.at[:, c0 + H:c0 + 2 * H].set(w_ih[1, g])
            whh_f = whh_f.at[:H, c0:c0 + H].set(w_hh[0, g])            # fwd blk
            whh_f = whh_f.at[H:, c0 + H:c0 + 2 * H].set(w_hh[1, g])    # bwd blk
            bf = b_ih[0, g] + (b_hh[0, g] if g < 2 else jnp.zeros((H,)))
            bb = b_ih[1, g] + (b_hh[1, g] if g < 2 else jnp.zeros((H,)))
            bi_f = bi_f.at[0, c0:c0 + H].set(bf)
            bi_f = bi_f.at[0, c0 + H:c0 + 2 * H].set(bb)
        bhn = jnp.concatenate([b_hh[0, 2], b_hh[1, 2]])[None, :]        # (1, 2H)
        layers.append((wih_f, whh_f, bi_f, bhn))

    w2p = jnp.zeros((H, c_pad), jnp.float32).at[:, :num_class].set(params["w2"])
    b2p = jnp.zeros((1, c_pad), jnp.float32).at[:, :num_class].set(params["b2"])
    return dict(emb_p=jnp.pad(emb, ((0, Vp - V), (0, 0))),
                layers=layers,
                gamma=params["gamma"], beta=params["beta"],
                w1=params["w1"], b1=params["b1"], w2p=w2p, b2p=b2p)


# -----------------------------------------------------------------------------
# Forward wrapper: tiny int32 layout glue + one fused pallas_call.
# -----------------------------------------------------------------------------
def slot_classifier_forward(batch_tokens, packed, hidden, num_layers, num_class,
                            pad_idx=0):
    B, T = batch_tokens.shape
    Bp = ((B + 7) // 8) * 8                         # pad batch to f32 sublanes
    H = hidden
    c_pad = packed["w2p"].shape[1]

    tok = jnp.transpose(batch_tokens.astype(jnp.int32), (1, 0))        # (T, B)
    tok = jnp.pad(tok, ((0, 0), (0, Bp - B)), constant_values=pad_idx)  # (T, Bp)
    tok = tok.reshape(T * Bp, 1)

    inputs = [tok, packed["emb_p"]]
    for (wih_f, whh_f, bi_f, bhn) in packed["layers"]:
        inputs += [wih_f, whh_f, bi_f, bhn]
    inputs += [packed["gamma"], packed["beta"], packed["w1"], packed["b1"],
               packed["w2p"], packed["b2p"]]

    def full_spec(a):
        nd = a.ndim
        return pl.BlockSpec(a.shape, lambda i, _nd=nd: (0,) * _nd)

    # TODO(synk): at larger batch, add a "parallel" batch grid axis (v7x 2-TC
    # sharding) and set vmem_limit_bytes; at this size one grid step is best.
    out = pl.pallas_call(
        make_fused_kernel(num_layers, T),
        out_shape=jax.ShapeDtypeStruct((T * Bp, c_pad), jnp.float32),
        grid=(1,),
        in_specs=[full_spec(a) for a in inputs],
        out_specs=pl.BlockSpec((T * Bp, c_pad), lambda i: (0, 0)),
        scratch_shapes=[pltpu.VMEM((T * Bp, 2 * H), jnp.float32),
                        pltpu.VMEM((T * Bp, 3 * GPAD), jnp.float32)],
        compiler_params=pltpu.CompilerParams(
            dimension_semantics=("arbitrary",)),
    )(*inputs)

    out = out.reshape(T, Bp, c_pad)[:, :B, :num_class]                 # (T,B,C)
    return jnp.transpose(out, (1, 0, 2))                               # (B,T,C)


# -----------------------------------------------------------------------------
# Pure-JAX reference (PyTorch GRU semantics, flip-based bidirectional).
# -----------------------------------------------------------------------------
def reference_forward(batch_tokens, params, hidden, num_layers, num_class):
    B, T = batch_tokens.shape
    H = hidden
    x = params["embeddings"][batch_tokens]                  # (B, T, E)
    x = jnp.transpose(x, (1, 0, 2)).astype(jnp.float32)     # (T, B, E)
    for l in range(num_layers):
        lp = params["gru"][l]
        outs = []
        for d in range(2):
            xs = x if d == 0 else jnp.flip(x, axis=0)
            h = jnp.zeros((B, H), jnp.float32)
            hs = []
            for t in range(T):
                xt = xs[t]
                r = jax.nn.sigmoid(xt @ lp["w_ih"][d, 0] + lp["b_ih"][d, 0]
                                   + h @ lp["w_hh"][d, 0] + lp["b_hh"][d, 0])
                z = jax.nn.sigmoid(xt @ lp["w_ih"][d, 1] + lp["b_ih"][d, 1]
                                   + h @ lp["w_hh"][d, 1] + lp["b_hh"][d, 1])
                n = jnp.tanh(xt @ lp["w_ih"][d, 2] + lp["b_ih"][d, 2]
                             + r * (h @ lp["w_hh"][d, 2] + lp["b_hh"][d, 2]))
                h = (1.0 - z) * n + z * h
                hs.append(h)
            hseq = jnp.stack(hs, axis=0)
            if d == 1:
                hseq = jnp.flip(hseq, axis=0)
            outs.append(hseq)
        x = jnp.concatenate(outs, axis=-1)                  # (T, B, 2H)
    mu = jnp.mean(x, axis=-1, keepdims=True)
    var = jnp.mean(jnp.square(x - mu), axis=-1, keepdims=True)
    xn = (x - mu) / jnp.sqrt(var + 1e-5) * params["gamma"][0] + params["beta"][0]
    h1 = xn @ params["w1"] + params["b1"]
    logits = h1 @ params["w2"] + params["b2"]
    return jnp.transpose(logits, (1, 0, 2))                 # (B, T, C)


if __name__ == "__main__":
    VOCAB, EMB_DIM = 50, 32
    HIDDEN, NUM_LAYERS = 32, 2
    NUM_CLASS, PAD_IDX = 9, 0
    B, T = 2, 8

    key = jax.random.PRNGKey(0)
    k_param, k_tok = jax.random.split(key)
    params = init_params(k_param, VOCAB, EMB_DIM, HIDDEN, NUM_LAYERS,
                         NUM_CLASS, PAD_IDX)
    packed = pack_params(params, HIDDEN, NUM_CLASS)
    batch = jax.random.randint(k_tok, (B, T), 0, VOCAB, dtype=jnp.int32)

    out = slot_classifier_forward(batch, packed, HIDDEN, NUM_LAYERS, NUM_CLASS,
                                  pad_idx=PAD_IDX)
    out = jax.block_until_ready(out)

    assert out.shape == (B, T, NUM_CLASS), out.shape
    assert bool(jnp.all(jnp.isfinite(out)))

    ref = reference_forward(batch, params, HIDDEN, NUM_LAYERS, NUM_CLASS)
    assert bool(jnp.allclose(out, ref, atol=1e-4, rtol=1e-4)), (
        float(jnp.max(jnp.abs(out - ref))))

    print("KERNEL_OK")
</pallas_src>

<mosaic_0001>
module attributes {stable_mosaic.version = 11 : i64} {
  func.func @kernel(%arg0: i32, %arg1: memref<64x1xi32, #tpu.memory_space<vmem>>, %arg2: memref<56x32xf32, #tpu.memory_space<vmem>>, %arg3: memref<32x384xf32, #tpu.memory_space<vmem>>, %arg4: memref<64x384xf32, #tpu.memory_space<vmem>>, %arg5: memref<1x384xf32, #tpu.memory_space<vmem>>, %arg6: memref<1x64xf32, #tpu.memory_space<vmem>>, %arg7: memref<64x384xf32, #tpu.memory_space<vmem>>, %arg8: memref<64x384xf32, #tpu.memory_space<vmem>>, %arg9: memref<1x384xf32, #tpu.memory_space<vmem>>, %arg10: memref<1x64xf32, #tpu.memory_space<vmem>>, %arg11: memref<1x64xf32, #tpu.memory_space<vmem>>, %arg12: memref<1x64xf32, #tpu.memory_space<vmem>>, %arg13: memref<64x32xf32, #tpu.memory_space<vmem>>, %arg14: memref<1x32xf32, #tpu.memory_space<vmem>>, %arg15: memref<32x128xf32, #tpu.memory_space<vmem>>, %arg16: memref<1x128xf32, #tpu.memory_space<vmem>>, %arg17: memref<64x128xf32, #tpu.memory_space<vmem>>, %arg18: memref<64x64xf32, #tpu.memory_space<vmem>>, %arg19: memref<64x384xf32, #tpu.memory_space<vmem>>) attributes {dimension_semantics = [#tpu.dimension_semantics<arbitrary>], iteration_bounds = array<i64: 1>, scalar_prefetch = 0 : i64, scratch_operands = 2 : i64, tpu.core_type = #tpu.core_type<tc>, window_params = [{pipeline_mode = #tpu.pipeline_mode<synchronous>, transform_indices = @transform_0, window_bounds = array<i64: 64, 1>}, {pipeline_mode = #tpu.pipeline_mode<synchronous>, transform_indices = @transform_1, window_bounds = array<i64: 56, 32>}, {pipeline_mode = #tpu.pipeline_mode<synchronous>, transform_indices = @transform_2, window_bounds = array<i64: 32, 384>}, {pipeline_mode = #tpu.pipeline_mode<synchronous>, transform_indices = @transform_3, window_bounds = array<i64: 64, 384>}, {pipeline_mode = #tpu.pipeline_mode<synchronous>, transform_indices = @transform_4, window_bounds = array<i64: 1, 384>}, {pipeline_mode = #tpu.pipeline_mode<synchronous>, transform_indices = @transform_5, window_bounds = array<i64: 1, 64>}, {pipeline_mode = #tpu.pipeline_mode<synchronous>, transform_indices = @transform_6, window_bounds = array<i64: 64, 384>}, {pipeline_mode = #tpu.pipeline_mode<synchronous>, transform_indices = @transform_7, window_bounds = array<i64: 64, 384>}, {pipeline_mode = #tpu.pipeline_mode<synchronous>, transform_indices = @transform_8, window_bounds = array<i64: 1, 384>}, {pipeline_mode = #tpu.pipeline_mode<synchronous>, transform_indices = @transform_9, window_bounds = array<i64: 1, 64>}, {pipeline_mode = #tpu.pipeline_mode<synchronous>, transform_indices = @transform_10, window_bounds = array<i64: 1, 64>}, {pipeline_mode = #tpu.pipeline_mode<synchronous>, transform_indices = @transform_11, window_bounds = array<i64: 1, 64>}, {pipeline_mode = #tpu.pipeline_mode<synchronous>, transform_indices = @transform_12, window_bounds = array<i64: 64, 32>}, {pipeline_mode = #tpu.pipeline_mode<synchronous>, transform_indices = @transform_13, window_bounds = array<i64: 1, 32>}, {pipeline_mode = #tpu.pipeline_mode<synchronous>, transform_indices = @transform_14, window_bounds = array<i64: 32, 128>}, {pipeline_mode = #tpu.pipeline_mode<synchronous>, transform_indices = @transform_15, window_bounds = array<i64: 1, 128>}, {pipeline_mode = #tpu.pipeline_mode<synchronous>, transform_indices = @transform_16, window_bounds = array<i64: 64, 128>}]} {
    %cst = arith.constant 0.000000e+00 : f32
    %0 = vector.broadcast %cst : f32 to vector<64x64xf32>
    %c0 = arith.constant 0 : index
    %c0_0 = arith.constant 0 : index
    %1 = vector.load %arg18[%c0, %c0_0] : memref<64x64xf32, #tpu.memory_space<vmem>>, vector<64x64xf32>
    tpu.vector_store %arg18[%c0, %c0_0], %0 {strides = array<i32>} : memref<64x64xf32, #tpu.memory_space<vmem>>, vector<64x64xf32>,
    %c0_1 = arith.constant 0 : index
    %c0_2 = arith.constant 0 : index
    %2 = vector.load %arg1[%c0_1, %c0_2] : memref<64x1xi32, #tpu.memory_space<vmem>>, vector<64x1xi32>
    %3 = tpu.iota {dimensions = array<i32: 1>} : vector<64x56xi32>
    %4 = vector.broadcast %2 : vector<64x1xi32> to vector<64x56xi32>
    %5 = arith.cmpi eq, %4, %3 : vector<64x56xi32>
    %6 = arith.extui %5 : vector<64x56xi1> to vector<64x56xi32>
    %7 = arith.sitofp %6 : vector<64x56xi32> to vector<64x56xf32>
    %c0_3 = arith.constant 0 : index
    %c0_4 = arith.constant 0 : index
    %8 = vector.load %arg2[%c0_3, %c0_4] : memref<56x32xf32, #tpu.memory_space<vmem>>, vector<56x32xf32>
    %cst_5 = arith.constant dense<0.000000e+00> : vector<64x32xf32>
    %9 = tpu.matmul %7, %8, %cst_5 {dimension_numbers = #tpu.dot_dimension_numbers<[1], [0], [0], [1], [0, 0, 1, 1], [], []>} : vector<64x56xf32>, vector<56x32xf32>, vector<64x32xf32> -> vector<64x32xf32>
    %10 = tpu.iota {dimensions = array<i32: 1>} : vector<8x384xi32>
    %c127_i32 = arith.constant 127 : i32
    %11 = vector.broadcast %c127_i32 : i32 to vector<8x384xi32>
    %12 = arith.andi %10, %11 : vector<8x384xi32>
    %c32_i32 = arith.constant 32 : i32
    %13 = vector.broadcast %c32_i32 : i32 to vector<8x384xi32>
    %14 = arith.cmpi slt, %12, %13 : vector<8x384xi32>
    %15 = tpu.iota {dimensions = array<i32: 1>} : vector<8x64xi32>
    %c32_i32_6 = arith.constant 32 : i32
    %16 = vector.broadcast %c32_i32_6 : i32 to vector<8x64xi32>
    %17 = arith.cmpi slt, %15, %16 : vector<8x64xi32>
    %c0_7 = arith.constant 0 : index
    %c0_8 = arith.constant 0 : index
    %18 = vector.load %arg3[%c0_7, %c0_8] : memref<32x384xf32, #tpu.memory_space<vmem>>, vector<32x384xf32>
    %cst_9 = arith.constant dense<0.000000e+00> : vector<64x384xf32>
    %19 = tpu.matmul %9, %18, %cst_9 {dimension_numbers = #tpu.dot_dimension_numbers<[1], [0], [0], [1], [0, 0, 1, 1], [], []>} : vector<64x32xf32>, vector<32x384xf32>, vector<64x384xf32> -> vector<64x384xf32>
    %c0_10 = arith.constant 0 : index
    %c0_11 = arith.constant 0 : index
    %20 = vector.load %arg5[%c0_10, %c0_11] : memref<1x384xf32, #tpu.memory_space<vmem>>, vector<1x384xf32>
    %21 = vector.broadcast %20 : vector<1x384xf32> to vector<64x384xf32>
    %22 = arith.addf %19, %21 : vector<64x384xf32>
    %c0_12 = arith.constant 0 : index
    %c0_13 = arith.constant 0 : index
    %23 = vector.load %arg19[%c0_12, %c0_13] : memref<64x384xf32, #tpu.memory_space<vmem>>, vector<64x384xf32>
    tpu.vector_store %arg19[%c0_12, %c0_13], %22 {strides = array<i32>} : memref<64x384xf32, #tpu.memory_space<vmem>>, vector<64x384xf32>,
    %c0_14 = arith.constant 0 : index
    %c0_15 = arith.constant 0 : index
    %24 = vector.load %arg4[%c0_14, %c0_15] : memref<64x384xf32, #tpu.memory_space<vmem>>, vector<64x384xf32>
    %c0_16 = arith.constant 0 : index
    %c0_17 = arith.constant 0 : index
    %25 = vector.load %arg6[%c0_16, %c0_17] : memref<1x64xf32, #tpu.memory_space<vmem>>, vector<1x64xf32>
    %26 = vector.shape_cast %25 : vector<1x64xf32> to vector<1x64xf32>
    %27 = vector.broadcast %26 : vector<1x64xf32> to vector<8x64xf32>
    %cst_18 = arith.constant 0.000000e+00 : f32
    %28 = vector.broadcast %cst_18 : f32 to vector<8x64xf32>
    %c0_19 = arith.constant 0 : index
    %c0_20 = arith.constant 0 : index
    %29 = vector.load %arg19[%c0_19, %c0_20] : memref<64x384xf32, #tpu.memory_space<vmem>>, vector<8x384xf32>
    %c56 = arith.constant 56 : index
    %c0_21 = arith.constant 0 : index
    %30 = vector.load %arg19[%c56, %c0_21] : memref<64x384xf32, #tpu.memory_space<vmem>>, vector<8x384xf32>
    %31 = arith.select %14, %29, %30 : vector<8x384xi1>, vector<8x384xf32>
    %cst_22 = arith.constant dense<0.000000e+00> : vector<8x384xf32>
    %32 = tpu.matmul %28, %24, %cst_22 {dimension_numbers = #tpu.dot_dimension_numbers<[1], [0], [0], [1], [0, 0, 1, 1], [], []>} : vector<8x64xf32>, vector<64x384xf32>, vector<8x384xf32> -> vector<8x384xf32>
    %33 = vector.extract_strided_slice %31 {offsets = [0, 0], sizes = [8, 64], strides = [1, 1]} : vector<8x384xf32> to vector<8x64xf32>
    %34 = vector.extract_strided_slice %32 {offsets = [0, 0], sizes = [8, 64], strides = [1, 1]} : vector<8x384xf32> to vector<8x64xf32>
    %35 = arith.addf %33, %34 : vector<8x64xf32>
    %36 = arith.negf %35 : vector<8x64xf32>
    %37 = math.exp %36 : vector<8x64xf32>
    %cst_23 = arith.constant 1.000000e+00 : f32
    %38 = vector.broadcast %cst_23 : f32 to vector<8x64xf32>
    %39 = arith.addf %38, %37 : vector<8x64xf32>
    %40 = arith.divf %38, %39 : vector<8x64xf32>
    %41 = vector.extract_strided_slice %31 {offsets = [0, 128], sizes = [8, 64], strides = [1, 1]} : vector<8x384xf32> to vector<8x64xf32>
    %42 = vector.extract_strided_slice %32 {offsets = [0, 128], sizes = [8, 64], strides = [1, 1]} : vector<8x384xf32> to vector<8x64xf32>
    %43 = arith.addf %41, %42 : vector<8x64xf32>
    %44 = arith.negf %43 : vector<8x64xf32>
    %45 = math.exp %44 : vector<8x64xf32>
    %cst_24 = arith.constant 1.000000e+00 : f32
    %46 = vector.broadcast %cst_24 : f32 to vector<8x64xf32>
    %47 = arith.addf %46, %45 : vector<8x64xf32>
    %48 = arith.divf %46, %47 : vector<8x64xf32>
    %49 = vector.extract_strided_slice %31 {offsets = [0, 256], sizes = [8, 64], strides = [1, 1]} : vector<8x384xf32> to vector<8x64xf32>
    %50 = vector.extract_strided_slice %32 {offsets = [0, 256], sizes = [8, 64], strides = [1, 1]} : vector<8x384xf32> to vector<8x64xf32>
    %51 = arith.addf %50, %27 : vector<8x64xf32>
    %52 = arith.mulf %40, %51 : vector<8x64xf32>
    %53 = arith.addf %49, %52 : vector<8x64xf32>
    %54 = math.tanh %53 : vector<8x64xf32>
    %cst_25 = arith.constant 1.000000e+00 : f32
    %55 = vector.broadcast %cst_25 : f32 to vector<8x64xf32>
    %56 = arith.subf %55, %48 : vector<8x64xf32>
    %57 = arith.mulf %56, %54 : vector<8x64xf32>
    %58 = arith.mulf %48, %28 : vector<8x64xf32>
    %59 = arith.addf %57, %58 : vector<8x64xf32>
    %c0_26 = arith.constant 0 : index
    %c0_27 = arith.constant 0 : index
    %60 = vector.load %arg18[%c0_26, %c0_27] : memref<64x64xf32, #tpu.memory_space<vmem>>, vector<8x64xf32>
    %61 = arith.select %17, %59, %60 : vector<8x64xi1>, vector<8x64xf32>
    %c0_28 = arith.constant 0 : index
    %c0_29 = arith.constant 0 : index
    %62 = vector.load %arg18[%c0_28, %c0_29] : memref<64x64xf32, #tpu.memory_space<vmem>>, vector<8x64xf32>
    tpu.vector_store %arg18[%c0_28, %c0_29], %61 {strides = array<i32>} : memref<64x64xf32, #tpu.memory_space<vmem>>, vector<8x64xf32>,
    %c56_30 = arith.constant 56 : index
    %c0_31 = arith.constant 0 : index
    %63 = vector.load %arg18[%c56_30, %c0_31] : memref<64x64xf32, #tpu.memory_space<vmem>>, vector<8x64xf32>
    %64 = arith.select %17, %63, %59 : vector<8x64xi1>, vector<8x64xf32>
    %c56_32 = arith.constant 56 : index
    %c0_33 = arith.constant 0 : index
    %65 = vector.load %arg18[%c56_32, %c0_33] : memref<64x64xf32, #tpu.memory_space<vmem>>, vector<8x64xf32>
    tpu.vector_store %arg18[%c56_32, %c0_33], %64 {strides = array<i32>} : memref<64x64xf32, #tpu.memory_space<vmem>>, vector<8x64xf32>,
    %c8 = arith.constant 8 : index
    %c0_34 = arith.constant 0 : index
    %66 = vector.load %arg19[%c8, %c0_34] : memref<64x384xf32, #tpu.memory_space<vmem>>, vector<8x384xf32>
    %c48 = arith.constant 48 : index
    %c0_35 = arith.constant 0 : index
    %67 = vector.load %arg19[%c48, %c0_35] : memref<64x384xf32, #tpu.memory_space<vmem>>, vector<8x384xf32>
    %68 = arith.select %14, %66, %67 : vector<8x384xi1>, vector<8x384xf32>
    %cst_36 = arith.constant dense<0.000000e+00> : vector<8x384xf32>
    %69 = tpu.matmul %59, %24, %cst_36 {dimension_numbers = #tpu.dot_dimension_numbers<[1], [0], [0], [1], [0, 0, 1, 1], [], []>} : vector<8x64xf32>, vector<64x384xf32>, vector<8x384xf32> -> vector<8x384xf32>
    %70 = vector.extract_strided_slice %68 {offsets = [0, 0], sizes = [8, 64], strides = [1, 1]} : vector<8x384xf32> to vector<8x64xf32>
    %71 = vector.extract_strided_slice %69 {offsets = [0, 0], sizes = [8, 64], strides = [1, 1]} : vector<8x384xf32> to vector<8x64xf32>
    %72 = arith.addf %70, %71 : vector<8x64xf32>
    %73 = arith.negf %72 : vector<8x64xf32>
    %74 = math.exp %73 : vector<8x64xf32>
    %cst_37 = arith.constant 1.000000e+00 : f32
    %75 = vector.broadcast %cst_37 : f32 to vector<8x64xf32>
    %76 = arith.addf %75, %74 : vector<8x64xf32>
    %77 = arith.divf %75, %76 : vector<8x64xf32>
    %78 = vector.extract_strided_slice %68 {offsets = [0, 128], sizes = [8, 64], strides = [1, 1]} : vector<8x384xf32> to vector<8x64xf32>
    %79 = vector.extract_strided_slice %69 {offsets = [0, 128], sizes = [8, 64], strides = [1, 1]} : vector<8x384xf32> to vector<8x64xf32>
    %80 = arith.addf %78, %79 : vector<8x64xf32>
    %81 = arith.negf %80 : vector<8x64xf32>
    %82 = math.exp %81 : vector<8x64xf32>
    %cst_38 = arith.constant 1.000000e+00 : f32
    %83 = vector.broadcast %cst_38 : f32 to vector<8x64xf32>
    %84 = arith.addf %83, %82 : vector<8x64xf32>
    %85 = arith.divf %83, %84 : vector<8x64xf32>
    %86 = vector.extract_strided_slice %68 {offsets = [0, 256], sizes = [8, 64], strides = [1, 1]} : vector<8x384xf32> to vector<8x64xf32>
    %87 = vector.extract_strided_slice %69 {offsets = [0, 256], sizes = [8, 64], strides = [1, 1]} : vector<8x384xf32> to vector<8x64xf32>
    %88 = arith.addf %87, %27 : vector<8x64xf32>
    %89 = arith.mulf %77, %88 : vector<8x64xf32>
    %90 = arith.addf %86, %89 : vector<8x64xf32>
    %91 = math.tanh %90 : vector<8x64xf32>
    %cst_39 = arith.constant 1.000000e+00 : f32
    %92 = vector.broadcast %cst_39 : f32 to vector<8x64xf32>
    %93 = arith.subf %92, %85 : vector<8x64xf32>
    %94 = arith.mulf %93, %91 : vector<8x64xf32>
    %95 = arith.mulf %85, %59 : vector<8x64xf32>
    %96 = arith.addf %94, %95 : vector<8x64xf32>
    %c8_40 = arith.constant 8 : index
    %c0_41 = arith.constant 0 : index
    %97 = vector.load %arg18[%c8_40, %c0_41] : memref<64x64xf32, #tpu.memory_space<vmem>>, vector<8x64xf32>
    %98 = arith.select %17, %96, %97 : vector<8x64xi1>, vector<8x64xf32>
    %c8_42 = arith.constant 8 : index
    %c0_43 = arith.constant 0 : index
    %99 = vector.load %arg18[%c8_42, %c0_43] : memref<64x64xf32, #tpu.memory_space<vmem>>, vector<8x64xf32>
    tpu.vector_store %arg18[%c8_42, %c0_43], %98 {strides = array<i32>} : memref<64x64xf32, #tpu.memory_space<vmem>>, vector<8x64xf32>,
    %c48_44 = arith.constant 48 : index
    %c0_45 = arith.constant 0 : index
    %100 = vector.load %arg18[%c48_44, %c0_45] : memref<64x64xf32, #tpu.memory_space<vmem>>, vector<8x64xf32>
    %101 = arith.select %17, %100, %96 : vector<8x64xi1>, vector<8x64xf32>
    %c48_46 = arith.constant 48 : index
    %c0_47 = arith.constant 0 : index
    %102 = vector.load %arg18[%c48_46, %c0_47] : memref<64x64xf32, #tpu.memory_space<vmem>>, vector<8x64xf32>
    tpu.vector_store %arg18[%c48_46, %c0_47], %101 {strides = array<i32>} : memref<64x64xf32, #tpu.memory_space<vmem>>, vector<8x64xf32>,
    %c16 = arith.constant 16 : index
    %c0_48 = arith.constant 0 : index
    %103 = vector.load %arg19[%c16, %c0_48] : memref<64x384xf32, #tpu.memory_space<vmem>>, vector<8x384xf32>
    %c40 = arith.constant 40 : index
    %c0_49 = arith.constant 0 : index
    %104 = vector.load %arg19[%c40, %c0_49] : memref<64x384xf32, #tpu.memory_space<vmem>>, vector<8x384xf32>
    %105 = arith.select %14, %103, %104 : vector<8x384xi1>, vector<8x384xf32>
    %cst_50 = arith.constant dense<0.000000e+00> : vector<8x384xf32>
    %106 = tpu.matmul %96, %24, %cst_50 {dimension_numbers = #tpu.dot_dimension_numbers<[1], [0], [0], [1], [0, 0, 1, 1], [], []>} : vector<8x64xf32>, vector<64x384xf32>, vector<8x384xf32> -> vector<8x384xf32>
    %107 = vector.extract_strided_slice %105 {offsets = [0, 0], sizes = [8, 64], strides = [1, 1]} : vector<8x384xf32> to vector<8x64xf32>
    %108 = vector.extract_strided_slice %106 {offsets = [0, 0], sizes = [8, 64], strides = [1, 1]} : vector<8x384xf32> to vector<8x64xf32>
    %109 = arith.addf %107, %108 : vector<8x64xf32>
    %110 = arith.negf %109 : vector<8x64xf32>
    %111 = math.exp %110 : vector<8x64xf32>
    %cst_51 = arith.constant 1.000000e+00 : f32
    %112 = vector.broadcast %cst_51 : f32 to vector<8x64xf32>
    %113 = arith.addf %112, %111 : vector<8x64xf32>
    %114 = arith.divf %112, %113 : vector<8x64xf32>
    %115 = vector.extract_strided_slice %105 {offsets = [0, 128], sizes = [8, 64], strides = [1, 1]} : vector<8x384xf32> to vector<8x64xf32>
    %116 = vector.extract_strided_slice %106 {offsets = [0, 128], sizes = [8, 64], strides = [1, 1]} : vector<8x384xf32> to vector<8x64xf32>
    %117 = arith.addf %115, %116 : vector<8x64xf32>
    %118 = arith.negf %117 : vector<8x64xf32>
    %119 = math.exp %118 : vector<8x64xf32>
    %cst_52 = arith.constant 1.000000e+00 : f32
    %120 = vector.broadcast %cst_52 : f32 to vector<8x64xf32>
    %121 = arith.addf %120, %119 : vector<8x64xf32>
    %122 = arith.divf %120, %121 : vector<8x64xf32>
    %123 = vector.extract_strided_slice %105 {offsets = [0, 256], sizes = [8, 64], strides = [1, 1]} : vector<8x384xf32> to vector<8x64xf32>
    %124 = vector.extract_strided_slice %106 {offsets = [0, 256], sizes = [8, 64], strides = [1, 1]} : vector<8x384xf32> to vector<8x64xf32>
    %125 = arith.addf %124, %27 : vector<8x64xf32>
    %126 = arith.mulf %114, %125 : vector<8x64xf32>
    %127 = arith.addf %123, %126 : vector<8x64xf32>
    %128 = math.tanh %127 : vector<8x64xf32>
    %cst_53 = arith.constant 1.000000e+00 : f32
    %129 = vector.broadcast %cst_53 : f32 to vector<8x64xf32>
    %130 = arith.subf %129, %122 : vector<8x64xf32>
    %131 = arith.mulf %130, %128 : vector<8x64xf32>
    %132 = arith.mulf %122, %96 : vector<8x64xf32>
    %133 = arith.addf %131, %132 : vector<8x64xf32>
    %c16_54 = arith.constant 16 : index
    %c0_55 = arith.constant 0 : index
    %134 = vector.load %arg18[%c16_54, %c0_55] : memref<64x64xf32, #tpu.memory_space<vmem>>, vector<8x64xf32>
    %135 = arith.select %17, %133, %134 : vector<8x64xi1>, vector<8x64xf32>
    %c16_56 = arith.constant 16 : index
    %c0_57 = arith.constant 0 : index
    %136 = vector.load %arg18[%c16_56, %c0_57] : memref<64x64xf32, #tpu.memory_space<vmem>>, vector<8x64xf32>
    tpu.vector_store %arg18[%c16_56, %c0_57], %135 {strides = array<i32>} : memref<64x64xf32, #tpu.memory_space<vmem>>, vector<8x64xf32>,
    %c40_58 = arith.constant 40 : index
    %c0_59 = arith.constant 0 : index
    %137 = vector.load %arg18[%c40_58, %c0_59] : memref<64x64xf32, #tpu.memory_space<vmem>>, vector<8x64xf32>
    %138 = arith.select %17, %137, %133 : vector<8x64xi1>, vector<8x64xf32>
    %c40_60 = arith.constant 40 : index
    %c0_61 = arith.constant 0 : index
    %139 = vector.load %arg18[%c40_60, %c0_61] : memref<64x64xf32, #tpu.memory_space<vmem>>, vector<8x64xf32>
    tpu.vector_store %arg18[%c40_60, %c0_61], %138 {strides = array<i32>} : memref<64x64xf32, #tpu.memory_space<vmem>>, vector<8x64xf32>,
    %c24 = arith.constant 24 : index
    %c0_62 = arith.constant 0 : index
    %140 = vector.load %arg19[%c24, %c0_62] : memref<64x384xf32, #tpu.memory_space<vmem>>, vector<8x384xf32>
    %c32 = arith.constant 32 : index
    %c0_63 = arith.constant 0 : index
    %141 = vector.load %arg19[%c32, %c0_63] : memref<64x384xf32, #tpu.memory_space<vmem>>, vector<8x384xf32>
    %142 = arith.select %14, %140, %141 : vector<8x384xi1>, vector<8x384xf32>
    %cst_64 = arith.constant dense<0.000000e+00> : vector<8x384xf32>
    %143 = tpu.matmul %133, %24, %cst_64 {dimension_numbers = #tpu.dot_dimension_numbers<[1], [0], [0], [1], [0, 0, 1, 1], [], []>} : vector<8x64xf32>, vector<64x384xf32>, vector<8x384xf32> -> vector<8x384xf32>
    %144 = vector.extract_strided_slice %142 {offsets = [0, 0], sizes = [8, 64], strides = [1, 1]} : vector<8x384xf32> to vector<8x64xf32>
    %145 = vector.extract_strided_slice %143 {offsets = [0, 0], sizes = [8, 64], strides = [1, 1]} : vector<8x384xf32> to vector<8x64xf32>
    %146 = arith.addf %144, %145 : vector<8x64xf32>
    %147 = arith.negf %146 : vector<8x64xf32>
    %148 = math.exp %147 : vector<8x64xf32>
    %cst_65 = arith.constant 1.000000e+00 : f32
    %149 = vector.broadcast %cst_65 : f32 to vector<8x64xf32>
    %150 = arith.addf %149, %148 : vector<8x64xf32>
    %151 = arith.divf %149, %150 : vector<8x64xf32>
    %152 = vector.extract_strided_slice %142 {offsets = [0, 128], sizes = [8, 64], strides = [1, 1]} : vector<8x384xf32> to vector<8x64xf32>
    %153 = vector.extract_strided_slice %143 {offsets = [0, 128], sizes = [8, 64], strides = [1, 1]} : vector<8x384xf32> to vector<8x64xf32>
    %154 = arith.addf %152, %153 : vector<8x64xf32>
    %155 = arith.negf %154 : vector<8x64xf32>
    %156 = math.exp %155 : vector<8x64xf32>
    %cst_66 = arith.constant 1.000000e+00 : f32
    %157 = vector.broadcast %cst_66 : f32 to vector<8x64xf32>
    %158 = arith.addf %157, %156 : vector<8x64xf32>
    %159 = arith.divf %157, %158 : vector<8x64xf32>
    %160 = vector.extract_strided_slice %142 {offsets = [0, 256], sizes = [8, 64], strides = [1, 1]} : vector<8x384xf32> to vector<8x64xf32>
    %161 = vector.extract_strided_slice %143 {offsets = [0, 256], sizes = [8, 64], strides = [1, 1]} : vector<8x384xf32> to vector<8x64xf32>
    %162 = arith.addf %161, %27 : vector<8x64xf32>
    %163 = arith.mulf %151, %162 : vector<8x64xf32>
    %164 = arith.addf %160, %163 : vector<8x64xf32>
    %165 = math.tanh %164 : vector<8x64xf32>
    %cst_67 = arith.constant 1.000000e+00 : f32
    %166 = vector.broadcast %cst_67 : f32 to vector<8x64xf32>
    %167 = arith.subf %166, %159 : vector<8x64xf32>
    %168 = arith.mulf %167, %165 : vector<8x64xf32>
    %169 = arith.mulf %159, %133 : vector<8x64xf32>
    %170 = arith.addf %168, %169 : vector<8x64xf32>
    %c24_68 = arith.constant 24 : index
    %c0_69 = arith.constant 0 : index
    %171 = vector.load %arg18[%c24_68, %c0_69] : memref<64x64xf32, #tpu.memory_space<vmem>>, vector<8x64xf32>
    %172 = arith.select %17, %170, %171 : vector<8x64xi1>, vector<8x64xf32>
    %c24_70 = arith.constant 24 : index
    %c0_71 = arith.constant 0 : index
    %173 = vector.load %arg18[%c24_70, %c0_71] : memref<64x64xf32, #tpu.memory_space<vmem>>, vector<8x64xf32>
    tpu.vector_store %arg18[%c24_70, %c0_71], %172 {strides = array<i32>} : memref<64x64xf32, #tpu.memory_space<vmem>>, vector<8x64xf32>,
    %c32_72 = arith.constant 32 : index
    %c0_73 = arith.constant 0 : index
    %174 = vector.load %arg18[%c32_72, %c0_73] : memref<64x64xf32, #tpu.memory_space<vmem>>, vector<8x64xf32>
    %175 = arith.select %17, %174, %170 : vector<8x64xi1>, vector<8x64xf32>
    %c32_74 = arith.constant 32 : index
    %c0_75 = arith.constant 0 : index
    %176 = vector.load %arg18[%c32_74, %c0_75] : memref<64x64xf32, #tpu.memory_space<vmem>>, vector<8x64xf32>
    tpu.vector_store %arg18[%c32_74, %c0_75], %175 {strides = array<i32>} : memref<64x64xf32, #tpu.memory_space<vmem>>, vector<8x64xf32>,
    %c32_76 = arith.constant 32 : index
    %c0_77 = arith.constant 0 : index
    %177 = vector.load %arg19[%c32_76, %c0_77] : memref<64x384xf32, #tpu.memory_space<vmem>>, vector<8x384xf32>
    %c24_78 = arith.constant 24 : index
    %c0_79 = arith.constant 0 : index
    %178 = vector.load %arg19[%c24_78, %c0_79] : memref<64x384xf32, #tpu.memory_space<vmem>>, vector<8x384xf32>
    %179 = arith.select %14, %177, %178 : vector<8x384xi1>, vector<8x384xf32>
    %cst_80 = arith.constant dense<0.000000e+00> : vector<8x384xf32>
    %180 = tpu.matmul %170, %24, %cst_80 {dimension_numbers = #tpu.dot_dimension_numbers<[1], [0], [0], [1], [0, 0, 1, 1], [], []>} : vector<8x64xf32>, vector<64x384xf32>, vector<8x384xf32> -> vector<8x384xf32>
    %181 = vector.extract_strided_slice %179 {offsets = [0, 0], sizes = [8, 64], strides = [1, 1]} : vector<8x384xf32> to vector<8x64xf32>
    %182 = vector.extract_strided_slice %180 {offsets = [0, 0], sizes = [8, 64], strides = [1, 1]} : vector<8x384xf32> to vector<8x64xf32>
    %183 = arith.addf %181, %182 : vector<8x64xf32>
    %184 = arith.negf %183 : vector<8x64xf32>
    %185 = math.exp %184 : vector<8x64xf32>
    %cst_81 = arith.constant 1.000000e+00 : f32
    %186 = vector.broadcast %cst_81 : f32 to vector<8x64xf32>
    %187 = arith.addf %186, %185 : vector<8x64xf32>
    %188 = arith.divf %186, %187 : vector<8x64xf32>
    %189 = vector.extract_strided_slice %179 {offsets = [0, 128], sizes = [8, 64], strides = [1, 1]} : vector<8x384xf32> to vector<8x64xf32>
    %190 = vector.extract_strided_slice %180 {offsets = [0, 128], sizes = [8, 64], strides = [1, 1]} : vector<8x384xf32> to vector<8x64xf32>
    %191 = arith.addf %189, %190 : vector<8x64xf32>
    %192 = arith.negf %191 : vector<8x64xf32>
    %193 = math.exp %192 : vector<8x64xf32>
    %cst_82 = arith.constant 1.000000e+00 : f32
    %194 = vector.broadcast %cst_82 : f32 to vector<8x64xf32>
    %195 = arith.addf %194, %193 : vector<8x64xf32>
    %196 = arith.divf %194, %195 : vector<8x64xf32>
    %197 = vector.extract_strided_slice %179 {offsets = [0, 256], sizes = [8, 64], strides = [1, 1]} : vector<8x384xf32> to vector<8x64xf32>
    %198 = vector.extract_strided_slice %180 {offsets = [0, 256], sizes = [8, 64], strides = [1, 1]} : vector<8x384xf32> to vector<8x64xf32>
    %199 = arith.addf %198, %27 : vector<8x64xf32>
    %200 = arith.mulf %188, %199 : vector<8x64xf32>
    %201 = arith.addf %197, %200 : vector<8x64xf32>
    %202 = math.tanh %201 : vector<8x64xf32>
    %cst_83 = arith.constant 1.000000e+00 : f32
    %203 = vector.broadcast %cst_83 : f32 to vector<8x64xf32>
    %204 = arith.subf %203, %196 : vector<8x64xf32>
    %205 = arith.mulf %204, %202 : vector<8x64xf32>
    %206 = arith.mulf %196, %170 : vector<8x64xf32>
    %207 = arith.addf %205, %206 : vector<8x64xf32>
    %c32_84 = arith.constant 32 : index
    %c0_85 = arith.constant 0 : index
    %208 = vector.load %arg18[%c32_84, %c0_85] : memref<64x64xf32, #tpu.memory_space<vmem>>, vector<8x64xf32>
    %209 = arith.select %17, %207, %208 : vector<8x64xi1>, vector<8x64xf32>
    %c32_86 = arith.constant 32 : index
    %c0_87 = arith.constant 0 : index
    %210 = vector.load %arg18[%c32_86, %c0_87] : memref<64x64xf32, #tpu.memory_space<vmem>>, vector<8x64xf32>
    tpu.vector_store %arg18[%c32_86, %c0_87], %209 {strides = array<i32>} : memref<64x64xf32, #tpu.memory_space<vmem>>, vector<8x64xf32>,
    %c24_88 = arith.constant 24 : index
    %c0_89 = arith.constant 0 : index
    %211 = vector.load %arg18[%c24_88, %c0_89] : memref<64x64xf32, #tpu.memory_space<vmem>>, vector<8x64xf32>
    %212 = arith.select %17, %211, %207 : vector<8x64xi1>, vector<8x64xf32>
    %c24_90 = arith.constant 24 : index
    %c0_91 = arith.constant 0 : index
    %213 = vector.load %arg18[%c24_90, %c0_91] : memref<64x64xf32, #tpu.memory_space<vmem>>, vector<8x64xf32>
    tpu.vector_store %arg18[%c24_90, %c0_91], %212 {strides = array<i32>} : memref<64x64xf32, #tpu.memory_space<vmem>>, vector<8x64xf32>,
    %c40_92 = arith.constant 40 : index
    %c0_93 = arith.constant 0 : index
    %214 = vector.load %arg19[%c40_92, %c0_93] : memref<64x384xf32, #tpu.memory_space<vmem>>, vector<8x384xf32>
    %c16_94 = arith.constant 16 : index
    %c0_95 = arith.constant 0 : index
    %215 = vector.load %arg19[%c16_94, %c0_95] : memref<64x384xf32, #tpu.memory_space<vmem>>, vector<8x384xf32>
    %216 = arith.select %14, %214, %215 : vector<8x384xi1>, vector<8x384xf32>
    %cst_96 = arith.constant dense<0.000000e+00> : vector<8x384xf32>
    %217 = tpu.matmul %207, %24, %cst_96 {dimension_numbers = #tpu.dot_dimension_numbers<[1], [0], [0], [1], [0, 0, 1, 1], [], []>} : vector<8x64xf32>, vector<64x384xf32>, vector<8x384xf32> -> vector<8x384xf32>
    %218 = vector.extract_strided_slice %216 {offsets = [0, 0], sizes = [8, 64], strides = [1, 1]} : vector<8x384xf32> to vector<8x64xf32>
    %219 = vector.extract_strided_slice %217 {offsets = [0, 0], sizes = [8, 64], strides = [1, 1]} : vector<8x384xf32> to vector<8x64xf32>
    %220 = arith.addf %218, %219 : vector<8x64xf32>
    %221 = arith.negf %220 : vector<8x64xf32>
    %222 = math.exp %221 : vector<8x64xf32>
    %cst_97 = arith.constant 1.000000e+00 : f32
    %223 = vector.broadcast %cst_97 : f32 to vector<8x64xf32>
    %224 = arith.addf %223, %222 : vector<8x64xf32>
    %225 = arith.divf %223, %224 : vector<8x64xf32>
    %226 = vector.extract_strided_slice %216 {offsets = [0, 128], sizes = [8, 64], strides = [1, 1]} : vector<8x384xf32> to vector<8x64xf32>
    %227 = vector.extract_strided_slice %217 {offsets = [0, 128], sizes = [8, 64], strides = [1, 1]} : vector<8x384xf32> to vector<8x64xf32>
    %228 = arith.addf %226, %227 : vector<8x64xf32>
    %229 = arith.negf %228 : vector<8x64xf32>
    %230 = math.exp %229 : vector<8x64xf32>
    %cst_98 = arith.constant 1.000000e+00 : f32
    %231 = vector.broadcast %cst_98 : f32 to vector<8x64xf32>
    %232 = arith.addf %231, %230 : vector<8x64xf32>
    %233 = arith.divf %231, %232 : vector<8x64xf32>
    %234 = vector.extract_strided_slice %216 {offsets = [0, 256], sizes = [8, 64], strides = [1, 1]} : vector<8x384xf32> to vector<8x64xf32>
    %235 = vector.extract_strided_slice %217 {offsets = [0, 256], sizes = [8, 64], strides = [1, 1]} : vector<8x384xf32> to vector<8x64xf32>
    %236 = arith.addf %235, %27 : vector<8x64xf32>
    %237 = arith.mulf %225, %236 : vector<8x64xf32>
    %238 = arith.addf %234, %237 : vector<8x64xf32>
    %239 = math.tanh %238 : vector<8x64xf32>
    %cst_99 = arith.constant 1.000000e+00 : f32
    %240 = vector.broadcast %cst_99 : f32 to vector<8x64xf32>
    %241 = arith.subf %240, %233 : vector<8x64xf32>
    %242 = arith.mulf %241, %239 : vector<8x64xf32>
    %243 = arith.mulf %233, %207 : vector<8x64xf32>
    %244 = arith.addf %242, %243 : vector<8x64xf32>
    %c40_100 = arith.constant 40 : index
    %c0_101 = arith.constant 0 : index
    %245 = vector.load %arg18[%c40_100, %c0_101] : memref<64x64xf32, #tpu.memory_space<vmem>>, vector<8x64xf32>
    %246 = arith.select %17, %244, %245 : vector<8x64xi1>, vector<8x64xf32>
    %c40_102 = arith.constant 40 : index
    %c0_103 = arith.constant 0 : index
    %247 = vector.load %arg18[%c40_102, %c0_103] : memref<64x64xf32, #tpu.memory_space<vmem>>, vector<8x64xf32>
    tpu.vector_store %arg18[%c40_102, %c0_103], %246 {strides = array<i32>} : memref<64x64xf32, #tpu.memory_space<vmem>>, vector<8x64xf32>,
    %c16_104 = arith.constant 16 : index
    %c0_105 = arith.constant 0 : index
    %248 = vector.load %arg18[%c16_104, %c0_105] : memref<64x64xf32, #tpu.memory_space<vmem>>, vector<8x64xf32>
    %249 = arith.select %17, %248, %244 : vector<8x64xi1>, vector<8x64xf32>
    %c16_106 = arith.constant 16 : index
    %c0_107 = arith.constant 0 : index
    %250 = vector.load %arg18[%c16_106, %c0_107] : memref<64x64xf32, #tpu.memory_space<vmem>>, vector<8x64xf32>
    tpu.vector_store %arg18[%c16_106, %c0_107], %249 {strides = array<i32>} : memref<64x64xf32, #tpu.memory_space<vmem>>, vector<8x64xf32>,
    %c48_108 = arith.constant 48 : index
    %c0_109 = arith.constant 0 : index
    %251 = vector.load %arg19[%c48_108, %c0_109] : memref<64x384xf32, #tpu.memory_space<vmem>>, vector<8x384xf32>
    %c8_110 = arith.constant 8 : index
    %c0_111 = arith.constant 0 : index
    %252 = vector.load %arg19[%c8_110, %c0_111] : memref<64x384xf32, #tpu.memory_space<vmem>>, vector<8x384xf32>
    %253 = arith.select %14, %251, %252 : vector<8x384xi1>, vector<8x384xf32>
    %cst_112 = arith.constant dense<0.000000e+00> : vector<8x384xf32>
    %254 = tpu.matmul %244, %24, %cst_112 {dimension_numbers = #tpu.dot_dimension_numbers<[1], [0], [0], [1], [0, 0, 1, 1], [], []>} : vector<8x64xf32>, vector<64x384xf32>, vector<8x384xf32> -> vector<8x384xf32>
    %255 = vector.extract_strided_slice %253 {offsets = [0, 0], sizes = [8, 64], strides = [1, 1]} : vector<8x384xf32> to vector<8x64xf32>
    %256 = vector.extract_strided_slice %254 {offsets = [0, 0], sizes = [8, 64], strides = [1, 1]} : vector<8x384xf32> to vector<8x64xf32>
    %257 = arith.addf %255, %256 : vector<8x64xf32>
    %258 = arith.negf %257 : vector<8x64xf32>
    %259 = math.exp %258 : vector<8x64xf32>
    %cst_113 = arith.constant 1.000000e+00 : f32
    %260 = vector.broadcast %cst_113 : f32 to vector<8x64xf32>
    %261 = arith.addf %260, %259 : vector<8x64xf32>
    %262 = arith.divf %260, %261 : vector<8x64xf32>
    %263 = vector.extract_strided_slice %253 {offsets = [0, 128], sizes = [8, 64], strides = [1, 1]} : vector<8x384xf32> to vector<8x64xf32>
    %264 = vector.extract_strided_slice %254 {offsets = [0, 128], sizes = [8, 64], strides = [1, 1]} : vector<8x384xf32> to vector<8x64xf32>
    %265 = arith.addf %263, %264 : vector<8x64xf32>
    %266 = arith.negf %265 : vector<8x64xf32>
    %267 = math.exp %266 : vector<8x64xf32>
    %cst_114 = arith.constant 1.000000e+00 : f32
    %268 = vector.broadcast %cst_114 : f32 to vector<8x64xf32>
    %269 = arith.addf %268, %267 : vector<8x64xf32>
    %270 = arith.divf %268, %269 : vector<8x64xf32>
    %271 = vector.extract_strided_slice %253 {offsets = [0, 256], sizes = [8, 64], strides = [1, 1]} : vector<8x384xf32> to vector<8x64xf32>
    %272 = vector.extract_strided_slice %254 {offsets = [0, 256], sizes = [8, 64], strides = [1, 1]} : vector<8x384xf32> to vector<8x64xf32>
    %273 = arith.addf %272, %27 : vector<8x64xf32>
    %274 = arith.mulf %262, %273 : vector<8x64xf32>
    %275 = arith.addf %271, %274 : vector<8x64xf32>
    %276 = math.tanh %275 : vector<8x64xf32>
    %cst_115 = arith.constant 1.000000e+00 : f32
    %277 = vector.broadcast %cst_115 : f32 to vector<8x64xf32>
    %278 = arith.subf %277, %270 : vector<8x64xf32>
    %279 = arith.mulf %278, %276 : vector<8x64xf32>
    %280 = arith.mulf %270, %244 : vector<8x64xf32>
    %281 = arith.addf %279, %280 : vector<8x64xf32>
    %c48_116 = arith.constant 48 : index
    %c0_117 = arith.constant 0 : index
    %282 = vector.load %arg18[%c48_116, %c0_117] : memref<64x64xf32, #tpu.memory_space<vmem>>, vector<8x64xf32>
    %283 = arith.select %17, %281, %282 : vector<8x64xi1>, vector<8x64xf32>
    %c48_118 = arith.constant 48 : index
    %c0_119 = arith.constant 0 : index
    %284 = vector.load %arg18[%c48_118, %c0_119] : memref<64x64xf32, #tpu.memory_space<vmem>>, vector<8x64xf32>
    tpu.vector_store %arg18[%c48_118, %c0_119], %283 {strides = array<i32>} : memref<64x64xf32, #tpu.memory_space<vmem>>, vector<8x64xf32>,
    %c8_120 = arith.constant 8 : index
    %c0_121 = arith.constant 0 : index
    %285 = vector.load %arg18[%c8_120, %c0_121] : memref<64x64xf32, #tpu.memory_space<vmem>>, vector<8x64xf32>
    %286 = arith.select %17, %285, %281 : vector<8x64xi1>, vector<8x64xf32>
    %c8_122 = arith.constant 8 : index
    %c0_123 = arith.constant 0 : index
    %287 = vector.load %arg18[%c8_122, %c0_123] : memref<64x64xf32, #tpu.memory_space<vmem>>, vector<8x64xf32>
    tpu.vector_store %arg18[%c8_122, %c0_123], %286 {strides = array<i32>} : memref<64x64xf32, #tpu.memory_space<vmem>>, vector<8x64xf32>,
    %c56_124 = arith.constant 56 : index
    %c0_125 = arith.constant 0 : index
    %288 = vector.load %arg19[%c56_124, %c0_125] : memref<64x384xf32, #tpu.memory_space<vmem>>, vector<8x384xf32>
    %c0_126 = arith.constant 0 : index
    %c0_127 = arith.constant 0 : index
    %289 = vector.load %arg19[%c0_126, %c0_127] : memref<64x384xf32, #tpu.memory_space<vmem>>, vector<8x384xf32>
    %290 = arith.select %14, %288, %289 : vector<8x384xi1>, vector<8x384xf32>
    %cst_128 = arith.constant dense<0.000000e+00> : vector<8x384xf32>
    %291 = tpu.matmul %281, %24, %cst_128 {dimension_numbers = #tpu.dot_dimension_numbers<[1], [0], [0], [1], [0, 0, 1, 1], [], []>} : vector<8x64xf32>, vector<64x384xf32>, vector<8x384xf32> -> vector<8x384xf32>
    %292 = vector.extract_strided_slice %290 {offsets = [0, 0], sizes = [8, 64], strides = [1, 1]} : vector<8x384xf32> to vector<8x64xf32>
    %293 = vector.extract_strided_slice %291 {offsets = [0, 0], sizes = [8, 64], strides = [1, 1]} : vector<8x384xf32> to vector<8x64xf32>
    %294 = arith.addf %292, %293 : vector<8x64xf32>
    %295 = arith.negf %294 : vector<8x64xf32>
    %296 = math.exp %295 : vector<8x64xf32>
    %cst_129 = arith.constant 1.000000e+00 : f32
    %297 = vector.broadcast %cst_129 : f32 to vector<8x64xf32>
    %298 = arith.addf %297, %296 : vector<8x64xf32>
    %299 = arith.divf %297, %298 : vector<8x64xf32>
    %300 = vector.extract_strided_slice %290 {offsets = [0, 128], sizes = [8, 64], strides = [1, 1]} : vector<8x384xf32> to vector<8x64xf32>
    %301 = vector.extract_strided_slice %291 {offsets = [0, 128], sizes = [8, 64], strides = [1, 1]} : vector<8x384xf32> to vector<8x64xf32>
    %302 = arith.addf %300, %301 : vector<8x64xf32>
    %303 = arith.negf %302 : vector<8x64xf32>
    %304 = math.exp %303 : vector<8x64xf32>
    %cst_130 = arith.constant 1.000000e+00 : f32
    %305 = vector.broadcast %cst_130 : f32 to vector<8x64xf32>
    %306 = arith.addf %305, %304 : vector<8x64xf32>
    %307 = arith.divf %305, %306 : vector<8x64xf32>
    %308 = vector.extract_strided_slice %290 {offsets = [0, 256], sizes = [8, 64], strides = [1, 1]} : vector<8x384xf32> to vector<8x64xf32>
    %309 = vector.extract_strided_slice %291 {offsets = [0, 256], sizes = [8, 64], strides = [1, 1]} : vector<8x384xf32> to vector<8x64xf32>
    %310 = arith.addf %309, %27 : vector<8x64xf32>
    %311 = arith.mulf %299, %310 : vector<8x64xf32>
    %312 = arith.addf %308, %311 : vector<8x64xf32>
    %313 = math.tanh %312 : vector<8x64xf32>
    %cst_131 = arith.constant 1.000000e+00 : f32
    %314 = vector.broadcast %cst_131 : f32 to vector<8x64xf32>
    %315 = arith.subf %314, %307 : vector<8x64xf32>
    %316 = arith.mulf %315, %313 : vector<8x64xf32>
    %317 = arith.mulf %307, %281 : vector<8x64xf32>
    %318 = arith.addf %316, %317 : vector<8x64xf32>
    %c56_132 = arith.constant 56 : index
    %c0_133 = arith.constant 0 : index
    %319 = vector.load %arg18[%c56_132, %c0_133] : memref<64x64xf32, #tpu.memory_space<vmem>>, vector<8x64xf32>
    %320 = arith.select %17, %318, %319 : vector<8x64xi1>, vector<8x64xf32>
    %c56_134 = arith.constant 56 : index
    %c0_135 = arith.constant 0 : index
    %321 = vector.load %arg18[%c56_134, %c0_135] : memref<64x64xf32, #tpu.memory_space<vmem>>, vector<8x64xf32>
    tpu.vector_store %arg18[%c56_134, %c0_135], %320 {strides = array<i32>} : memref<64x64xf32, #tpu.memory_space<vmem>>, vector<8x64xf32>,
    %c0_136 = arith.constant 0 : index
    %c0_137 = arith.constant 0 : index
    %322 = vector.load %arg18[%c0_136, %c0_137] : memref<64x64xf32, #tpu.memory_space<vmem>>, vector<8x64xf32>
    %323 = arith.select %17, %322, %318 : vector<8x64xi1>, vector<8x64xf32>
    %c0_138 = arith.constant 0 : index
    %c0_139 = arith.constant 0 : index
    %324 = vector.load %arg18[%c0_138, %c0_139] : memref<64x64xf32, #tpu.memory_space<vmem>>, vector<8x64xf32>
    tpu.vector_store %arg18[%c0_138, %c0_139], %323 {strides = array<i32>} : memref<64x64xf32, #tpu.memory_space<vmem>>, vector<8x64xf32>,
    %c0_140 = arith.constant 0 : index
    %c0_141 = arith.constant 0 : index
    %325 = vector.load %arg18[%c0_140, %c0_141] : memref<64x64xf32, #tpu.memory_space<vmem>>, vector<64x64xf32>
    %c0_142 = arith.constant 0 : index
    %c0_143 = arith.constant 0 : index
    %326 = vector.load %arg7[%c0_142, %c0_143] : memref<64x384xf32, #tpu.memory_space<vmem>>, vector<64x384xf32>
    %cst_144 = arith.constant dense<0.000000e+00> : vector<64x384xf32>
    %327 = tpu.matmul %325, %326, %cst_144 {dimension_numbers = #tpu.dot_dimension_numbers<[1], [0], [0], [1], [0, 0, 1, 1], [], []>} : vector<64x64xf32>, vector<64x384xf32>, vector<64x384xf32> -> vector<64x384xf32>
    %c0_145 = arith.constant 0 : index
    %c0_146 = arith.constant 0 : index
    %328 = vector.load %arg9[%c0_145, %c0_146] : memref<1x384xf32, #tpu.memory_space<vmem>>, vector<1x384xf32>
    %329 = vector.broadcast %328 : vector<1x384xf32> to vector<64x384xf32>
    %330 = arith.addf %327, %329 : vector<64x384xf32>
    %c0_147 = arith.constant 0 : index
    %c0_148 = arith.constant 0 : index
    %331 = vector.load %arg19[%c0_147, %c0_148] : memref<64x384xf32, #tpu.memory_space<vmem>>, vector<64x384xf32>
    tpu.vector_store %arg19[%c0_147, %c0_148], %330 {strides = array<i32>} : memref<64x384xf32, #tpu.memory_space<vmem>>, vector<64x384xf32>,
    %c0_149 = arith.constant 0 : index
    %c0_150 = arith.constant 0 : index
    %332 = vector.load %arg8[%c0_149, %c0_150] : memref<64x384xf32, #tpu.memory_space<vmem>>, vector<64x384xf32>
    %c0_151 = arith.constant 0 : index
    %c0_152 = arith.constant 0 : index
    %333 = vector.load %arg10[%c0_151, %c0_152] : memref<1x64xf32, #tpu.memory_space<vmem>>, vector<1x64xf32>
    %334 = vector.shape_cast %333 : vector<1x64xf32> to vector<1x64xf32>
    %335 = vector.broadcast %334 : vector<1x64xf32> to vector<8x64xf32>
    %cst_153 = arith.constant 0.000000e+00 : f32
    %336 = vector.broadcast %cst_153 : f32 to vector<8x64xf32>
    %c0_154 = arith.constant 0 : index
    %c0_155 = arith.constant 0 : index
    %337 = vector.load %arg19[%c0_154, %c0_155] : memref<64x384xf32, #tpu.memory_space<vmem>>, vector<8x384xf32>
    %c56_156 = arith.constant 56 : index
    %c0_157 = arith.constant 0 : index
    %338 = vector.load %arg19[%c56_156, %c0_157] : memref<64x384xf32, #tpu.memory_space<vmem>>, vector<8x384xf32>
    %339 = arith.select %14, %337, %338 : vector<8x384xi1>, vector<8x384xf32>
    %cst_158 = arith.constant dense<0.000000e+00> : vector<8x384xf32>
    %340 = tpu.matmul %336, %332, %cst_158 {dimension_numbers = #tpu.dot_dimension_numbers<[1], [0], [0], [1], [0, 0, 1, 1], [], []>} : vector<8x64xf32>, vector<64x384xf32>, vector<8x384xf32> -> vector<8x384xf32>
    %341 = vector.extract_strided_slice %339 {offsets = [0, 0], sizes = [8, 64], strides = [1, 1]} : vector<8x384xf32> to vector<8x64xf32>
    %342 = vector.extract_strided_slice %340 {offsets = [0, 0], sizes = [8, 64], strides = [1, 1]} : vector<8x384xf32> to vector<8x64xf32>
    %343 = arith.addf %341, %342 : vector<8x64xf32>
    %344 = arith.negf %343 : vector<8x64xf32>
    %345 = math.exp %344 : vector<8x64xf32>
    %cst_159 = arith.constant 1.000000e+00 : f32
    %346 = vector.broadcast %cst_159 : f32 to vector<8x64xf32>
    %347 = arith.addf %346, %345 : vector<8x64xf32>
    %348 = arith.divf %346, %347 : vector<8x64xf32>
    %349 = vector.extract_strided_slice %339 {offsets = [0, 128], sizes = [8, 64], strides = [1, 1]} : vector<8x384xf32> to vector<8x64xf32>
    %350 = vector.extract_strided_slice %340 {offsets = [0, 128], sizes = [8, 64], strides = [1, 1]} : vector<8x384xf32> to vector<8x64xf32>
    %351 = arith.addf %349, %350 : vector<8x64xf32>
    %352 = arith.negf %351 : vector<8x64xf32>
    %353 = math.exp %352 : vector<8x64xf32>
    %cst_160 = arith.constant 1.000000e+00 : f32
    %354 = vector.broadcast %cst_160 : f32 to vector<8x64xf32>
    %355 = arith.addf %354, %353 : vector<8x64xf32>
    %356 = arith.divf %354, %355 : vector<8x64xf32>
    %357 = vector.extract_strided_slice %339 {offsets = [0, 256], sizes = [8, 64], strides = [1, 1]} : vector<8x384xf32> to vector<8x64xf32>
    %358 = vector.extract_strided_slice %340 {offsets = [0, 256], sizes = [8, 64], strides = [1, 1]} : vector<8x384xf32> to vector<8x64xf32>
    %359 = arith.addf %358, %335 : vector<8x64xf32>
    %360 = arith.mulf %348, %359 : vector<8x64xf32>
    %361 = arith.addf %357, %360 : vector<8x64xf32>
    %362 = math.tanh %361 : vector<8x64xf32>
    %cst_161 = arith.constant 1.000000e+00 : f32
    %363 = vector.broadcast %cst_161 : f32 to vector<8x64xf32>
    %364 = arith.subf %363, %356 : vector<8x64xf32>
    %365 = arith.mulf %364, %362 : vector<8x64xf32>
    %366 = arith.mulf %356, %336 : vector<8x64xf32>
    %367 = arith.addf %365, %366 : vector<8x64xf32>
    %c0_162 = arith.constant 0 : index
    %c0_163 = arith.constant 0 : index
    %368 = vector.load %arg18[%c0_162, %c0_163] : memref<64x64xf32, #tpu.memory_space<vmem>>, vector<8x64xf32>
    %369 = arith.select %17, %367, %368 : vector<8x64xi1>, vector<8x64xf32>
    %c0_164 = arith.constant 0 : index
    %c0_165 = arith.constant 0 : index
    %370 = vector.load %arg18[%c0_164, %c0_165] : memref<64x64xf32, #tpu.memory_space<vmem>>, vector<8x64xf32>
    tpu.vector_store %arg18[%c0_164, %c0_165], %369 {strides = array<i32>} : memref<64x64xf32, #tpu.memory_space<vmem>>, vector<8x64xf32>,
    %c56_166 = arith.constant 56 : index
    %c0_167 = arith.constant 0 : index
    %371 = vector.load %arg18[%c56_166, %c0_167] : memref<64x64xf32, #tpu.memory_space<vmem>>, vector<8x64xf32>
    %372 = arith.select %17, %371, %367 : vector<8x64xi1>, vector<8x64xf32>
    %c56_168 = arith.constant 56 : index
    %c0_169 = arith.constant 0 : index
    %373 = vector.load %arg18[%c56_168, %c0_169] : memref<64x64xf32, #tpu.memory_space<vmem>>, vector<8x64xf32>
    tpu.vector_store %arg18[%c56_168, %c0_169], %372 {strides = array<i32>} : memref<64x64xf32, #tpu.memory_space<vmem>>, vector<8x64xf32>,
    %c8_170 = arith.constant 8 : index
    %c0_171 = arith.constant 0 : index
    %374 = vector.load %arg19[%c8_170, %c0_171] : memref<64x384xf32, #tpu.memory_space<vmem>>, vector<8x384xf32>
    %c48_172 = arith.constant 48 : index
    %c0_173 = arith.constant 0 : index
    %375 = vector.load %arg19[%c48_172, %c0_173] : memref<64x384xf32, #tpu.memory_space<vmem>>, vector<8x384xf32>
    %376 = arith.select %14, %374, %375 : vector<8x384xi1>, vector<8x384xf32>
    %cst_174 = arith.constant dense<0.000000e+00> : vector<8x384xf32>
    %377 = tpu.matmul %367, %332, %cst_174 {dimension_numbers = #tpu.dot_dimension_numbers<[1], [0], [0], [1], [0, 0, 1, 1], [], []>} : vector<8x64xf32>, vector<64x384xf32>, vector<8x384xf32> -> vector<8x384xf32>
    %378 = vector.extract_strided_slice %376 {offsets = [0, 0], sizes = [8, 64], strides = [1, 1]} : vector<8x384xf32> to vector<8x64xf32>
    %379 = vector.extract_strided_slice %377 {offsets = [0, 0], sizes = [8, 64], strides = [1, 1]} : vector<8x384xf32> to vector<8x64xf32>
    %380 = arith.addf %378, %379 : vector<8x64xf32>
    %381 = arith.negf %380 : vector<8x64xf32>
    %382 = math.exp %381 : vector<8x64xf32>
    %cst_175 = arith.constant 1.000000e+00 : f32
    %383 = vector.broadcast %cst_175 : f32 to vector<8x64xf32>
    %384 = arith.addf %383, %382 : vector<8x64xf32>
    %385 = arith.divf %383, %384 : vector<8x64xf32>
    %386 = vector.extract_strided_slice %376 {offsets = [0, 128], sizes = [8, 64], strides = [1, 1]} : vector<8x384xf32> to vector<8x64xf32>
    %387 = vector.extract_strided_slice %377 {offsets = [0, 128], sizes = [8, 64], strides = [1, 1]} : vector<8x384xf32> to vector<8x64xf32>
    %388 = arith.addf %386, %387 : vector<8x64xf32>
    %389 = arith.negf %388 : vector<8x64xf32>
    %390 = math.exp %389 : vector<8x64xf32>
    %cst_176 = arith.constant 1.000000e+00 : f32
    %391 = vector.broadcast %cst_176 : f32 to vector<8x64xf32>
    %392 = arith.addf %391, %390 : vector<8x64xf32>
    %393 = arith.divf %391, %392 : vector<8x64xf32>
    %394 = vector.extract_strided_slice %376 {offsets = [0, 256], sizes = [8, 64], strides = [1, 1]} : vector<8x384xf32> to vector<8x64xf32>
    %395 = vector.extract_strided_slice %377 {offsets = [0, 256], sizes = [8, 64], strides = [1, 1]} : vector<8x384xf32> to vector<8x64xf32>
    %396 = arith.addf %395, %335 : vector<8x64xf32>
    %397 = arith.mulf %385, %396 : vector<8x64xf32>
    %398 = arith.addf %394, %397 : vector<8x64xf32>
    %399 = math.tanh %398 : vector<8x64xf32>
    %cst_177 = arith.constant 1.000000e+00 : f32
    %400 = vector.broadcast %cst_177 : f32 to vector<8x64xf32>
    %401 = arith.subf %400, %393 : vector<8x64xf32>
    %402 = arith.mulf %401, %399 : vector<8x64xf32>
    %403 = arith.mulf %393, %367 : vector<8x64xf32>
    %404 = arith.addf %402, %403 : vector<8x64xf32>
    %c8_178 = arith.constant 8 : index
    %c0_179 = arith.constant 0 : index
    %405 = vector.load %arg18[%c8_178, %c0_179] : memref<64x64xf32, #tpu.memory_space<vmem>>, vector<8x64xf32>
    %406 = arith.select %17, %404, %405 : vector<8x64xi1>, vector<8x64xf32>
    %c8_180 = arith.constant 8 : index
    %c0_181 = arith.constant 0 : index
    %407 = vector.load %arg18[%c8_180, %c0_181] : memref<64x64xf32, #tpu.memory_space<vmem>>, vector<8x64xf32>
    tpu.vector_store %arg18[%c8_180, %c0_181], %406 {strides = array<i32>} : memref<64x64xf32, #tpu.memory_space<vmem>>, vector<8x64xf32>,
    %c48_182 = arith.constant 48 : index
    %c0_183 = arith.constant 0 : index
    %408 = vector.load %arg18[%c48_182, %c0_183] : memref<64x64xf32, #tpu.memory_space<vmem>>, vector<8x64xf32>
    %409 = arith.select %17, %408, %404 : vector<8x64xi1>, vector<8x64xf32>
    %c48_184 = arith.constant 48 : index
    %c0_185 = arith.constant 0 : index
    %410 = vector.load %arg18[%c48_184, %c0_185] : memref<64x64xf32, #tpu.memory_space<vmem>>, vector<8x64xf32>
    tpu.vector_store %arg18[%c48_184, %c0_185], %409 {strides = array<i32>} : memref<64x64xf32, #tpu.memory_space<vmem>>, vector<8x64xf32>,
    %c16_186 = arith.constant 16 : index
    %c0_187 = arith.constant 0 : index
    %411 = vector.load %arg19[%c16_186, %c0_187] : memref<64x384xf32, #tpu.memory_space<vmem>>, vector<8x384xf32>
    %c40_188 = arith.constant 40 : index
    %c0_189 = arith.constant 0 : index
    %412 = vector.load %arg19[%c40_188, %c0_189] : memref<64x384xf32, #tpu.memory_space<vmem>>, vector<8x384xf32>
    %413 = arith.select %14, %411, %412 : vector<8x384xi1>, vector<8x384xf32>
    %cst_190 = arith.constant dense<0.000000e+00> : vector<8x384xf32>
    %414 = tpu.matmul %404, %332, %cst_190 {dimension_numbers = #tpu.dot_dimension_numbers<[1], [0], [0], [1], [0, 0, 1, 1], [], []>} : vector<8x64xf32>, vector<64x384xf32>, vector<8x384xf32> -> vector<8x384xf32>
    %415 = vector.extract_strided_slice %413 {offsets = [0, 0], sizes = [8, 64], strides = [1, 1]} : vector<8x384xf32> to vector<8x64xf32>
    %416 = vector.extract_strided_slice %414 {offsets = [0, 0], sizes = [8, 64], strides = [1, 1]} : vector<8x384xf32> to vector<8x64xf32>
    %417 = arith.addf %415, %416 : vector<8x64xf32>
    %418 = arith.negf %417 : vector<8x64xf32>
    %419 = math.exp %418 : vector<8x64xf32>
    %cst_191 = arith.constant 1.000000e+00 : f32
    %420 = vector.broadcast %cst_191 : f32 to vector<8x64xf32>
    %421 = arith.addf %420, %419 : vector<8x64xf32>
    %422 = arith.divf %420, %421 : vector<8x64xf32>
    %423 = vector.extract_strided_slice %413 {offsets = [0, 128], sizes = [8, 64], strides = [1, 1]} : vector<8x384xf32> to vector<8x64xf32>
    %424 = vector.extract_strided_slice %414 {offsets = [0, 128], sizes = [8, 64], strides = [1, 1]} : vector<8x384xf32> to vector<8x64xf32>
    %425 = arith.addf %423, %424 : vector<8x64xf32>
    %426 = arith.negf %425 : vector<8x64xf32>
    %427 = math.exp %426 : vector<8x64xf32>
    %cst_192 = arith.constant 1.000000e+00 : f32
    %428 = vector.broadcast %cst_192 : f32 to vector<8x64xf32>
    %429 = arith.addf %428, %427 : vector<8x64xf32>
    %430 = arith.divf %428, %429 : vector<8x64xf32>
    %431 = vector.extract_strided_slice %413 {offsets = [0, 256], sizes = [8, 64], strides = [1, 1]} : vector<8x384xf32> to vector<8x64xf32>
    %432 = vector.extract_strided_slice %414 {offsets = [0, 256], sizes = [8, 64], strides = [1, 1]} : vector<8x384xf32> to vector<8x64xf32>
    %433 = arith.addf %432, %335 : vector<8x64xf32>
    %434 = arith.mulf %422, %433 : vector<8x64xf32>
    %435 = arith.addf %431, %434 : vector<8x64xf32>
    %436 = math.tanh %435 : vector<8x64xf32>
    %cst_193 = arith.constant 1.000000e+00 : f32
    %437 = vector.broadcast %cst_193 : f32 to vector<8x64xf32>
    %438 = arith.subf %437, %430 : vector<8x64xf32>
    %439 = arith.mulf %438, %436 : vector<8x64xf32>
    %440 = arith.mulf %430, %404 : vector<8x64xf32>
    %441 = arith.addf %439, %440 : vector<8x64xf32>
    %c16_194 = arith.constant 16 : index
    %c0_195 = arith.constant 0 : index
    %442 = vector.load %arg18[%c16_194, %c0_195] : memref<64x64xf32, #tpu.memory_space<vmem>>, vector<8x64xf32>
    %443 = arith.select %17, %441, %442 : vector<8x64xi1>, vector<8x64xf32>
    %c16_196 = arith.constant 16 : index
    %c0_197 = arith.constant 0 : index
    %444 = vector.load %arg18[%c16_196, %c0_197] : memref<64x64xf32, #tpu.memory_space<vmem>>, vector<8x64xf32>
    tpu.vector_store %arg18[%c16_196, %c0_197], %443 {strides = array<i32>} : memref<64x64xf32, #tpu.memory_space<vmem>>, vector<8x64xf32>,
    %c40_198 = arith.constant 40 : index
    %c0_199 = arith.constant 0 : index
    %445 = vector.load %arg18[%c40_198, %c0_199] : memref<64x64xf32, #tpu.memory_space<vmem>>, vector<8x64xf32>
    %446 = arith.select %17, %445, %441 : vector<8x64xi1>, vector<8x64xf32>
    %c40_200 = arith.constant 40 : index
    %c0_201 = arith.constant 0 : index
    %447 = vector.load %arg18[%c40_200, %c0_201] : memref<64x64xf32, #tpu.memory_space<vmem>>, vector<8x64xf32>
    tpu.vector_store %arg18[%c40_200, %c0_201], %446 {strides = array<i32>} : memref<64x64xf32, #tpu.memory_space<vmem>>, vector<8x64xf32>,
    %c24_202 = arith.constant 24 : index
    %c0_203 = arith.constant 0 : index
    %448 = vector.load %arg19[%c24_202, %c0_203] : memref<64x384xf32, #tpu.memory_space<vmem>>, vector<8x384xf32>
    %c32_204 = arith.constant 32 : index
    %c0_205 = arith.constant 0 : index
    %449 = vector.load %arg19[%c32_204, %c0_205] : memref<64x384xf32, #tpu.memory_space<vmem>>, vector<8x384xf32>
    %450 = arith.select %14, %448, %449 : vector<8x384xi1>, vector<8x384xf32>
    %cst_206 = arith.constant dense<0.000000e+00> : vector<8x384xf32>
    %451 = tpu.matmul %441, %332, %cst_206 {dimension_numbers = #tpu.dot_dimension_numbers<[1], [0], [0], [1], [0, 0, 1, 1], [], []>} : vector<8x64xf32>, vector<64x384xf32>, vector<8x384xf32> -> vector<8x384xf32>
    %452 = vector.extract_strided_slice %450 {offsets = [0, 0], sizes = [8, 64], strides = [1, 1]} : vector<8x384xf32> to vector<8x64xf32>
    %453 = vector.extract_strided_slice %451 {offsets = [0, 0], sizes = [8, 64], strides = [1, 1]} : vector<8x384xf32> to vector<8x64xf32>
    %454 = arith.addf %452, %453 : vector<8x64xf32>
    %455 = arith.negf %454 : vector<8x64xf32>
    %456 = math.exp %455 : vector<8x64xf32>
    %cst_207 = arith.constant 1.000000e+00 : f32
    %457 = vector.broadcast %cst_207 : f32 to vector<8x64xf32>
    %458 = arith.addf %457, %456 : vector<8x64xf32>
    %459 = arith.divf %457, %458 : vector<8x64xf32>
    %460 = vector.extract_strided_slice %450 {offsets = [0, 128], sizes = [8, 64], strides = [1, 1]} : vector<8x384xf32> to vector<8x64xf32>
    %461 = vector.extract_strided_slice %451 {offsets = [0, 128], sizes = [8, 64], strides = [1, 1]} : vector<8x384xf32> to vector<8x64xf32>
    %462 = arith.addf %460, %461 : vector<8x64xf32>
    %463 = arith.negf %462 : vector<8x64xf32>
    %464 = math.exp %463 : vector<8x64xf32>
    %cst_208 = arith.constant 1.000000e+00 : f32
    %465 = vector.broadcast %cst_208 : f32 to vector<8x64xf32>
    %466 = arith.addf %465, %464 : vector<8x64xf32>
    %467 = arith.divf %465, %466 : vector<8x64xf32>
    %468 = vector.extract_strided_slice %450 {offsets = [0, 256], sizes = [8, 64], strides = [1, 1]} : vector<8x384xf32> to vector<8x64xf32>
    %469 = vector.extract_strided_slice %451 {offsets = [0, 256], sizes = [8, 64], strides = [1, 1]} : vector<8x384xf32> to vector<8x64xf32>
    %470 = arith.addf %469, %335 : vector<8x64xf32>
    %471 = arith.mulf %459, %470 : vector<8x64xf32>
    %472 = arith.addf %468, %471 : vector<8x64xf32>
    %473 = math.tanh %472 : vector<8x64xf32>
    %cst_209 = arith.constant 1.000000e+00 : f32
    %474 = vector.broadcast %cst_209 : f32 to vector<8x64xf32>
    %475 = arith.subf %474, %467 : vector<8x64xf32>
    %476 = arith.mulf %475, %473 : vector<8x64xf32>
    %477 = arith.mulf %467, %441 : vector<8x64xf32>
    %478 = arith.addf %476, %477 : vector<8x64xf32>
    %c24_210 = arith.constant 24 : index
    %c0_211 = arith.constant 0 : index
    %479 = vector.load %arg18[%c24_210, %c0_211] : memref<64x64xf32, #tpu.memory_space<vmem>>, vector<8x64xf32>
    %480 = arith.select %17, %478, %479 : vector<8x64xi1>, vector<8x64xf32>
    %c24_212 = arith.constant 24 : index
    %c0_213 = arith.constant 0 : index
    %481 = vector.load %arg18[%c24_212, %c0_213] : memref<64x64xf32, #tpu.memory_space<vmem>>, vector<8x64xf32>
    tpu.vector_store %arg18[%c24_212, %c0_213], %480 {strides = array<i32>} : memref<64x64xf32, #tpu.memory_space<vmem>>, vector<8x64xf32>,
    %c32_214 = arith.constant 32 : index
    %c0_215 = arith.constant 0 : index
    %482 = vector.load %arg18[%c32_214, %c0_215] : memref<64x64xf32, #tpu.memory_space<vmem>>, vector<8x64xf32>
    %483 = arith.select %17, %482, %478 : vector<8x64xi1>, vector<8x64xf32>
    %c32_216 = arith.constant 32 : index
    %c0_217 = arith.constant 0 : index
    %484 = vector.load %arg18[%c32_216, %c0_217] : memref<64x64xf32, #tpu.memory_space<vmem>>, vector<8x64xf32>
    tpu.vector_store %arg18[%c32_216, %c0_217], %483 {strides = array<i32>} : memref<64x64xf32, #tpu.memory_space<vmem>>, vector<8x64xf32>,
    %c32_218 = arith.constant 32 : index
    %c0_219 = arith.constant 0 : index
    %485 = vector.load %arg19[%c32_218, %c0_219] : memref<64x384xf32, #tpu.memory_space<vmem>>, vector<8x384xf32>
    %c24_220 = arith.constant 24 : index
    %c0_221 = arith.constant 0 : index
    %486 = vector.load %arg19[%c24_220, %c0_221] : memref<64x384xf32, #tpu.memory_space<vmem>>, vector<8x384xf32>
    %487 = arith.select %14, %485, %486 : vector<8x384xi1>, vector<8x384xf32>
    %cst_222 = arith.constant dense<0.000000e+00> : vector<8x384xf32>
    %488 = tpu.matmul %478, %332, %cst_222 {dimension_numbers = #tpu.dot_dimension_numbers<[1], [0], [0], [1], [0, 0, 1, 1], [], []>} : vector<8x64xf32>, vector<64x384xf32>, vector<8x384xf32> -> vector<8x384xf32>
    %489 = vector.extract_strided_slice %487 {offsets = [0, 0], sizes = [8, 64], strides = [1, 1]} : vector<8x384xf32> to vector<8x64xf32>
    %490 = vector.extract_strided_slice %488 {offsets = [0, 0], sizes = [8, 64], strides = [1, 1]} : vector<8x384xf32> to vector<8x64xf32>
    %491 = arith.addf %489, %490 : vector<8x64xf32>
    %492 = arith.negf %491 : vector<8x64xf32>
    %493 = math.exp %492 : vector<8x64xf32>
    %cst_223 = arith.constant 1.000000e+00 : f32
    %494 = vector.broadcast %cst_223 : f32 to vector<8x64xf32>
    %495 = arith.addf %494, %493 : vector<8x64xf32>
    %496 = arith.divf %494, %495 : vector<8x64xf32>
    %497 = vector.extract_strided_slice %487 {offsets = [0, 128], sizes = [8, 64], strides = [1, 1]} : vector<8x384xf32> to vector<8x64xf32>
    %498 = vector.extract_strided_slice %488 {offsets = [0, 128], sizes = [8, 64], strides = [1, 1]} : vector<8x384xf32> to vector<8x64xf32>
    %499 = arith.addf %497, %498 : vector<8x64xf32>
    %500 = arith.negf %499 : vector<8x64xf32>
    %501 = math.exp %500 : vector<8x64xf32>
    %cst_224 = arith.constant 1.000000e+00 : f32
    %502 = vector.broadcast %cst_224 : f32 to vector<8x64xf32>
    %503 = arith.addf %502, %501 : vector<8x64xf32>
    %504 = arith.divf %502, %503 : vector<8x64xf32>
    %505 = vector.extract_strided_slice %487 {offsets = [0, 256], sizes = [8, 64], strides = [1, 1]} : vector<8x384xf32> to vector<8x64xf32>
    %506 = vector.extract_strided_slice %488 {offsets = [0, 256], sizes = [8, 64], strides = [1, 1]} : vector<8x384xf32> to vector<8x64xf32>
    %507 = arith.addf %506, %335 : vector<8x64xf32>
    %508 = arith.mulf %496, %507 : vector<8x64xf32>
    %509 = arith.addf %505, %508 : vector<8x64xf32>
    %510 = math.tanh %509 : vector<8x64xf32>
    %cst_225 = arith.constant 1.000000e+00 : f32
    %511 = vector.broadcast %cst_225 : f32 to vector<8x64xf32>
    %512 = arith.subf %511, %504 : vector<8x64xf32>
    %513 = arith.mulf %512, %510 : vector<8x64xf32>
    %514 = arith.mulf %504, %478 : vector<8x64xf32>
    %515 = arith.addf %513, %514 : vector<8x64xf32>
    %c32_226 = arith.constant 32 : index
    %c0_227 = arith.constant 0 : index
    %516 = vector.load %arg18[%c32_226, %c0_227] : memref<64x64xf32, #tpu.memory_space<vmem>>, vector<8x64xf32>
    %517 = arith.select %17, %515, %516 : vector<8x64xi1>, vector<8x64xf32>
    %c32_228 = arith.constant 32 : index
    %c0_229 = arith.constant 0 : index
    %518 = vector.load %arg18[%c32_228, %c0_229] : memref<64x64xf32, #tpu.memory_space<vmem>>, vector<8x64xf32>
    tpu.vector_store %arg18[%c32_228, %c0_229], %517 {strides = array<i32>} : memref<64x64xf32, #tpu.memory_space<vmem>>, vector<8x64xf32>,
    %c24_230 = arith.constant 24 : index
    %c0_231 = arith.constant 0 : index
    %519 = vector.load %arg18[%c24_230, %c0_231] : memref<64x64xf32, #tpu.memory_space<vmem>>, vector<8x64xf32>
    %520 = arith.select %17, %519, %515 : vector<8x64xi1>, vector<8x64xf32>
    %c24_232 = arith.constant 24 : index
    %c0_233 = arith.constant 0 : index
    %521 = vector.load %arg18[%c24_232, %c0_233] : memref<64x64xf32, #tpu.memory_space<vmem>>, vector<8x64xf32>
    tpu.vector_store %arg18[%c24_232, %c0_233], %520 {strides = array<i32>} : memref<64x64xf32, #tpu.memory_space<vmem>>, vector<8x64xf32>,
    %c40_234 = arith.constant 40 : index
    %c0_235 = arith.constant 0 : index
    %522 = vector.load %arg19[%c40_234, %c0_235] : memref<64x384xf32, #tpu.memory_space<vmem>>, vector<8x384xf32>
    %c16_236 = arith.constant 16 : index
    %c0_237 = arith.constant 0 : index
    %523 = vector.load %arg19[%c16_236, %c0_237] : memref<64x384xf32, #tpu.memory_space<vmem>>, vector<8x384xf32>
    %524 = arith.select %14, %522, %523 : vector<8x384xi1>, vector<8x384xf32>
    %cst_238 = arith.constant dense<0.000000e+00> : vector<8x384xf32>
    %525 = tpu.matmul %515, %332, %cst_238 {dimension_numbers = #tpu.dot_dimension_numbers<[1], [0], [0], [1], [0, 0, 1, 1], [], []>} : vector<8x64xf32>, vector<64x384xf32>, vector<8x384xf32> -> vector<8x384xf32>
    %526 = vector.extract_strided_slice %524 {offsets = [0, 0], sizes = [8, 64], strides = [1, 1]} : vector<8x384xf32> to vector<8x64xf32>
    %527 = vector.extract_strided_slice %525 {offsets = [0, 0], sizes = [8, 64], strides = [1, 1]} : vector<8x384xf32> to vector<8x64xf32>
    %528 = arith.addf %526, %527 : vector<8x64xf32>
    %529 = arith.negf %528 : vector<8x64xf32>
    %530 = math.exp %529 : vector<8x64xf32>
    %cst_239 = arith.constant 1.000000e+00 : f32
    %531 = vector.broadcast %cst_239 : f32 to vector<8x64xf32>
    %532 = arith.addf %531, %530 : vector<8x64xf32>
    %533 = arith.divf %531, %532 : vector<8x64xf32>
    %534 = vector.extract_strided_slice %524 {offsets = [0, 128], sizes = [8, 64], strides = [1, 1]} : vector<8x384xf32> to vector<8x64xf32>
    %535 = vector.extract_strided_slice %525 {offsets = [0, 128], sizes = [8, 64], strides = [1, 1]} : vector<8x384xf32> to vector<8x64xf32>
    %536 = arith.addf %534, %535 : vector<8x64xf32>
    %537 = arith.negf %536 : vector<8x64xf32>
    %538 = math.exp %537 : vector<8x64xf32>
    %cst_240 = arith.constant 1.000000e+00 : f32
    %539 = vector.broadcast %cst_240 : f32 to vector<8x64xf32>
    %540 = arith.addf %539, %538 : vector<8x64xf32>
    %541 = arith.divf %539, %540 : vector<8x64xf32>
    %542 = vector.extract_strided_slice %524 {offsets = [0, 256], sizes = [8, 64], strides = [1, 1]} : vector<8x384xf32> to vector<8x64xf32>
    %543 = vector.extract_strided_slice %525 {offsets = [0, 256], sizes = [8, 64], strides = [1, 1]} : vector<8x384xf32> to vector<8x64xf32>
    %544 = arith.addf %543, %335 : vector<8x64xf32>
    %545 = arith.mulf %533, %544 : vector<8x64xf32>
    %546 = arith.addf %542, %545 : vector<8x64xf32>
    %547 = math.tanh %546 : vector<8x64xf32>
    %cst_241 = arith.constant 1.000000e+00 : f32
    %548 = vector.broadcast %cst_241 : f32 to vector<8x64xf32>
    %549 = arith.subf %548, %541 : vector<8x64xf32>
    %550 = arith.mulf %549, %547 : vector<8x64xf32>
    %551 = arith.mulf %541, %515 : vector<8x64xf32>
    %552 = arith.addf %550, %551 : vector<8x64xf32>
    %c40_242 = arith.constant 40 : index
    %c0_243 = arith.constant 0 : index
    %553 = vector.load %arg18[%c40_242, %c0_243] : memref<64x64xf32, #tpu.memory_space<vmem>>, vector<8x64xf32>
    %554 = arith.select %17, %552, %553 : vector<8x64xi1>, vector<8x64xf32>
    %c40_244 = arith.constant 40 : index
    %c0_245 = arith.constant 0 : index
    %555 = vector.load %arg18[%c40_244, %c0_245] : memref<64x64xf32, #tpu.memory_space<vmem>>, vector<8x64xf32>
    tpu.vector_store %arg18[%c40_244, %c0_245], %554 {strides = array<i32>} : memref<64x64xf32, #tpu.memory_space<vmem>>, vector<8x64xf32>,
    %c16_246 = arith.constant 16 : index
    %c0_247 = arith.constant 0 : index
    %556 = vector.load %arg18[%c16_246, %c0_247] : memref<64x64xf32, #tpu.memory_space<vmem>>, vector<8x64xf32>
    %557 = arith.select %17, %556, %552 : vector<8x64xi1>, vector<8x64xf32>
    %c16_248 = arith.constant 16 : index
    %c0_249 = arith.constant 0 : index
    %558 = vector.load %arg18[%c16_248, %c0_249] : memref<64x64xf32, #tpu.memory_space<vmem>>, vector<8x64xf32>
    tpu.vector_store %arg18[%c16_248, %c0_249], %557 {strides = array<i32>} : memref<64x64xf32, #tpu.memory_space<vmem>>, vector<8x64xf32>,
    %c48_250 = arith.constant 48 : index
    %c0_251 = arith.constant 0 : index
    %559 = vector.load %arg19[%c48_250, %c0_251] : memref<64x384xf32, #tpu.memory_space<vmem>>, vector<8x384xf32>
    %c8_252 = arith.constant 8 : index
    %c0_253 = arith.constant 0 : index
    %560 = vector.load %arg19[%c8_252, %c0_253] : memref<64x384xf32, #tpu.memory_space<vmem>>, vector<8x384xf32>
    %561 = arith.select %14, %559, %560 : vector<8x384xi1>, vector<8x384xf32>
    %cst_254 = arith.constant dense<0.000000e+00> : vector<8x384xf32>
    %562 = tpu.matmul %552, %332, %cst_254 {dimension_numbers = #tpu.dot_dimension_numbers<[1], [0], [0], [1], [0, 0, 1, 1], [], []>} : vector<8x64xf32>, vector<64x384xf32>, vector<8x384xf32> -> vector<8x384xf32>
    %563 = vector.extract_strided_slice %561 {offsets = [0, 0], sizes = [8, 64], strides = [1, 1]} : vector<8x384xf32> to vector<8x64xf32>
    %564 = vector.extract_strided_slice %562 {offsets = [0, 0], sizes = [8, 64], strides = [1, 1]} : vector<8x384xf32> to vector<8x64xf32>
    %565 = arith.addf %563, %564 : vector<8x64xf32>
    %566 = arith.negf %565 : vector<8x64xf32>
    %567 = math.exp %566 : vector<8x64xf32>
    %cst_255 = arith.constant 1.000000e+00 : f32
    %568 = vector.broadcast %cst_255 : f32 to vector<8x64xf32>
    %569 = arith.addf %568, %567 : vector<8x64xf32>
    %570 = arith.divf %568, %569 : vector<8x64xf32>
    %571 = vector.extract_strided_slice %561 {offsets = [0, 128], sizes = [8, 64], strides = [1, 1]} : vector<8x384xf32> to vector<8x64xf32>
    %572 = vector.extract_strided_slice %562 {offsets = [0, 128], sizes = [8, 64], strides = [1, 1]} : vector<8x384xf32> to vector<8x64xf32>
    %573 = arith.addf %571, %572 : vector<8x64xf32>
    %574 = arith.negf %573 : vector<8x64xf32>
    %575 = math.exp %574 : vector<8x64xf32>
    %cst_256 = arith.constant 1.000000e+00 : f32
    %576 = vector.broadcast %cst_256 : f32 to vector<8x64xf32>
    %577 = arith.addf %576, %575 : vector<8x64xf32>
    %578 = arith.divf %576, %577 : vector<8x64xf32>
    %579 = vector.extract_strided_slice %561 {offsets = [0, 256], sizes = [8, 64], strides = [1, 1]} : vector<8x384xf32> to vector<8x64xf32>
    %580 = vector.extract_strided_slice %562 {offsets = [0, 256], sizes = [8, 64], strides = [1, 1]} : vector<8x384xf32> to vector<8x64xf32>
    %581 = arith.addf %580, %335 : vector<8x64xf32>
    %582 = arith.mulf %570, %581 : vector<8x64xf32>
    %583 = arith.addf %579, %582 : vector<8x64xf32>
    %584 = math.tanh %583 : vector<8x64xf32>
    %cst_257 = arith.constant 1.000000e+00 : f32
    %585 = vector.broadcast %cst_257 : f32 to vector<8x64xf32>
    %586 = arith.subf %585, %578 : vector<8x64xf32>
    %587 = arith.mulf %586, %584 : vector<8x64xf32>
    %588 = arith.mulf %578, %552 : vector<8x64xf32>
    %589 = arith.addf %587, %588 : vector<8x64xf32>
    %c48_258 = arith.constant 48 : index
    %c0_259 = arith.constant 0 : index
    %590 = vector.load %arg18[%c48_258, %c0_259] : memref<64x64xf32, #tpu.memory_space<vmem>>, vector<8x64xf32>
    %591 = arith.select %17, %589, %590 : vector<8x64xi1>, vector<8x64xf32>
    %c48_260 = arith.constant 48 : index
    %c0_261 = arith.constant 0 : index
    %592 = vector.load %arg18[%c48_260, %c0_261] : memref<64x64xf32, #tpu.memory_space<vmem>>, vector<8x64xf32>
    tpu.vector_store %arg18[%c48_260, %c0_261], %591 {strides = array<i32>} : memref<64x64xf32, #tpu.memory_space<vmem>>, vector<8x64xf32>,
    %c8_262 = arith.constant 8 : index
    %c0_263 = arith.constant 0 : index
    %593 = vector.load %arg18[%c8_262, %c0_263] : memref<64x64xf32, #tpu.memory_space<vmem>>, vector<8x64xf32>
    %594 = arith.select %17, %593, %589 : vector<8x64xi1>, vector<8x64xf32>
    %c8_264 = arith.constant 8 : index
    %c0_265 = arith.constant 0 : index
    %595 = vector.load %arg18[%c8_264, %c0_265] : memref<64x64xf32, #tpu.memory_space<vmem>>, vector<8x64xf32>
    tpu.vector_store %arg18[%c8_264, %c0_265], %594 {strides = array<i32>} : memref<64x64xf32, #tpu.memory_space<vmem>>, vector<8x64xf32>,
    %c56_266 = arith.constant 56 : index
    %c0_267 = arith.constant 0 : index
    %596 = vector.load %arg19[%c56_266, %c0_267] : memref<64x384xf32, #tpu.memory_space<vmem>>, vector<8x384xf32>
    %c0_268 = arith.constant 0 : index
    %c0_269 = arith.constant 0 : index
    %597 = vector.load %arg19[%c0_268, %c0_269] : memref<64x384xf32, #tpu.memory_space<vmem>>, vector<8x384xf32>
    %598 = arith.select %14, %596, %597 : vector<8x384xi1>, vector<8x384xf32>
    %cst_270 = arith.constant dense<0.000000e+00> : vector<8x384xf32>
    %599 = tpu.matmul %589, %332, %cst_270 {dimension_numbers = #tpu.dot_dimension_numbers<[1], [0], [0], [1], [0, 0, 1, 1], [], []>} : vector<8x64xf32>, vector<64x384xf32>, vector<8x384xf32> -> vector<8x384xf32>
    %600 = vector.extract_strided_slice %598 {offsets = [0, 0], sizes = [8, 64], strides = [1, 1]} : vector<8x384xf32> to vector<8x64xf32>
    %601 = vector.extract_strided_slice %599 {offsets = [0, 0], sizes = [8, 64], strides = [1, 1]} : vector<8x384xf32> to vector<8x64xf32>
    %602 = arith.addf %600, %601 : vector<8x64xf32>
    %603 = arith.negf %602 : vector<8x64xf32>
    %604 = math.exp %603 : vector<8x64xf32>
    %cst_271 = arith.constant 1.000000e+00 : f32
    %605 = vector.broadcast %cst_271 : f32 to vector<8x64xf32>
    %606 = arith.addf %605, %604 : vector<8x64xf32>
    %607 = arith.divf %605, %606 : vector<8x64xf32>
    %608 = vector.extract_strided_slice %598 {offsets = [0, 128], sizes = [8, 64], strides = [1, 1]} : vector<8x384xf32> to vector<8x64xf32>
    %609 = vector.extract_strided_slice %599 {offsets = [0, 128], sizes = [8, 64], strides = [1, 1]} : vector<8x384xf32> to vector<8x64xf32>
    %610 = arith.addf %608, %609 : vector<8x64xf32>
    %611 = arith.negf %610 : vector<8x64xf32>
    %612 = math.exp %611 : vector<8x64xf32>
    %cst_272 = arith.constant 1.000000e+00 : f32
    %613 = vector.broadcast %cst_272 : f32 to vector<8x64xf32>
    %614 = arith.addf %613, %612 : vector<8x64xf32>
    %615 = arith.divf %613, %614 : vector<8x64xf32>
    %616 = vector.extract_strided_slice %598 {offsets = [0, 256], sizes = [8, 64], strides = [1, 1]} : vector<8x384xf32> to vector<8x64xf32>
    %617 = vector.extract_strided_slice %599 {offsets = [0, 256], sizes = [8, 64], strides = [1, 1]} : vector<8x384xf32> to vector<8x64xf32>
    %618 = arith.addf %617, %335 : vector<8x64xf32>
    %619 = arith.mulf %607, %618 : vector<8x64xf32>
    %620 = arith.addf %616, %619 : vector<8x64xf32>
    %621 = math.tanh %620 : vector<8x64xf32>
    %cst_273 = arith.constant 1.000000e+00 : f32
    %622 = vector.broadcast %cst_273 : f32 to vector<8x64xf32>
    %623 = arith.subf %622, %615 : vector<8x64xf32>
    %624 = arith.mulf %623, %621 : vector<8x64xf32>
    %625 = arith.mulf %615, %589 : vector<8x64xf32>
    %626 = arith.addf %624, %625 : vector<8x64xf32>
    %c56_274 = arith.constant 56 : index
    %c0_275 = arith.constant 0 : index
    %627 = vector.load %arg18[%c56_274, %c0_275] : memref<64x64xf32, #tpu.memory_space<vmem>>, vector<8x64xf32>
    %628 = arith.select %17, %626, %627 : vector<8x64xi1>, vector<8x64xf32>
    %c56_276 = arith.constant 56 : index
    %c0_277 = arith.constant 0 : index
    %629 = vector.load %arg18[%c56_276, %c0_277] : memref<64x64xf32, #tpu.memory_space<vmem>>, vector<8x64xf32>
    tpu.vector_store %arg18[%c56_276, %c0_277], %628 {strides = array<i32>} : memref<64x64xf32, #tpu.memory_space<vmem>>, vector<8x64xf32>,
    %c0_278 = arith.constant 0 : index
    %c0_279 = arith.constant 0 : index
    %630 = vector.load %arg18[%c0_278, %c0_279] : memref<64x64xf32, #tpu.memory_space<vmem>>, vector<8x64xf32>
    %631 = arith.select %17, %630, %626 : vector<8x64xi1>, vector<8x64xf32>
    %c0_280 = arith.constant 0 : index
    %c0_281 = arith.constant 0 : index
    %632 = vector.load %arg18[%c0_280, %c0_281] : memref<64x64xf32, #tpu.memory_space<vmem>>, vector<8x64xf32>
    tpu.vector_store %arg18[%c0_280, %c0_281], %631 {strides = array<i32>} : memref<64x64xf32, #tpu.memory_space<vmem>>, vector<8x64xf32>,
    %c0_282 = arith.constant 0 : index
    %c0_283 = arith.constant 0 : index
    %633 = vector.load %arg18[%c0_282, %c0_283] : memref<64x64xf32, #tpu.memory_space<vmem>>, vector<64x64xf32>
    %cst_284 = arith.constant dense<0.000000e+00> : vector<64xf32>
    %634 = vector.multi_reduction <add>, %633, %cst_284 [1] : vector<64x64xf32> to vector<64xf32>
    %635 = vector.shape_cast %634 : vector<64xf32> to vector<64x1xf32>
    %cst_285 = arith.constant 6.400000e+01 : f32
    %636 = vector.broadcast %cst_285 : f32 to vector<64x1xf32>
    %637 = arith.divf %635, %636 : vector<64x1xf32>
    %638 = vector.broadcast %637 : vector<64x1xf32> to vector<64x64xf32>
    %639 = arith.subf %633, %638 : vector<64x64xf32>
    %640 = arith.mulf %639, %639 : vector<64x64xf32>
    %cst_286 = arith.constant dense<0.000000e+00> : vector<64xf32>
    %641 = vector.multi_reduction <add>, %640, %cst_286 [1] : vector<64x64xf32> to vector<64xf32>
    %642 = vector.shape_cast %641 : vector<64xf32> to vector<64x1xf32>
    %cst_287 = arith.constant 6.400000e+01 : f32
    %643 = vector.broadcast %cst_287 : f32 to vector<64x1xf32>
    %644 = arith.divf %642, %643 : vector<64x1xf32>
    %cst_288 = arith.constant 9.99999974E-6 : f32
    %645 = vector.broadcast %cst_288 : f32 to vector<64x1xf32>
    %646 = arith.addf %644, %645 : vector<64x1xf32>
    %647 = math.rsqrt %646 : vector<64x1xf32>
    %648 = vector.broadcast %647 : vector<64x1xf32> to vector<64x64xf32>
    %649 = arith.mulf %639, %648 : vector<64x64xf32>
    %c0_289 = arith.constant 0 : index
    %c0_290 = arith.constant 0 : index
    %650 = vector.load %arg11[%c0_289, %c0_290] : memref<1x64xf32, #tpu.memory_space<vmem>>, vector<1x64xf32>
    %651 = vector.broadcast %650 : vector<1x64xf32> to vector<64x64xf32>
    %652 = arith.mulf %649, %651 : vector<64x64xf32>
    %c0_291 = arith.constant 0 : index
    %c0_292 = arith.constant 0 : index
    %653 = vector.load %arg12[%c0_291, %c0_292] : memref<1x64xf32, #tpu.memory_space<vmem>>, vector<1x64xf32>
    %654 = vector.broadcast %653 : vector<1x64xf32> to vector<64x64xf32>
    %655 = arith.addf %652, %654 : vector<64x64xf32>
    %c0_293 = arith.constant 0 : index
    %c0_294 = arith.constant 0 : index
    %656 = vector.load %arg13[%c0_293, %c0_294] : memref<64x32xf32, #tpu.memory_space<vmem>>, vector<64x32xf32>
    %cst_295 = arith.constant dense<0.000000e+00> : vector<64x32xf32>
    %657 = tpu.matmul %655, %656, %cst_295 {dimension_numbers = #tpu.dot_dimension_numbers<[1], [0], [0], [1], [0, 0, 1, 1], [], []>} : vector<64x64xf32>, vector<64x32xf32>, vector<64x32xf32> -> vector<64x32xf32>
    %c0_296 = arith.constant 0 : index
    %c0_297 = arith.constant 0 : index
    %658 = vector.load %arg14[%c0_296, %c0_297] : memref<1x32xf32, #tpu.memory_space<vmem>>, vector<1x32xf32>
    %659 = vector.broadcast %658 : vector<1x32xf32> to vector<64x32xf32>
    %660 = arith.addf %657, %659 : vector<64x32xf32>
    %c0_298 = arith.constant 0 : index
    %c0_299 = arith.constant 0 : index
    %661 = vector.load %arg15[%c0_298, %c0_299] : memref<32x128xf32, #tpu.memory_space<vmem>>, vector<32x128xf32>
    %cst_300 = arith.constant dense<0.000000e+00> : vector<64x128xf32>
    %662 = tpu.matmul %660, %661, %cst_300 {dimension_numbers = #tpu.dot_dimension_numbers<[1], [0], [0], [1], [0, 0, 1, 1], [], []>} : vector<64x32xf32>, vector<32x128xf32>, vector<64x128xf32> -> vector<64x128xf32>
    %c0_301 = arith.constant 0 : index
    %c0_302 = arith.constant 0 : index
    %663 = vector.load %arg16[%c0_301, %c0_302] : memref<1x128xf32, #tpu.memory_space<vmem>>, vector<1x128xf32>
    %664 = vector.broadcast %663 : vector<1x128xf32> to vector<64x128xf32>
    %665 = arith.addf %662, %664 : vector<64x128xf32>
    %c0_303 = arith.constant 0 : index
    %c0_304 = arith.constant 0 : index
    %666 = vector.load %arg17[%c0_303, %c0_304] : memref<64x128xf32, #tpu.memory_space<vmem>>, vector<64x128xf32>
    tpu.vector_store %arg17[%c0_303, %c0_304], %665 {strides = array<i32>} : memref<64x128xf32, #tpu.memory_space<vmem>>, vector<64x128xf32>,
    return
  }
  func.func @transform_0(%arg0: i32) -> (i32, i32) {
    %c0_i32 = arith.constant 0 : i32
    %c0_i32_0 = arith.constant 0 : i32
    %c0_i32_1 = arith.constant 0 : i32
    return %c0_i32, %c0_i32_0 : i32, i32
  }
  func.func @transform_1(%arg0: i32) -> (i32, i32) {
    %c0_i32 = arith.constant 0 : i32
    %c0_i32_0 = arith.constant 0 : i32
    %c0_i32_1 = arith.constant 0 : i32
    return %c0_i32, %c0_i32_0 : i32, i32
  }
  func.func @transform_2(%arg0: i32) -> (i32, i32) {
    %c0_i32 = arith.constant 0 : i32
    %c0_i32_0 = arith.constant 0 : i32
    %c0_i32_1 = arith.constant 0 : i32
    return %c0_i32, %c0_i32_0 : i32, i32
  }
  func.func @transform_3(%arg0: i32) -> (i32, i32) {
    %c0_i32 = arith.constant 0 : i32
    %c0_i32_0 = arith.constant 0 : i32
    %c0_i32_1 = arith.constant 0 : i32
    return %c0_i32, %c0_i32_0 : i32, i32
  }
  func.func @transform_4(%arg0: i32) -> (i32, i32) {
    %c0_i32 = arith.constant 0 : i32
    %c0_i32_0 = arith.constant 0 : i32
    %c0_i32_1 = arith.constant 0 : i32
    return %c0_i32, %c0_i32_0 : i32, i32
  }
  func.func @transform_5(%arg0: i32) -> (i32, i32) {
    %c0_i32 = arith.constant 0 : i32
    %c0_i32_0 = arith.constant 0 : i32
    %c0_i32_1 = arith.constant 0 : i32
    return %c0_i32, %c0_i32_0 : i32, i32
  }
  func.func @transform_6(%arg0: i32) -> (i32, i32) {
    %c0_i32 = arith.constant 0 : i32
    %c0_i32_0 = arith.constant 0 : i32
    %c0_i32_1 = arith.constant 0 : i32
    return %c0_i32, %c0_i32_0 : i32, i32
  }
  func.func @transform_7(%arg0: i32) -> (i32, i32) {
    %c0_i32 = arith.constant 0 : i32
    %c0_i32_0 = arith.constant 0 : i32
    %c0_i32_1 = arith.constant 0 : i32
    return %c0_i32, %c0_i32_0 : i32, i32
  }
  func.func @transform_8(%arg0: i32) -> (i32, i32) {
    %c0_i32 = arith.constant 0 : i32
    %c0_i32_0 = arith.constant 0 : i32
    %c0_i32_1 = arith.constant 0 : i32
    return %c0_i32, %c0_i32_0 : i32, i32
  }
  func.func @transform_9(%arg0: i32) -> (i32, i32) {
    %c0_i32 = arith.constant 0 : i32
    %c0_i32_0 = arith.constant 0 : i32
    %c0_i32_1 = arith.constant 0 : i32
    return %c0_i32, %c0_i32_0 : i32, i32
  }
  func.func @transform_10(%arg0: i32) -> (i32, i32) {
    %c0_i32 = arith.constant 0 : i32
    %c0_i32_0 = arith.constant 0 : i32
    %c0_i32_1 = arith.constant 0 : i32
    return %c0_i32, %c0_i32_0 : i32, i32
  }
  func.func @transform_11(%arg0: i32) -> (i32, i32) {
    %c0_i32 = arith.constant 0 : i32
    %c0_i32_0 = arith.constant 0 : i32
    %c0_i32_1 = arith.constant 0 : i32
    return %c0_i32, %c0_i32_0 : i32, i32
  }
  func.func @transform_12(%arg0: i32) -> (i32, i32) {
    %c0_i32 = arith.constant 0 : i32
    %c0_i32_0 = arith.constant 0 : i32
    %c0_i32_1 = arith.constant 0 : i32
    return %c0_i32, %c0_i32_0 : i32, i32
  }
  func.func @transform_13(%arg0: i32) -> (i32, i32) {
    %c0_i32 = arith.constant 0 : i32
    %c0_i32_0 = arith.constant 0 : i32
    %c0_i32_1 = arith.constant 0 : i32
    return %c0_i32, %c0_i32_0 : i32, i32
  }
  func.func @transform_14(%arg0: i32) -> (i32, i32) {
    %c0_i32 = arith.constant 0 : i32
    %c0_i32_0 = arith.constant 0 : i32
    %c0_i32_1 = arith.constant 0 : i32
    return %c0_i32, %c0_i32_0 : i32, i32
  }
  func.func @transform_15(%arg0: i32) -> (i32, i32) {
    %c0_i32 = arith.constant 0 : i32
    %c0_i32_0 = arith.constant 0 : i32
    %c0_i32_1 = arith.constant 0 : i32
    return %c0_i32, %c0_i32_0 : i32, i32
  }
  func.func @transform_16(%arg0: i32) -> (i32, i32) {
    %c0_i32 = arith.constant 0 : i32
    %c0_i32_0 = arith.constant 0 : i32
    %c0_i32_1 = arith.constant 0 : i32
    return %c0_i32, %c0_i32_0 : i32, i32
  }
}

</mosaic_0001>

<bundles_post_ra>
// kernel: tpu_custom_call.1
= control target key start
LH: loop header
LB: loop body
LE: loop exit
PB: predicated region body
PF: predicated region fallthrough
CT: control target
= control target key end

     0   :  { %s7416_s0 = inlined_call_operand.vmem [shape: s32[64,1], index: 0, kind: input, shape index: {}]   ;;  %s7417_s1 = inlined_call_operand.vmem [shape: f32[56,32], index: 1, kind: input, shape index: {}]   ;;  %s7418_s2 = inlined_call_operand.hbm [shape: f32[32,384], index: 2, kind: input, shape index: {}]   ;;  %s7419_s3 = inlined_call_operand.vmem [shape: f32[64,384], index: 3, kind: input, shape index: {}]   ;;  %s7420_s4 = inlined_call_operand.hbm [shape: f32[1,384], index: 4, kind: input, shape index: {}]   ;;  %s7421_s5 = inlined_call_operand.hbm [shape: f32[1,64], index: 5, kind: input, shape index: {}]   ;;  %s7422_s6 = inlined_call_operand.hbm [shape: f32[64,384], index: 6, kind: input, shape index: {}]   ;;  %s7423_s7 = inlined_call_operand.hbm [shape: f32[64,384], index: 7, kind: input, shape index: {}]   ;;  %s7424_s8 = inlined_call_operand.vmem [shape: f32[1,384], index: 8, kind: input, shape index: {}]   ;;  %s7425_s9 = inlined_call_operand.vmem [shape: f32[1,64], index: 9, kind: input, shape index: {}]   ;;  %s7426_s10 = inlined_call_operand.vmem [shape: f32[1,64], index: 10, kind: input, shape index: {}]   ;;  %s7427_s11 = inlined_call_operand.vmem [shape: f32[1,64], index: 11, kind: input, shape index: {}]   ;;  %s7428_s12 = inlined_call_operand.vmem [shape: f32[64,32], index: 12, kind: input, shape index: {}]   ;;  %s7429_s13 = inlined_call_operand.vmem [shape: f32[1,32], index: 13, kind: input, shape index: {}]   ;;  %s7430_s14 = inlined_call_operand.vmem [shape: f32[32,128], index: 14, kind: input, shape index: {}]   ;;  %s7431_s15 = inlined_call_operand.vmem [shape: f32[1,128], index: 15, kind: input, shape index: {}]   ;;  %s7432_s16 = inlined_call_operand.hbm [shape: f32[64,128], index: 16, kind: output, shape index: {}]  }
   0x1   :  { %7454 = sst [smem:[#allocation28_spill]] %s7416_s0 }
   0x2   :  { %21 = vsyncpa [#allocation5], 0 }
   0x3   :  { %22 = vsyncpa [#allocation8], 0 }
   0x4   :  { %23 = vsyncpa [#allocation11], 0 }
   0x5   :  { %24 = vsyncpa [#allocation6], 0  ;;  %s5489_s21 = smov [#allocation7]  }
   0x6   :  { %s49_s22 = sshll.u32 %s5489_s21, 4  ;;  %s50_s22 = int_to_ptr.vmem [resolvable:$true] %s49_s22 }
   0x7   :  { %s5369_s23 = scalar_lea.vmem %s50_s22, 48  ;;  %s5373_s24 = scalar_lea.vmem %s50_s22, 64 }
   0x8   :  { %p5370_p0 = scmp.ne.s32.totalorder %s50_s22, %s5369_s23  ;;  %p5374_p1 = scmp.lt.s32.totalorder %s50_s22, %s50_s22 }
   0x9   :  { %p5375_p2 = scmp.lt.s32.totalorder %s5373_s24, %s5369_s23 }
   0xb   :  { %p5376_p3 = por %p5375_p2, %p5374_p1 }
   0xd   :  { %p5377_p4 = pnand %p5376_p3, %p5370_p0 }
   0xf   :  { %5380 = shalt.err (!%p5377_p4)
}
  0x10   :  { %52 = dma.hbm_to_vmem [thread:$0]  %s7420_s4, 48, %s50_s22, [#allocation8]  }
  0x11   :  { %s5490_s27 = smov [#allocation10]   ;;  %s5491_s29 = smov [#allocation4]  }
  0x12   :  { %s68_s28 = sshll.u32 %s5490_s27, 4  ;;  %s34_s30 = sshll.u32 %s5491_s29, 4  ;;  %s69_s28 = int_to_ptr.vmem [resolvable:$true] %s68_s28  ;;  %s35_s30 = int_to_ptr.vmem [resolvable:$true] %s34_s30 }
  0x13   :  { %s5389_s0 = scalar_lea.vmem %s69_s28, 3072  ;;  %p5394_p6 = scmp.lt.s32.totalorder %s69_s28, %s69_s28 }
  0x14   :  { %p5390_p5 = scmp.ne.s32.totalorder %s69_s28, %s5389_s0  ;;  %p5395_p7 = scmp.lt.s32.totalorder %s5389_s0, %s5389_s0 }
  0x16   :  { %p5396_p8 = por %p5395_p7, %p5394_p6 }
  0x18   :  { %p5397_p9 = pnand %p5396_p8, %p5390_p5 }
  0x1a   :  { %5400 = shalt.err (!%p5397_p9)
}
  0x1b   :  { %s5492_s17 = smov 384   ;;  %s5493_s18 = smov 24  }
  0x1c   :  { %74 = dma.hbm_to_vmem [thread:$0]  %s7422_s6, 3072, %s69_s28, [#allocation11], %s5492_s17, %s5492_s17, %s5493_s18  }
  0x1d   :  { %s5409_s4 = scalar_lea.vmem %s35_s30, 1536  ;;  %p5414_p11 = scmp.lt.s32.totalorder %s35_s30, %s35_s30 }
  0x1e   :  { %p5410_p10 = scmp.ne.s32.totalorder %s35_s30, %s5409_s4  ;;  %p5415_p12 = scmp.lt.s32.totalorder %s5409_s4, %s5409_s4 }
  0x20   :  { %p5416_p13 = por %p5415_p12, %p5414_p11 }
  0x22   :  { %p5417_p0 = pnand %p5416_p13, %p5410_p10 }
  0x24   :  { %5420 = shalt.err (!%p5417_p0)
}
  0x25   :  { %40 = dma.hbm_to_vmem [thread:$0]  %s7418_s2, 1536, %s35_s30, [#allocation5], %s5492_s17, %s5492_s17, %s5493_s18  }
  0x26   :  { %s5494_s23 = smov [#allocation9]   ;;  %s5495_s25 = smov [#allocation12]  }
  0x27   :  { %s59_s24 = sshll.u32 %s5494_s23, 4  ;;  %s80_s6 = sshll.u32 %s5495_s25, 4  ;;  %s60_s24 = int_to_ptr.vmem [resolvable:$true] %s59_s24  ;;  %s81_s6 = int_to_ptr.vmem [resolvable:$true] %s80_s6 }
  0x28   :  { %s5429_s26 = scalar_lea.vmem %s60_s24, 16  ;;  %s5433_s27 = scalar_lea.vmem %s60_s24, 32 }
  0x29   :  { %p5430_p1 = scmp.ne.s32.totalorder %s60_s24, %s5429_s26  ;;  %p5434_p2 = scmp.lt.s32.totalorder %s60_s24, %s60_s24 }
  0x2a   :  { %p5435_p3 = scmp.lt.s32.totalorder %s5433_s27, %s5429_s26 }
  0x2c   :  { %p5436_p4 = por %p5435_p3, %p5434_p2 }
  0x2e   :  { %p5437_p5 = pnand %p5436_p4, %p5430_p1 }
  0x30   :  { %5440 = shalt.err (!%p5437_p5)
}
  0x31   :  { %62 = dma.hbm_to_vmem [thread:$0]  %s7421_s5, 16, %s60_s24, [#allocation8]  }
  0x32   :  { %s5449_s0 = scalar_lea.vmem %s81_s6, 3072  ;;  %p5454_p7 = scmp.lt.s32.totalorder %s81_s6, %s81_s6 }
  0x33   :  { %p5450_p6 = scmp.ne.s32.totalorder %s81_s6, %s5449_s0  ;;  %p5455_p8 = scmp.lt.s32.totalorder %s5449_s0, %s5449_s0 }
  0x35   :  { %p5456_p9 = por %p5455_p8, %p5454_p7 }
  0x37   :  { %p5457_p10 = pnand %p5456_p9, %p5450_p6 }
  0x39   :  { %5460 = shalt.err (!%p5457_p10)
}
  0x3a   :  { %86 = dma.hbm_to_vmem [thread:$0]  %s7423_s7, 3072, %s81_s6, [#allocation11], %s5492_s17, %s5492_s17, %s5493_s18  }
  0x3b   :  { %5481 = dma.done.wait [#allocation5], 1536  }
  0x3c   :  { %5482 = vsyncadd [#allocation5], 4294965760 }
  0x3d   :  { %5483 = dma.done.wait [#allocation8], 64  }
  0x3e   :  { %5484 = vsyncadd [#allocation8], 4294967232 }
  0x3f   :  { %5485 = dma.done.wait [#allocation11], 6144  }
  0x40   :  { %5486 = vsyncadd [#allocation11], 4294961152  ;;  %v5496_v0 = vmov 0   ;;  %v7437_v1 = vmov 0.0   ;;  %s7455_s20 = sld [smem:[#allocation28_spill]]  ;;  %v191_v6 = vld [vmem:[%s7417_s1 + $0x30] sm:$0xff]  ;;  %v135_v24 = vlaneseq }
  0x41   :  { %5136 = vset.pattern.permute.xlu1 %v5496_v0  ;;  %5135 = vset.pattern.permute.xlu0 %v5496_v0  ;;  %v190_v7 = vld [vmem:[%s7417_s1 + $0x28] sm:$0xff]  ;;  %v189_v8 = vld [vmem:[%s7417_s1 + $0x20] sm:$0xff]  ;;  %v188_v11 = vld [vmem:[%s7417_s1 + $0x18] sm:$0xff]  ;;  %vm192_vm0 = vcmask 457728   ;;  %vm360_vm9 = vcmask 261120   ;;  %vm5498_vm10 = vmmov 0  }
  0x42   :  { %449 = vmatprep.mubr.f32.mxu1 %v7437_v1  ;;  %4696 = vmatprep.subr.mxu0 %v191_v6  ;;  %v187_v14 = vld [vmem:[%s7417_s1 + $0x10] sm:$0xff]  ;;  %v186_v15 = vld [vmem:[%s7417_s1 + $0x8] sm:$0xff]  ;;  %v185_v16 = vld [vmem:[%s7417_s1] sm:$0xff]  ;;  %v5658_v25 = vand.u32 127, %v135_v24  ;;  %vm118_vm11 = vcmask 523264   ;;  %s5499_s18 = smov [#allocation13]  }
  0x43   :  { %4697 = vmatpush3.msra.mxu0 %v191_v6  ;;  %v341_v17 = vld [vmem:[#allocation4 + $0x50] sm:$0xff]  ;;  %v340_v18 = vld [vmem:[#allocation4 + $0x48] sm:$0xff]  ;;  %v338_v19 = vld [vmem:[#allocation4 + $0x38] sm:$0xff]  ;;  %119 = vst.msk [vmem:[#allocation2] sm:$0xff] %vm118_vm11, %v7437_v1  ;;  %s4337_s22 = sshll.u32 %s5499_s18, 4  ;;  %s4338_s22 = int_to_ptr.vmem [resolvable:$true] %s4337_s22 }
  0x44   :  { %4698 = vmatprep.subr.mxu0 %v190_v7  ;;  %409 = vmatprep.subr.mxu1 %v341_v17  ;;  %v337_v20 = vld [vmem:[#allocation4 + $0x30] sm:$0xff]  ;;  %v342_v21 = vld [vmem:[#allocation4 + $0x58] sm:$0xff]  ;;  %v335_v22 = vld [vmem:[#allocation4 + $0x20] sm:$0xff]  ;;  %126 = vst.msk [vmem:[#allocation2 + $0x38] sm:$0xff] %vm118_vm11, %v7437_v1  ;;  %vm327_vm13 = vcmp.lt.s32.totalorder %v5658_v25, 32  ;;  %p5466_p12 = scmp.lt.s32.totalorder %s4338_s22, %s4338_s22 }
  0x45   :  { %4699 = vmatpush3.msra.mxu0 %v190_v7  ;;  %410 = vmatpush1.msra.mxu1 %v340_v18  ;;  %v334_v23 = vld [vmem:[#allocation4 + $0x18] sm:$0xff]  ;;  %v339_v33 = vld [vmem:[#allocation4 + $0x40] sm:$0xff]  ;;  %v336_v43 = vld [vmem:[#allocation4 + $0x28] sm:$0xff]  ;;  %120 = vst.msk [vmem:[#allocation2 + $0x8] sm:$0xff] %vm118_vm11, %v7437_v1 }
  0x46   :  { %v129_v2 = vld [vmem:[%s7455_s20 + $0x10] sm:$0xff]  ;;  %v127_v3 = vld [vmem:[%s7455_s20] sm:$0xff]  ;;  %v130_v4 = vld [vmem:[%s7455_s20 + $0x18] sm:$0xff]  ;;  %4700 = vmatprep.subr.mxu0 %v189_v8  ;;  %411 = vmatprep.subr.mxu1 %v338_v19  ;;  %121 = vst.msk [vmem:[#allocation2 + $0x10] sm:$0xff] %vm118_vm11, %v7437_v1 }
  0x47   :  { %144 = vperm.xlu1 %5136, %v129_v2   ;;  %138 = vperm.xlu0 %5135, %v127_v3   ;;  %v128_v5 = vld [vmem:[%s7455_s20 + $0x8] sm:$0xff]  ;;  %v131_v10 = vld [vmem:[%s7455_s20 + $0x20] sm:$0xff]  ;;  %v134_v12 = vld [vmem:[%s7455_s20 + $0x38] sm:$0xff]  ;;  %122 = vst.msk [vmem:[#allocation2 + $0x18] sm:$0xff] %vm118_vm11, %v7437_v1 }
  0x48   :  { %v132_v9 = vld [vmem:[%s7455_s20 + $0x28] sm:$0xff]  ;;  %v133_v13 = vld [vmem:[%s7455_s20 + $0x30] sm:$0xff]  ;;  %4701 = vmatpush3.msra.mxu0 %v189_v8  ;;  %412 = vmatpush1.msra.mxu1 %v337_v20  ;;  %v331_v45 = vld [vmem:[#allocation4] sm:$0xff]  ;;  %123 = vst.msk [vmem:[#allocation2 + $0x20] sm:$0xff] %vm118_vm11, %v7437_v1 }
  0x49   :  { %4702 = vmatprep.subr.mxu0 %v188_v11  ;;  %413 = vmatprep.subr.mxu1 %v335_v22  ;;  %v332_v44 = vld [vmem:[#allocation4 + $0x8] sm:$0xff]  ;;  %v333_v46 = vld [vmem:[#allocation4 + $0x10] sm:$0xff]  ;;  %v5699_v51 = vld [vmem:[%s7419_s3 + $0x98] sm:$0xff]  ;;  %124 = vst.msk [vmem:[#allocation2 + $0x28] sm:$0xff] %vm118_vm11, %v7437_v1 }
  0x4a   :  { %4703 = vmatpush3.msra.mxu0 %v188_v11  ;;  %414 = vmatpush1.msra.mxu1 %v334_v23  ;;  %v5687_v47 = vld [vmem:[%s7419_s3 + $0xb0] sm:$0xff]  ;;  %v5694_v49 = vld [vmem:[%s7419_s3 + $0xa8] sm:$0xff]  ;;  %v5711_v53 = vld [vmem:[%s7419_s3 + $0xb8] sm:$0xff]  ;;  %125 = vst.msk [vmem:[#allocation2 + $0x30] sm:$0xff] %vm118_vm11, %v7437_v1 }
  0x4b   :  { %147 = vperm.xlu1 %5136, %v130_v4   ;;  %141 = vperm.xlu0 %5135, %v128_v5   ;;  %v5706_v52 = vld [vmem:[%s7419_s3 + $0x90] sm:$0xff]  ;;  %v5721_v56 = vld [vmem:[%s7419_s3 + $0x80] sm:$0xff]  ;;  %v5729_v57 = vld [vmem:[%s7419_s3 + $0x78] sm:$0xff] }
  0x4c   :  { %4704 = vmatprep.subr.mxu0 %v187_v14  ;;  %415 = vmatprep.subr.mxu1 %v332_v44  ;;  %v5734_v58 = vld [vmem:[%s7419_s3 + $0xa0] sm:$0xff]  ;;  %v5744_v61 = vld [vmem:[%s7419_s3 + $0x68] sm:$0xff]  ;;  %v5767_v3 = vld [vmem:[%s7419_s3 + $0x50] sm:$0xff]  ;;  %v322_v44 = vadd.s32 128, %v5658_v25 }
  0x4d   :  { %4705 = vmatpush3.msra.mxu0 %v187_v14  ;;  %416 = vmatpush1.msra.mxu1 %v331_v45  ;;  %v5752_v62 = vld [vmem:[%s7419_s3 + $0x60] sm:$0xff]  ;;  %v5757_v63 = vld [vmem:[%s7419_s3 + $0x88] sm:$0xff]  ;;  %v5780_v5 = vld [vmem:[%s7419_s3 + $0x70] sm:$0xff] }
  0x4e   :  { %4706 = vmatprep.subr.mxu0 %v186_v15  ;;  %686 = vmatprep.subr.mxu1 %v5687_v47  ;;  %v5775_v4 = vld [vmem:[%s7419_s3 + $0x48] sm:$0xff]  ;;  %v5787_v6 = vld [vmem:[%s7419_s3 + $0x38] sm:$0xff]  ;;  %v5793_v7 = vld [vmem:[%s7419_s3 + $0x30] sm:$0xff] }
  0x4f   :  { %153 = vperm.xlu1 %5136, %v132_v9   ;;  %150 = vperm.xlu0 %5135, %v131_v10   ;;  %v5800_v8 = vld [vmem:[%s7419_s3 + $0x20] sm:$0xff]  ;;  %v5808_v9 = vld [vmem:[%s7419_s3 + $0x18] sm:$0xff]  ;;  %v5820_v11 = vld [vmem:[%s7419_s3 + $0x8] sm:$0xff] }
  0x50   :  { %4707 = vmatpush3.msra.mxu0 %v186_v15  ;;  %v5813_v10 = vld [vmem:[%s7419_s3 + $0x58] sm:$0xff]  ;;  %v5844_v14 = vld [vmem:[%s7419_s3 + $0x28] sm:$0xff]  ;;  %v5855_v15 = vld [vmem:[%s7419_s3 + $0x10] sm:$0xff] }
  0x51   :  { %4708 = vmatprep.subr.mxu0 %v185_v16  ;;  %v343_v18 = vld [vmem:[#allocation7] sm:$0x7] }
  0x52   :  { %4709 = vmatpush3.msra.mxu0 %v185_v16  ;;  %v5918_v16 = vshrl.u32 %v135_v24, 7 }
  0x53   :  { %159 = vperm.xlu1 %5136, %v134_v12   ;;  %156 = vperm.xlu0 %5135, %v133_v13   ;;  %v5826_v12 = vld [vmem:[%s7419_s3] sm:$0xff] }
  0x54   :  { %4722 = vmatprep.subr.mxu0 %v342_v21  ;;  %v5836_v13 = vld [vmem:[%s7419_s3 + $0x40] sm:$0xff]  ;;  %7456 = vst [vmem:[#allocation18_spill] sm:$0xff] %v5918_v16  ;;  %v7436_v17 = vsub.s32 2, %v5918_v16  ;;  %v7435_v20 = vsub.s32 0, %v5918_v16  ;;  %v7434_v23 = vsub.s32 1, %v5918_v16 }
  0x56   :  { %v356_v19 = vrot.slane %v343_v18, %v7436_v17  ;;  %v5934_v24 = vrot.slane %v343_v18, %v7435_v20 }
  0xc2   :  { %v145_v26 = vpop.permute.xlu1 %144  ;;  %v139_v27 = vpop.permute.xlu0 %138 }
  0xc3   :  { %vm161_vm1 = vcmp.eq.s32.totalorder %v139_v27, %v5658_v25  ;;  %vm163_vm2 = vcmp.eq.s32.totalorder %v145_v26, %v5658_v25  ;;  %v323_v26 = vadd.s32 256, %v5658_v25 }
  0xc4   :  { %v4351_v28 = vsel %vm161_vm1, 1.0, %v7437_v1  ;;  %v4353_v31 = vsel %vm163_vm2, 1.0, %v7437_v1 }
  0xc5   :  { %4710 = vmatprep.mubr.msk.f32.mxu0 %vm192_vm0, %v4351_v28 }
  0xc6   :  { %v148_v29 = vpop.permute.xlu1 %147  ;;  %v142_v30 = vpop.permute.xlu0 %141 }
  0xc7   :  { %vm164_vm3 = vcmp.eq.s32.totalorder %v148_v29, %v5658_v25  ;;  %vm162_vm4 = vcmp.eq.s32.totalorder %v142_v30, %v5658_v25 }
  0xc8   :  { %v4352_v32 = vsel %vm162_vm4, 1.0, %v7437_v1  ;;  %v4354_v34 = vsel %vm164_vm3, 1.0, %v7437_v1 }
  0xc9   :  { %4711 = vmatmul.mubr.msk.f32.vlgmr.msra.gmra.mxu0 %vm192_vm0, %v4352_v32 }
  0xca   :  { %v154_v35 = vpop.permute.xlu1 %153  ;;  %v151_v36 = vpop.permute.xlu0 %150  ;;  %4713 = vmatprep.mubr.msk.f32.mxu0 %vm192_vm0, %v4353_v31  ;;  %4723 = vmatpush3.msra.mxu0 %v342_v21  ;;  %v5938_v31 = vrot.slane %v343_v18, %v7434_v23  ;;  %v325_v18 = vand.u32 127, %v322_v44 }
  0xcb   :  { %vm165_vm5 = vcmp.eq.s32.totalorder %v151_v36, %v5658_v25  ;;  %4724 = vmatprep.subr.mxu0 %v339_v33  ;;  %vm166_vm6 = vcmp.eq.s32.totalorder %v154_v35, %v5658_v25 }
  0xcc   :  { %v4355_v37 = vsel %vm165_vm5, 1.0, %v7437_v1  ;;  %4725 = vmatpush3.msra.mxu0 %v339_v33  ;;  %v4356_v40 = vsel %vm166_vm6, 1.0, %v7437_v1  ;;  %vm6001_vm14 = vcmp.lt.s32.totalorder %v325_v18, 32 }
  0xcd   :  { %4714 = vmatmul.mubr.msk.f32.gmra.mxu0 %vm192_vm0, %v4354_v34  ;;  %4726 = vmatprep.subr.mxu0 %v336_v43  ;;  %v326_v34 = vand.u32 127, %v323_v26 }
  0xce   :  { %v160_v38 = vpop.permute.xlu1 %159  ;;  %4716 = vmatprep.mubr.msk.f32.mxu0 %vm192_vm0, %v4355_v37  ;;  %v157_v39 = vpop.permute.xlu0 %156  ;;  %4727 = vmatpush3.msra.mxu0 %v336_v43 }
  0xcf   :  { %vm167_vm7 = vcmp.eq.s32.totalorder %v157_v39, %v5658_v25  ;;  %vm168_vm8 = vcmp.eq.s32.totalorder %v160_v38, %v5658_v25  ;;  %4728 = vmatprep.subr.mxu0 %v333_v46  ;;  %vm5949_vm12 = vcmp.lt.s32.totalorder %v326_v34, 32 }
  0xd0   :  { %v4357_v41 = vsel %vm167_vm7, 1.0, %v7437_v1  ;;  %v4358_v42 = vsel %vm168_vm8, 1.0, %v7437_v1  ;;  %4729 = vmatpush3.msra.mxu0 %v333_v46 }
  0xd1   :  { %4717 = vmatmul.mubr.msk.f32.gmra.mxu0 %vm192_vm0, %v4356_v40  ;;  %4742 = vmatprep.subr.mxu0 %v7437_v1 }
  0xd2   :  { %4719 = vmatprep.mubr.msk.f32.mxu0 %vm192_vm0, %v4357_v41 }
  0xd5   :  { %4720 = vmatmul.mubr.msk.f32.gmra.mxu0 %vm192_vm0, %v4358_v42 }
 0x189   :  { %v4712_v48 = vpop.f32.mrf.mxu0 }
 0x18b   :  { %v283_v50 = vpop.f32.mrf.mxu0 }
 0x18c   :  { %4367 = vmatmul.mubr.msk.f32.vlgmr.msra.gmra.mxu1 %vm360_vm9, %v283_v50  ;;  %4730 = vmatprep.mubr.msk.f32.mxu0 %vm360_vm9, %v283_v50 }
 0x18d   :  { %687 = vmatpush1.msra.mxu1 %v5694_v49  ;;  %v4715_v54 = vpop.f32.mrf.mxu0  ;;  %4731 = vmatmul.mubr.msk.f32.vlgmr.msra.gmra.mxu0 %vm360_vm9, %v4712_v48 }
 0x18e   :  { %455 = vmatprep.mubr.f32.mxu1 %v7437_v1  ;;  %688 = vmatprep.subr.mxu1 %v5699_v51 }
 0x18f   :  { %v293_v55 = vpop.f32.mrf.mxu0  ;;  %689 = vmatpush1.msra.mxu1 %v5706_v52  ;;  %4743 = vmatpush3.msra.mxu0 %v5711_v53 }
 0x190   :  { %4368 = vmatmul.mubr.msk.f32.gmra.mxu1 %vm360_vm9, %v4712_v48  ;;  %4733 = vmatprep.mubr.msk.f32.mxu0 %vm360_vm9, %v293_v55 }
 0x191   :  { %v4718_v59 = vpop.f32.mrf.mxu0  ;;  %4734 = vmatmul.mubr.msk.f32.gmra.mxu0 %vm360_vm9, %v4715_v54  ;;  %461 = vmatprep.mubr.f32.mxu1 %v7437_v1 }
 0x192   :  { %690 = vmatprep.subr.mxu1 %v5721_v56  ;;  %4744 = vmatprep.subr.mxu0 %v7437_v1 }
 0x193   :  { %v303_v60 = vpop.f32.mrf.mxu0  ;;  %691 = vmatpush1.msra.mxu1 %v5729_v57  ;;  %4745 = vmatpush3.msra.mxu0 %v5734_v58 }
 0x194   :  { %4369 = vmatmul.mubr.msk.f32.gmra.mxu1 %vm360_vm9, %v293_v55  ;;  %4736 = vmatprep.mubr.msk.f32.mxu0 %vm360_vm9, %v303_v60 }
 0x195   :  { %v4721_v0 = vpop.f32.mrf.mxu0  ;;  %4737 = vmatmul.mubr.msk.f32.gmra.mxu0 %vm360_vm9, %v4718_v59  ;;  %467 = vmatprep.mubr.f32.mxu1 %v7437_v1 }
 0x196   :  { %692 = vmatprep.subr.mxu1 %v5744_v61  ;;  %4746 = vmatprep.subr.mxu0 %v7437_v1 }
 0x197   :  { %v313_v2 = vpop.f32.mrf.mxu0  ;;  %693 = vmatpush1.msra.mxu1 %v5752_v62  ;;  %4747 = vmatpush3.msra.mxu0 %v5757_v63 }
 0x198   :  { %4370 = vmatmul.mubr.msk.f32.gmra.mxu1 %vm360_vm9, %v4715_v54  ;;  %4739 = vmatprep.mubr.msk.f32.mxu0 %vm360_vm9, %v313_v2 }
 0x199   :  { %4740 = vmatmul.mubr.msk.f32.gmra.mxu0 %vm360_vm9, %v4721_v0  ;;  %473 = vmatprep.mubr.f32.mxu1 %v7437_v1 }
 0x19a   :  { %694 = vmatprep.subr.mxu1 %v5767_v3  ;;  %4748 = vmatprep.subr.mxu0 %v7437_v1 }
 0x19b   :  { %695 = vmatpush1.msra.mxu1 %v5775_v4  ;;  %4749 = vmatpush3.msra.mxu0 %v5780_v5 }
 0x19c   :  { %4371 = vmatmul.mubr.msk.f32.gmra.mxu1 %vm360_vm9, %v303_v60  ;;  %696 = vmatprep.subr.mxu1 %v5787_v6 }
 0x19d   :  { %479 = vmatprep.mubr.f32.mxu1 %v7437_v1  ;;  %697 = vmatpush1.msra.mxu1 %v5793_v7 }
 0x19e   :  { %698 = vmatprep.subr.mxu1 %v5800_v8  ;;  %4750 = vmatprep.subr.mxu0 %v7437_v1 }
 0x19f   :  { %699 = vmatpush1.msra.mxu1 %v5808_v9  ;;  %4751 = vmatpush3.msra.mxu0 %v5813_v10 }
 0x1a0   :  { %4372 = vmatmul.mubr.msk.f32.gmra.mxu1 %vm360_vm9, %v4718_v59  ;;  %700 = vmatprep.subr.mxu1 %v5820_v11 }
 0x1a1   :  { %485 = vmatprep.mubr.f32.mxu1 %v7437_v1  ;;  %701 = vmatpush1.msra.mxu1 %v5826_v12 }
 0x1a2   :  { %4752 = vmatprep.subr.mxu0 %v7437_v1  ;;  %4758 = vmatprep.mubr.msk.f32.mxu0 %vm5498_vm10, %v7437_v1 }
 0x1a3   :  { %4753 = vmatpush3.msra.mxu0 %v5836_v13  ;;  %867 = vmatprep.subr.mxu1 %v5687_v47 }
 0x1a4   :  { %4373 = vmatmul.mubr.msk.f32.gmra.mxu1 %vm360_vm9, %v313_v2  ;;  %4754 = vmatprep.subr.mxu0 %v7437_v1 }
 0x1a5   :  { %491 = vmatprep.mubr.f32.mxu1 %v7437_v1  ;;  %4755 = vmatpush3.msra.mxu0 %v5844_v14 }
 0x1a6   :  { %4756 = vmatprep.subr.mxu0 %v7437_v1 }
 0x1a7   :  { %4757 = vmatpush3.msra.mxu0 %v5855_v15 }
 0x1a8   :  { %4374 = vmatmul.mubr.msk.f32.gmra.mxu1 %vm360_vm9, %v4721_v0  ;;  %4759 = vmatmul.mubr.f32.vlgmr.msra.gmra.mxu0 %v7437_v1 }
 0x1a9   :  { %734 = vmatprep.mubr.f32.mxu1 %v7437_v1  ;;  %4761 = vmatprep.subr.mxu0 %v7437_v1 }
 0x1aa   :  { %4762 = vmatpush3.msra.mxu0 %v5711_v53  ;;  %4777 = vmatprep.mubr.msk.f32.mxu0 %vm5498_vm10, %v7437_v1 }
 0x1ab   :  { %4763 = vmatprep.subr.mxu0 %v7437_v1 }
 0x1ac   :  { %735 = vmatmul.mubr.f32.vlgmr.msra.gmra.mxu1 %v7437_v1  ;;  %4764 = vmatpush3.msra.mxu0 %v5734_v58 }
 0x1ad   :  { %868 = vmatpush1.msra.mxu1 %v5694_v49  ;;  %4765 = vmatprep.subr.mxu0 %v7437_v1 }
 0x1ae   :  { %869 = vmatprep.subr.mxu1 %v5699_v51  ;;  %4766 = vmatpush3.msra.mxu0 %v5757_v63 }
 0x1af   :  { %870 = vmatpush1.msra.mxu1 %v5706_v52  ;;  %4767 = vmatprep.subr.mxu0 %v7437_v1 }
 0x1b0   :  { %871 = vmatprep.subr.mxu1 %v5721_v56  ;;  %4768 = vmatpush3.msra.mxu0 %v5780_v5 }
 0x1b1   :  { %872 = vmatpush1.msra.mxu1 %v5729_v57  ;;  %4769 = vmatprep.subr.mxu0 %v7437_v1 }
 0x1b2   :  { %873 = vmatprep.subr.mxu1 %v5744_v61  ;;  %4770 = vmatpush3.msra.mxu0 %v5813_v10 }
 0x1b3   :  { %874 = vmatpush1.msra.mxu1 %v5752_v62  ;;  %4771 = vmatprep.subr.mxu0 %v7437_v1 }
 0x1b4   :  { %875 = vmatprep.subr.mxu1 %v5767_v3  ;;  %4772 = vmatpush3.msra.mxu0 %v5836_v13 }
 0x1b5   :  { %876 = vmatpush1.msra.mxu1 %v5775_v4  ;;  %4773 = vmatprep.subr.mxu0 %v7437_v1 }
 0x1b6   :  { %877 = vmatprep.subr.mxu1 %v5787_v6  ;;  %4774 = vmatpush3.msra.mxu0 %v5844_v14 }
 0x1b7   :  { %878 = vmatpush1.msra.mxu1 %v5793_v7  ;;  %4775 = vmatprep.subr.mxu0 %v7437_v1 }
 0x1b8   :  { %879 = vmatprep.subr.mxu1 %v5800_v8  ;;  %915 = vmatprep.mubr.f32.mxu1 %v7437_v1 }
 0x1b9   :  { %880 = vmatpush1.msra.mxu1 %v5808_v9  ;;  %4776 = vmatpush3.msra.mxu0 %v5855_v15 }
 0x1ba   :  { %881 = vmatprep.subr.mxu1 %v5820_v11  ;;  %4780 = vmatprep.subr.mxu0 %v7437_v1 }
 0x1bb   :  { %882 = vmatpush1.msra.mxu1 %v5826_v12 }
 0x1bc   :  { %1048 = vmatprep.subr.mxu1 %v5687_v47 }
 0x24c   :  { %v5924_v21 = vpop.f32.mrf.mxu1 }
 0x24d   :  { %v4732_v22 = vpop.f32.mrf.mxu0  ;;  %v452_v26 = vadd.f32 %v5924_v21, %v5934_v24 }
 0x24e   :  { %v5928_v27 = vadd.f32 %v4732_v22, %v356_v19  ;;  %v5930_v28 = vpop.f32.mrf.mxu1 }
 0x24f   :  { %v564_v29 = vpop.f32.mrf.mxu0 }
 0x250   :  { %v457_v30 = vpop.f32.mrf.mxu1  ;;  %v5970_v22 = vadd.f32 %v564_v29, %v356_v19 }
 0x251   :  { %v458_v32 = vadd.f32 %v457_v30, %v5934_v24  ;;  %v4735_v33 = vpop.f32.mrf.mxu0 }
 0x252   :  { %v5941_v35 = vadd.f32 %v4735_v33, %v356_v19  ;;  %v459_v36 = vpop.f32.mrf.mxu1  ;;  %7459 = vst [vmem:[#allocation19_spill] sm:$0xff] %v5970_v22 }
 0x253   :  { %v5944_v37 = vadd.f32 %v459_v36, %v5938_v31  ;;  %v574_v38 = vpop.f32.mrf.mxu0 }
 0x254   :  { %v5946_v39 = vadd.f32 %v574_v38, %v356_v19  ;;  %v463_v40 = vpop.f32.mrf.mxu1 }
 0x255   :  { %v464_v41 = vadd.f32 %v463_v40, %v5934_v24  ;;  %v4738_v43 = vpop.f32.mrf.mxu0 }
 0x256   :  { %v5954_v45 = vadd.f32 %v4738_v43, %v356_v19  ;;  %v465_v46 = vpop.f32.mrf.mxu1 }
 0x257   :  { %v5957_v48 = vadd.f32 %v465_v46, %v5938_v31  ;;  %v584_v50 = vpop.f32.mrf.mxu0 }
 0x258   :  { %v5967_v59 = vadd.f32 %v584_v50, %v356_v19  ;;  %v469_v60 = vpop.f32.mrf.mxu1 }
 0x259   :  { %v470_v0 = vadd.f32 %v469_v60, %v5934_v24  ;;  %v4741_v2 = vpop.f32.mrf.mxu0 }
 0x25a   :  { %v5980_v33 = vadd.f32 %v4741_v2, %v356_v19  ;;  %v471_v34 = vpop.f32.mrf.mxu1 }
 0x25b   :  { %v5983_v36 = vadd.f32 %v471_v34, %v5938_v31  ;;  %v594_v38 = vpop.f32.mrf.mxu0 }
 0x25c   :  { %v5990_v40 = vadd.f32 %v594_v38, %v356_v19  ;;  %v475_v43 = vpop.f32.mrf.mxu1 }
 0x25d   :  { %v476_v44 = vadd.f32 %v475_v43, %v5934_v24 }
 0x25e   :  { %v477_v60 = vpop.f32.mrf.mxu1 }
 0x25f   :  { %v6006_v19 = vadd.f32 %v477_v60, %v5938_v31  ;;  %v6010_v34 = vsel %vm327_vm13, %v470_v0, %v476_v44  ;;  %v6014_v38 = vsel %vm327_vm13, %v476_v44, %v470_v0 }
 0x260   :  { %v481_v43 = vpop.f32.mrf.mxu1 }
 0x261   :  { %v482_v23 = vadd.f32 %v481_v43, %v5934_v24 }
 0x262   :  { %v483_v20 = vpop.f32.mrf.mxu1 }
 0x263   :  { %v6026_v17 = vadd.f32 %v483_v20, %v5938_v31  ;;  %v6030_v0 = vsel %vm327_vm13, %v464_v41, %v482_v23  ;;  %v6034_v44 = vsel %vm327_vm13, %v482_v23, %v464_v41 }
 0x264   :  { %v487_v43 = vpop.f32.mrf.mxu1 }
 0x265   :  { %v488_v29 = vadd.f32 %v487_v43, %v5934_v24 }
 0x266   :  { %v489_v55 = vpop.f32.mrf.mxu1 }
 0x267   :  { %v6046_v30 = vadd.f32 %v489_v55, %v5938_v31  ;;  %v6050_v23 = vsel %vm327_vm13, %v458_v32, %v488_v29  ;;  %v6054_v41 = vsel %vm327_vm13, %v488_v29, %v458_v32  ;;  %v6069_v29 = vadd.f32 %v5930_v28, %v5938_v31 }
 0x268   :  { %v493_v43 = vpop.f32.mrf.mxu1  ;;  %v807_v60 = vpop.f32.mrf.mxu0 }
 0x269   :  { %v494_v18 = vadd.f32 %v493_v43, %v5934_v24  ;;  %7462 = vst [vmem:[#allocation20_spill] sm:$0xff] %v6069_v29 }
 0x26a   :  { %v495_v54 = vpop.f32.mrf.mxu1  ;;  %v4760_v32 = vpop.f32.mrf.mxu0 }
 0x26b   :  { %v6072_v21 = vadd.f32 %v495_v54, %v5938_v31  ;;  %v664_v24 = vsel %vm327_vm13, %v452_v26, %v494_v18  ;;  %v6078_v43 = vsel %vm327_vm13, %v494_v18, %v452_v26 }
 0x26c   :  { %v736_v50 = vpop.f32.mrf.mxu1 }
 0x26d   :  { %7463 = vst [vmem:[#allocation21_spill] sm:$0xff] %v6072_v21  ;;  %v811_v46 = vadd.f32 %v736_v50, %v664_v24  ;;  %v665_v28 = vsel %vm6001_vm14, %v6069_v29, %v6072_v21  ;;  %v6088_v24 = vld [vmem:[#allocation9] ss:$0 sm:$0xff]  ;;  %v836_v21 = vld [vmem:[#allocation2 + $0x38] sm:$0xff] }
 0x26e   :  { %v738_v31 = vpop.f32.mrf.mxu1  ;;  %v825_v32 = vadd.f32 %v6088_v24, %v807_v60  ;;  %v833_v29 = vld [vmem:[#allocation2] sm:$0xff] }
 0x26f   :  { %v4384_v20 = vmul.f32 -1.442695, %v811_v46  ;;  %v818_v54 = vadd.f32 %v738_v31, %v665_v28 }
 0x271   :  { %5137 = vpow2.f32 %v4384_v20  ;;  %v4385_v55 = vmul.f32 -1.442695, %v818_v54  ;;  %v666_v20 = vsel %vm5949_vm12, %v5970_v22, %v5980_v33 }
 0x273   :  { %5139 = vpow2.f32 %v4385_v55 }
 0x27e   :  { %v5138_v26 = vpop.eup %5137 }
 0x27f   :  { %v815_v18 = vadd.f32 1.0, %v5138_v26 }
 0x280   :  { %v5140_v50 = vpop.eup %5139 }
 0x281   :  { %5141 = vrcp.f32 %v815_v18  ;;  %v822_v1 = vadd.f32 1.0, %v5140_v50 }
 0x283   :  { %5143 = vrcp.f32 %v822_v1 }
 0x28e   :  { %v5142_v46 = vpop.eup %5141 }
 0x28f   :  { %v826_v16 = vmul.f32 %v5142_v46, %v825_v32 }
 0x290   :  { %v5144_v55 = vpop.eup %5143 }
 0x291   :  { %v827_v28 = vadd.f32 %v826_v16, %v666_v20  ;;  %v829_v31 = vsub.f32 1.0, %v5144_v55  ;;  %v831_v18 = vmul.f32 0.0, %v5144_v55  ;;  %v7464_v16 = vmov 0.0  }
 0x292   :  { %v7465_v55 = vsel %vm6001_vm14, %v5944_v37, %v6046_v30 }
 0x293   :  { %5145 = vtanh.f32 %v827_v28 }
 0x2a0   :  { %v5146_v54 = vpop.eup %5145 }
 0x2a1   :  { %v830_v26 = vmul.f32 %v5146_v54, %v829_v31 }
 0x2a3   :  { %v6095_v50 = vadd.f32 %v831_v18, %v830_v26 }
 0x2a5   :  { %v834_v1 = vsel %vm327_vm13, %v6095_v50, %v833_v29  ;;  %v837_v60 = vsel %vm327_vm13, %v836_v21, %v6095_v50  ;;  %4386 = vmatmul.mubr.msk.f32.vlgmr.msra.gmra.mxu1 %vm118_vm11, %v6095_v50  ;;  %4778 = vmatmul.mubr.msk.f32.vlgmr.msra.gmra.mxu0 %vm118_vm11, %v6095_v50 }
 0x2a6   :  { %835 = vst.msk [vmem:[#allocation2] sm:$0xff] %vm118_vm11, %v834_v1  ;;  %838 = vst.msk [vmem:[#allocation2 + $0x38] sm:$0xff] %vm118_vm11, %v837_v60  ;;  %1049 = vmatpush1.msra.mxu1 %v5694_v49  ;;  %4781 = vmatpush3.msra.mxu0 %v5711_v53 }
 0x2a7   :  { %1050 = vmatprep.subr.mxu1 %v5699_v51  ;;  %4782 = vmatprep.subr.mxu0 %v7464_v16 }
 0x2a8   :  { %1051 = vmatpush1.msra.mxu1 %v5706_v52  ;;  %4783 = vmatpush3.msra.mxu0 %v5734_v58 }
 0x2a9   :  { %1052 = vmatprep.subr.mxu1 %v5721_v56  ;;  %4784 = vmatprep.subr.mxu0 %v7464_v16 }
 0x2aa   :  { %1053 = vmatpush1.msra.mxu1 %v5729_v57  ;;  %4785 = vmatpush3.msra.mxu0 %v5757_v63 }
 0x2ab   :  { %1054 = vmatprep.subr.mxu1 %v5744_v61  ;;  %4786 = vmatprep.subr.mxu0 %v7464_v16 }
 0x2ac   :  { %1055 = vmatpush1.msra.mxu1 %v5752_v62  ;;  %4787 = vmatpush3.msra.mxu0 %v5780_v5 }
 0x2ad   :  { %1056 = vmatprep.subr.mxu1 %v5767_v3  ;;  %4788 = vmatprep.subr.mxu0 %v7464_v16 }
 0x2ae   :  { %1057 = vmatpush1.msra.mxu1 %v5775_v4  ;;  %4789 = vmatpush3.msra.mxu0 %v5813_v10 }
 0x2af   :  { %1058 = vmatprep.subr.mxu1 %v5787_v6  ;;  %4790 = vmatprep.subr.mxu0 %v7464_v16 }
 0x2b0   :  { %1059 = vmatpush1.msra.mxu1 %v5793_v7  ;;  %4791 = vmatpush3.msra.mxu0 %v5836_v13 }
 0x2b1   :  { %1060 = vmatprep.subr.mxu1 %v5800_v8  ;;  %4792 = vmatprep.subr.mxu0 %v7464_v16 }
 0x2b2   :  { %1061 = vmatpush1.msra.mxu1 %v5808_v9  ;;  %4793 = vmatpush3.msra.mxu0 %v5844_v14 }
 0x2b3   :  { %1062 = vmatprep.subr.mxu1 %v5820_v11  ;;  %4794 = vmatprep.subr.mxu0 %v7464_v16 }
 0x2b4   :  { %1063 = vmatpush1.msra.mxu1 %v5826_v12  ;;  %1096 = vmatprep.mubr.f32.mxu1 %v7464_v16 }
 0x2b5   :  { %4795 = vmatpush3.msra.mxu0 %v5855_v15  ;;  %4796 = vmatprep.mubr.msk.f32.mxu0 %vm5498_vm10, %v7464_v16 }
 0x2b6   :  { %1229 = vmatprep.subr.mxu1 %v5687_v47  ;;  %4799 = vmatprep.subr.mxu0 %v7464_v16 }
 0x365   :  { %v917_v29 = vpop.f32.mrf.mxu1  ;;  %v988_v21 = vpop.f32.mrf.mxu0 }
 0x366   :  { %v992_v32 = vadd.f32 %v917_v29, %v6050_v23  ;;  %v1006_v22 = vadd.f32 %v6088_v24, %v988_v21 }
 0x367   :  { %v4779_v46 = vpop.f32.mrf.mxu0  ;;  %v919_v28 = vpop.f32.mrf.mxu1 }
 0x368   :  { %v4388_v20 = vmul.f32 -1.442695, %v992_v32  ;;  %v999_v31 = vadd.f32 %v919_v28, %v7465_v55  ;;  %v7466_v32 = vsel %vm5949_vm12, %v5928_v27, %v5990_v40 }
 0x36a   :  { %5147 = vpow2.f32 %v4388_v20  ;;  %v4389_v54 = vmul.f32 -1.442695, %v999_v31 }
 0x36c   :  { %5149 = vpow2.f32 %v4389_v54 }
 0x377   :  { %v5148_v26 = vpop.eup %5147 }
 0x378   :  { %v996_v18 = vadd.f32 1.0, %v5148_v26  ;;  %v1014_v26 = vld [vmem:[#allocation2 + $0x8] sm:$0xff] }
 0x379   :  { %v5150_v1 = vpop.eup %5149 }
 0x37a   :  { %5151 = vrcp.f32 %v996_v18  ;;  %v1003_v60 = vadd.f32 1.0, %v5150_v1  ;;  %v1017_v18 = vld [vmem:[#allocation2 + $0x30] sm:$0xff] }
 0x37c   :  { %5153 = vrcp.f32 %v1003_v60 }
 0x387   :  { %v5152_v23 = vpop.eup %5151 }
 0x388   :  { %v1007_v29 = vmul.f32 %v5152_v23, %v1006_v22 }
 0x389   :  { %v5154_v20 = vpop.eup %5153 }
 0x38a   :  { %v1008_v46 = vadd.f32 %v1007_v29, %v7466_v32  ;;  %v1010_v28 = vsub.f32 1.0, %v5154_v20  ;;  %v1012_v54 = vmul.f32 %v5154_v20, %v6095_v50  ;;  %v7467_v20 = vsel %vm6001_vm14, %v5957_v48, %v6026_v17 }
 0x38c   :  { %5155 = vtanh.f32 %v1008_v46 }
 0x399   :  { %v5156_v55 = vpop.eup %5155 }
 0x39a   :  { %v1011_v31 = vmul.f32 %v5156_v55, %v1010_v28 }
 0x39c   :  { %v6157_v1 = vadd.f32 %v1012_v54, %v1011_v31 }
 0x39e   :  { %v1015_v22 = vsel %vm327_vm13, %v6157_v1, %v1014_v26  ;;  %v1018_v21 = vsel %vm327_vm13, %v1017_v18, %v6157_v1  ;;  %4390 = vmatmul.mubr.msk.f32.vlgmr.msra.gmra.mxu1 %vm118_vm11, %v6157_v1  ;;  %4797 = vmatmul.mubr.msk.f32.vlgmr.msra.gmra.mxu0 %vm118_vm11, %v6157_v1 }
 0x39f   :  { %1016 = vst.msk [vmem:[#allocation2 + $0x8] sm:$0xff] %vm118_vm11, %v1015_v22  ;;  %1019 = vst.msk [vmem:[#allocation2 + $0x30] sm:$0xff] %vm118_vm11, %v1018_v21  ;;  %1230 = vmatpush1.msra.mxu1 %v5694_v49  ;;  %4800 = vmatpush3.msra.mxu0 %v5711_v53 }
 0x3a0   :  { %1231 = vmatprep.subr.mxu1 %v5699_v51  ;;  %4801 = vmatprep.subr.mxu0 %v7464_v16 }
 0x3a1   :  { %1232 = vmatpush1.msra.mxu1 %v5706_v52  ;;  %4802 = vmatpush3.msra.mxu0 %v5734_v58 }
 0x3a2   :  { %1233 = vmatprep.subr.mxu1 %v5721_v56  ;;  %4803 = vmatprep.subr.mxu0 %v7464_v16 }
 0x3a3   :  { %1234 = vmatpush1.msra.mxu1 %v5729_v57  ;;  %4804 = vmatpush3.msra.mxu0 %v5757_v63 }
 0x3a4   :  { %1235 = vmatprep.subr.mxu1 %v5744_v61  ;;  %4805 = vmatprep.subr.mxu0 %v7464_v16 }
 0x3a5   :  { %1236 = vmatpush1.msra.mxu1 %v5752_v62  ;;  %4806 = vmatpush3.msra.mxu0 %v5780_v5 }
 0x3a6   :  { %1237 = vmatprep.subr.mxu1 %v5767_v3  ;;  %4807 = vmatprep.subr.mxu0 %v7464_v16 }
 0x3a7   :  { %1238 = vmatpush1.msra.mxu1 %v5775_v4  ;;  %4808 = vmatpush3.msra.mxu0 %v5813_v10 }
 0x3a8   :  { %1239 = vmatprep.subr.mxu1 %v5787_v6  ;;  %4809 = vmatprep.subr.mxu0 %v7464_v16 }
 0x3a9   :  { %1240 = vmatpush1.msra.mxu1 %v5793_v7  ;;  %4810 = vmatpush3.msra.mxu0 %v5836_v13 }
 0x3aa   :  { %1241 = vmatprep.subr.mxu1 %v5800_v8  ;;  %4811 = vmatprep.subr.mxu0 %v7464_v16 }
 0x3ab   :  { %1242 = vmatpush1.msra.mxu1 %v5808_v9  ;;  %4812 = vmatpush3.msra.mxu0 %v5844_v14 }
 0x3ac   :  { %1243 = vmatprep.subr.mxu1 %v5820_v11  ;;  %4813 = vmatprep.subr.mxu0 %v7464_v16 }
 0x3ad   :  { %1244 = vmatpush1.msra.mxu1 %v5826_v12  ;;  %1277 = vmatprep.mubr.f32.mxu1 %v7464_v16 }
 0x3ae   :  { %4814 = vmatpush3.msra.mxu0 %v5855_v15  ;;  %4815 = vmatprep.mubr.msk.f32.mxu0 %vm5498_vm10, %v7464_v16 }
 0x3af   :  { %1410 = vmatprep.subr.mxu1 %v5687_v47  ;;  %4818 = vmatprep.subr.mxu0 %v7464_v16 }
 0x45e   :  { %v1098_v50 = vpop.f32.mrf.mxu1  ;;  %v1169_v60 = vpop.f32.mrf.mxu0 }
 0x45f   :  { %v1173_v23 = vadd.f32 %v1098_v50, %v6030_v0  ;;  %v1187_v22 = vadd.f32 %v6088_v24, %v1169_v60  ;;  %v7468_v50 = vsel %vm5949_vm12, %v5946_v39, %v5954_v45 }
 0x460   :  { %v4798_v29 = vpop.f32.mrf.mxu0  ;;  %v1100_v46 = vpop.f32.mrf.mxu1 }
 0x461   :  { %v4392_v32 = vmul.f32 -1.442695, %v1173_v23  ;;  %v1180_v28 = vadd.f32 %v1100_v46, %v7467_v20 }
 0x463   :  { %5157 = vpow2.f32 %v4392_v32  ;;  %v4393_v55 = vmul.f32 -1.442695, %v1180_v28 }
 0x465   :  { %5159 = vpow2.f32 %v4393_v55  ;;  %v1195_v55 = vld [vmem:[#allocation2 + $0x10] sm:$0xff] }
 0x470   :  { %v5158_v31 = vpop.eup %5157 }
 0x471   :  { %v1177_v54 = vadd.f32 1.0, %v5158_v31  ;;  %v1198_v31 = vld [vmem:[#allocation2 + $0x28] sm:$0xff] }
 0x472   :  { %v5160_v26 = vpop.eup %5159 }
 0x473   :  { %5161 = vrcp.f32 %v1177_v54  ;;  %v1184_v18 = vadd.f32 1.0, %v5160_v26 }
 0x475   :  { %5163 = vrcp.f32 %v1184_v18 }
 0x480   :  { %v5162_v0 = vpop.eup %5161 }
 0x481   :  { %v1188_v21 = vmul.f32 %v5162_v0, %v1187_v22 }
 0x482   :  { %v5164_v29 = vpop.eup %5163 }
 0x483   :  { %v1189_v23 = vadd.f32 %v1188_v21, %v7468_v50  ;;  %v1191_v32 = vsub.f32 1.0, %v5164_v29  ;;  %v1193_v28 = vmul.f32 %v5164_v29, %v6157_v1 }
 0x485   :  { %5165 = vtanh.f32 %v1189_v23  ;;  %v7469_v23 = vsel %vm6001_vm14, %v5983_v36, %v6006_v19 }
 0x492   :  { %v5166_v46 = vpop.eup %5165 }
 0x493   :  { %v1192_v20 = vmul.f32 %v5166_v46, %v1191_v32 }
 0x495   :  { %v6219_v54 = vadd.f32 %v1193_v28, %v1192_v20 }
 0x497   :  { %v1196_v60 = vsel %vm327_vm13, %v6219_v54, %v1195_v55  ;;  %v1199_v26 = vsel %vm327_vm13, %v1198_v31, %v6219_v54  ;;  %4394 = vmatmul.mubr.msk.f32.vlgmr.msra.gmra.mxu1 %vm118_vm11, %v6219_v54  ;;  %4816 = vmatmul.mubr.msk.f32.vlgmr.msra.gmra.mxu0 %vm118_vm11, %v6219_v54 }
 0x498   :  { %1197 = vst.msk [vmem:[#allocation2 + $0x10] sm:$0xff] %vm118_vm11, %v1196_v60  ;;  %1200 = vst.msk [vmem:[#allocation2 + $0x28] sm:$0xff] %vm118_vm11, %v1199_v26  ;;  %1411 = vmatpush1.msra.mxu1 %v5694_v49  ;;  %4819 = vmatpush3.msra.mxu0 %v5711_v53  ;;  %v7470_v26 = vsel %vm5949_vm12, %v5941_v35, %v5967_v59 }
 0x499   :  { %1412 = vmatprep.subr.mxu1 %v5699_v51  ;;  %4820 = vmatprep.subr.mxu0 %v7464_v16 }
 0x49a   :  { %1413 = vmatpush1.msra.mxu1 %v5706_v52  ;;  %4821 = vmatpush3.msra.mxu0 %v5734_v58 }
 0x49b   :  { %1414 = vmatprep.subr.mxu1 %v5721_v56  ;;  %4822 = vmatprep.subr.mxu0 %v7464_v16 }
 0x49c   :  { %1415 = vmatpush1.msra.mxu1 %v5729_v57  ;;  %4823 = vmatpush3.msra.mxu0 %v5757_v63 }
 0x49d   :  { %1416 = vmatprep.subr.mxu1 %v5744_v61  ;;  %4824 = vmatprep.subr.mxu0 %v7464_v16 }
 0x49e   :  { %1417 = vmatpush1.msra.mxu1 %v5752_v62  ;;  %4825 = vmatpush3.msra.mxu0 %v5780_v5 }
 0x49f   :  { %1418 = vmatprep.subr.mxu1 %v5767_v3  ;;  %4826 = vmatprep.subr.mxu0 %v7464_v16 }
 0x4a0   :  { %1419 = vmatpush1.msra.mxu1 %v5775_v4  ;;  %4827 = vmatpush3.msra.mxu0 %v5813_v10 }
 0x4a1   :  { %1420 = vmatprep.subr.mxu1 %v5787_v6  ;;  %4828 = vmatprep.subr.mxu0 %v7464_v16 }
 0x4a2   :  { %1421 = vmatpush1.msra.mxu1 %v5793_v7  ;;  %4829 = vmatpush3.msra.mxu0 %v5836_v13 }
 0x4a3   :  { %1422 = vmatprep.subr.mxu1 %v5800_v8  ;;  %4830 = vmatprep.subr.mxu0 %v7464_v16 }
 0x4a4   :  { %1423 = vmatpush1.msra.mxu1 %v5808_v9  ;;  %4831 = vmatpush3.msra.mxu0 %v5844_v14 }
 0x4a5   :  { %1424 = vmatprep.subr.mxu1 %v5820_v11  ;;  %4832 = vmatprep.subr.mxu0 %v7464_v16 }
 0x4a6   :  { %1425 = vmatpush1.msra.mxu1 %v5826_v12  ;;  %1458 = vmatprep.mubr.f32.mxu1 %v7464_v16 }
 0x4a7   :  { %4833 = vmatpush3.msra.mxu0 %v5855_v15  ;;  %4834 = vmatprep.mubr.msk.f32.mxu0 %vm5498_vm10, %v7464_v16 }
 0x4a8   :  { %1591 = vmatprep.subr.mxu1 %v5687_v47  ;;  %4837 = vmatprep.subr.mxu0 %v7464_v16 }
 0x557   :  { %v1279_v1 = vpop.f32.mrf.mxu1  ;;  %v1350_v18 = vpop.f32.mrf.mxu0 }
 0x558   :  { %v1354_v22 = vadd.f32 %v1279_v1, %v6010_v34  ;;  %v1368_v31 = vadd.f32 %v6088_v24, %v1350_v18 }
 0x559   :  { %v4817_v0 = vpop.f32.mrf.mxu0  ;;  %v1281_v50 = vpop.f32.mrf.mxu1 }
 0x55a   :  { %v4396_v21 = vmul.f32 -1.442695, %v1354_v22  ;;  %v1361_v29 = vadd.f32 %v1281_v50, %v7469_v23 }
 0x55c   :  { %5167 = vpow2.f32 %v4396_v21  ;;  %v4397_v32 = vmul.f32 -1.442695, %v1361_v29  ;;  %v1376_v29 = vld [vmem:[#allocation2 + $0x18] sm:$0xff] }
 0x55e   :  { %5169 = vpow2.f32 %v4397_v32  ;;  %v1379_v32 = vld [vmem:[#allocation2 + $0x20] sm:$0xff] }
 0x569   :  { %v5168_v46 = vpop.eup %5167 }
 0x56a   :  { %v1358_v20 = vadd.f32 1.0, %v5168_v46 }
 0x56b   :  { %v5170_v28 = vpop.eup %5169 }
 0x56c   :  { %5171 = vrcp.f32 %v1358_v20  ;;  %v1365_v55 = vadd.f32 1.0, %v5170_v28 }
 0x56e   :  { %5173 = vrcp.f32 %v1365_v55 }
 0x579   :  { %v5172_v34 = vpop.eup %5171 }
 0x57a   :  { %v1369_v60 = vmul.f32 %v5172_v34, %v1368_v31 }
 0x57b   :  { %v5174_v22 = vpop.eup %5173 }
 0x57c   :  { %v1370_v1 = vadd.f32 %v1369_v60, %v7470_v26  ;;  %v1372_v0 = vsub.f32 1.0, %v5174_v22  ;;  %v1374_v23 = vmul.f32 %v5174_v22, %v6219_v54  ;;  %v7472_v60 = vsel %vm5949_vm12, %v5967_v59, %v5941_v35  ;;  %v6360_v59 = vld [vmem:[%s7419_s3 + $0xa8] sm:$0xff] }
 0x57e   :  { %5175 = vtanh.f32 %v1370_v1 }
 0x58b   :  { %v5176_v21 = vpop.eup %5175 }
 0x58c   :  { %v1373_v50 = vmul.f32 %v5176_v21, %v1372_v0 }
 0x58e   :  { %v6281_v46 = vadd.f32 %v1374_v23, %v1373_v50 }
 0x590   :  { %v1377_v18 = vsel %vm327_vm13, %v6281_v46, %v1376_v29  ;;  %v1380_v20 = vsel %vm327_vm13, %v1379_v32, %v6281_v46  ;;  %4398 = vmatmul.mubr.msk.f32.vlgmr.msra.gmra.mxu1 %vm118_vm11, %v6281_v46  ;;  %4835 = vmatmul.mubr.msk.f32.vlgmr.msra.gmra.mxu0 %vm118_vm11, %v6281_v46  ;;  %v6366_v32 = vld [vmem:[%s7419_s3 + $0xb8] sm:$0xff] }
 0x591   :  { %1378 = vst.msk [vmem:[#allocation2 + $0x18] sm:$0xff] %vm118_vm11, %v1377_v18  ;;  %1381 = vst.msk [vmem:[#allocation2 + $0x20] sm:$0xff] %vm118_vm11, %v1380_v20  ;;  %1592 = vmatpush1.msra.mxu1 %v5694_v49  ;;  %4838 = vmatpush3.msra.mxu0 %v5711_v53  ;;  %v6379_v18 = vld [vmem:[%s7419_s3 + $0x90] sm:$0xff]  ;;  %v6385_v20 = vld [vmem:[%s7419_s3 + $0xa0] sm:$0xff] }
 0x592   :  { %1593 = vmatprep.subr.mxu1 %v5699_v51  ;;  %4839 = vmatprep.subr.mxu0 %v7464_v16 }
 0x593   :  { %1594 = vmatpush1.msra.mxu1 %v5706_v52  ;;  %4840 = vmatpush3.msra.mxu0 %v5734_v58  ;;  %v7471_v58 = vsel %vm6001_vm14, %v6006_v19, %v5983_v36 }
 0x594   :  { %1595 = vmatprep.subr.mxu1 %v5721_v56  ;;  %4841 = vmatprep.subr.mxu0 %v7464_v16 }
 0x595   :  { %1596 = vmatpush1.msra.mxu1 %v5729_v57  ;;  %4842 = vmatpush3.msra.mxu0 %v5757_v63 }
 0x596   :  { %1597 = vmatprep.subr.mxu1 %v5744_v61  ;;  %4843 = vmatprep.subr.mxu0 %v7464_v16 }
 0x597   :  { %1598 = vmatpush1.msra.mxu1 %v5752_v62  ;;  %4844 = vmatpush3.msra.mxu0 %v5780_v5 }
 0x598   :  { %1599 = vmatprep.subr.mxu1 %v5767_v3  ;;  %4845 = vmatprep.subr.mxu0 %v7464_v16  ;;  %v1557_v50 = vld [vmem:[#allocation2 + $0x20] sm:$0xff]  ;;  %v1560_v23 = vld [vmem:[#allocation2 + $0x18] sm:$0xff] }
 0x599   :  { %1600 = vmatpush1.msra.mxu1 %v5775_v4  ;;  %4846 = vmatpush3.msra.mxu0 %v5813_v10 }
 0x59a   :  { %1601 = vmatprep.subr.mxu1 %v5787_v6  ;;  %4847 = vmatprep.subr.mxu0 %v7464_v16 }
 0x59b   :  { %1602 = vmatpush1.msra.mxu1 %v5793_v7  ;;  %4848 = vmatpush3.msra.mxu0 %v5836_v13 }
 0x59c   :  { %1603 = vmatprep.subr.mxu1 %v5800_v8  ;;  %4849 = vmatprep.subr.mxu0 %v7464_v16 }
 0x59d   :  { %1604 = vmatpush1.msra.mxu1 %v5808_v9  ;;  %4850 = vmatpush3.msra.mxu0 %v5844_v14 }
 0x59e   :  { %1605 = vmatprep.subr.mxu1 %v5820_v11  ;;  %4851 = vmatprep.subr.mxu0 %v7464_v16 }
 0x59f   :  { %1606 = vmatpush1.msra.mxu1 %v5826_v12  ;;  %1639 = vmatprep.mubr.f32.mxu1 %v7464_v16 }
 0x5a0   :  { %4852 = vmatpush3.msra.mxu0 %v5855_v15  ;;  %4853 = vmatprep.mubr.msk.f32.mxu0 %vm5498_vm10, %v7464_v16 }
 0x5a1   :  { %1772 = vmatprep.subr.mxu1 %v5687_v47  ;;  %4856 = vmatprep.subr.mxu0 %v7464_v16 }
 0x650   :  { %v1460_v49 = vpop.f32.mrf.mxu1  ;;  %v1531_v51 = vpop.f32.mrf.mxu0 }
 0x651   :  { %v1535_v52 = vadd.f32 %v1460_v49, %v6014_v38  ;;  %v1549_v31 = vadd.f32 %v6088_v24, %v1531_v51  ;;  %v6391_v49 = vld [vmem:[%s7419_s3 + $0x80] sm:$0xff]  ;;  %v6398_v51 = vld [vmem:[%s7419_s3 + $0x78] sm:$0xff] }
 0x652   :  { %v4836_v53 = vpop.f32.mrf.mxu0  ;;  %v1462_v57 = vpop.f32.mrf.mxu1 }
 0x653   :  { %v4400_v56 = vmul.f32 -1.442695, %v1535_v52  ;;  %v1542_v61 = vadd.f32 %v1462_v57, %v7471_v58  ;;  %v6405_v52 = vld [vmem:[%s7419_s3 + $0x68] sm:$0xff]  ;;  %v6412_v53 = vld [vmem:[%s7419_s3 + $0x60] sm:$0xff]  ;;  %v7474_v58 = vsel %vm5949_vm12, %v5954_v45, %v5946_v39 }
 0x654   :  { %v5323_v45 = vld [vmem:[%s7419_s3 + $0x88] sm:$0xff] }
 0x655   :  { %5177 = vpow2.f32 %v4400_v56  ;;  %v4401_v62 = vmul.f32 -1.442695, %v1542_v61 }
 0x657   :  { %5179 = vpow2.f32 %v4401_v62 }
 0x662   :  { %v5178_v54 = vpop.eup %5177 }
 0x663   :  { %v1539_v47 = vadd.f32 1.0, %v5178_v54 }
 0x664   :  { %v5180_v28 = vpop.eup %5179 }
 0x665   :  { %5181 = vrcp.f32 %v1539_v47  ;;  %v1546_v55 = vadd.f32 1.0, %v5180_v28 }
 0x667   :  { %5183 = vrcp.f32 %v1546_v55  ;;  %v1738_v55 = vld [vmem:[#allocation2 + $0x28] sm:$0xff] }
 0x672   :  { %v5182_v38 = vpop.eup %5181 }
 0x673   :  { %v1550_v34 = vmul.f32 %v5182_v38, %v1549_v31  ;;  %v1741_v31 = vld [vmem:[#allocation2 + $0x10] sm:$0xff] }
 0x674   :  { %v5184_v36 = vpop.eup %5183 }
 0x675   :  { %v1551_v26 = vadd.f32 %v1550_v34, %v7472_v60  ;;  %v1553_v19 = vsub.f32 1.0, %v5184_v36  ;;  %v1555_v0 = vmul.f32 %v5184_v36, %v6281_v46  ;;  %v6372_v46 = vld [vmem:[%s7419_s3 + $0x98] sm:$0xff]  ;;  %v5324_v34 = vld [vmem:[%s7419_s3 + $0x70] sm:$0xff] }
 0x676   :  { %v5325_v60 = vld [vmem:[%s7419_s3 + $0x50] sm:$0xff]  ;;  %v5327_v36 = vld [vmem:[%s7419_s3 + $0x58] sm:$0xff] }
 0x677   :  { %5185 = vtanh.f32 %v1551_v26  ;;  %v5326_v26 = vld [vmem:[%s7419_s3 + $0x48] sm:$0xff] }
 0x684   :  { %v5186_v1 = vpop.eup %5185 }
 0x685   :  { %v1554_v22 = vmul.f32 %v5186_v1, %v1553_v19  ;;  %v5328_v19 = vld [vmem:[%s7419_s3 + $0x38] sm:$0xff]  ;;  %v5329_v1 = vld [vmem:[%s7419_s3 + $0x30] sm:$0xff] }
 0x687   :  { %v6343_v21 = vadd.f32 %v1555_v0, %v1554_v22  ;;  %v5330_v22 = vld [vmem:[%s7419_s3 + $0x40] sm:$0xff] }
 0x688   :  { %v5331_v0 = vld [vmem:[%s7419_s3 + $0x20] sm:$0xff] }
 0x689   :  { %v1558_v29 = vsel %vm327_vm13, %v6343_v21, %v1557_v50  ;;  %v1561_v35 = vsel %vm327_vm13, %v1560_v23, %v6343_v21  ;;  %4402 = vmatmul.mubr.msk.f32.vlgmr.msra.gmra.mxu1 %vm118_vm11, %v6343_v21  ;;  %4854 = vmatmul.mubr.msk.f32.vlgmr.msra.gmra.mxu0 %vm118_vm11, %v6343_v21  ;;  %v5333_v50 = vld [vmem:[%s7419_s3 + $0x28] sm:$0xff] }
 0x68a   :  { %1559 = vst.msk [vmem:[#allocation2 + $0x20] sm:$0xff] %vm118_vm11, %v1558_v29  ;;  %1562 = vst.msk [vmem:[#allocation2 + $0x18] sm:$0xff] %vm118_vm11, %v1561_v35  ;;  %1773 = vmatpush1.msra.mxu1 %v6360_v59  ;;  %4857 = vmatpush3.msra.mxu0 %v6366_v32  ;;  %v5334_v23 = vld [vmem:[%s7419_s3 + $0x8] sm:$0xff]  ;;  %v5335_v29 = vld [vmem:[%s7419_s3] sm:$0xff] }
 0x68b   :  { %1774 = vmatprep.subr.mxu1 %v6372_v46  ;;  %4858 = vmatprep.subr.mxu0 %v7464_v16  ;;  %v5336_v35 = vld [vmem:[%s7419_s3 + $0x10] sm:$0xff] }
 0x68c   :  { %1775 = vmatpush1.msra.mxu1 %v6379_v18  ;;  %4859 = vmatpush3.msra.mxu0 %v6385_v20 }
 0x68d   :  { %1776 = vmatprep.subr.mxu1 %v6391_v49  ;;  %4860 = vmatprep.subr.mxu0 %v7464_v16 }
 0x68e   :  { %1777 = vmatpush1.msra.mxu1 %v6398_v51  ;;  %4861 = vmatpush3.msra.mxu0 %v5757_v63  ;;  %v5322_v63 = vld [vmem:[%s7419_s3 + $0xb0] sm:$0xff] }
 0x68f   :  { %1778 = vmatprep.subr.mxu1 %v6405_v52  ;;  %4862 = vmatprep.subr.mxu0 %v7464_v16 }
 0x690   :  { %1779 = vmatpush1.msra.mxu1 %v6412_v53  ;;  %4863 = vmatpush3.msra.mxu0 %v5780_v5 }
 0x691   :  { %1780 = vmatprep.subr.mxu1 %v5767_v3  ;;  %4864 = vmatprep.subr.mxu0 %v7464_v16 }
 0x692   :  { %1781 = vmatpush1.msra.mxu1 %v5775_v4  ;;  %4865 = vmatpush3.msra.mxu0 %v5813_v10 }
 0x693   :  { %1782 = vmatprep.subr.mxu1 %v5787_v6  ;;  %4866 = vmatprep.subr.mxu0 %v7464_v16 }
 0x694   :  { %1783 = vmatpush1.msra.mxu1 %v5793_v7  ;;  %4867 = vmatpush3.msra.mxu0 %v5836_v13 }
 0x695   :  { %1784 = vmatprep.subr.mxu1 %v5800_v8  ;;  %4868 = vmatprep.subr.mxu0 %v7464_v16 }
 0x696   :  { %1785 = vmatpush1.msra.mxu1 %v5808_v9  ;;  %4869 = vmatpush3.msra.mxu0 %v5844_v14  ;;  %v7473_v9 = vsel %vm6001_vm14, %v6026_v17, %v5957_v48 }
 0x697   :  { %1786 = vmatprep.subr.mxu1 %v5820_v11  ;;  %4870 = vmatprep.subr.mxu0 %v7464_v16 }
 0x698   :  { %1787 = vmatpush1.msra.mxu1 %v5826_v12  ;;  %1820 = vmatprep.mubr.f32.mxu1 %v7464_v16 }
 0x699   :  { %4871 = vmatpush3.msra.mxu0 %v5855_v15  ;;  %4872 = vmatprep.mubr.msk.f32.mxu0 %vm5498_vm10, %v7464_v16 }
 0x69a   :  { %1953 = vmatprep.subr.mxu1 %v5322_v63  ;;  %4875 = vmatprep.subr.mxu0 %v7464_v16 }
 0x749   :  { %v1641_v3 = vpop.f32.mrf.mxu1  ;;  %v1712_v4 = vpop.f32.mrf.mxu0 }
 0x74a   :  { %v1716_v5 = vadd.f32 %v1641_v3, %v6034_v44  ;;  %v1730_v56 = vadd.f32 %v6088_v24, %v1712_v4 }
 0x74b   :  { %v4855_v6 = vpop.f32.mrf.mxu0  ;;  %v1643_v8 = vpop.f32.mrf.mxu1 }
 0x74c   :  { %v4404_v7 = vmul.f32 -1.442695, %v1716_v5  ;;  %v1723_v10 = vadd.f32 %v1643_v8, %v7473_v9  ;;  %v7476_v8 = vsel %vm5949_vm12, %v5990_v40, %v5928_v27  ;;  %v2136_v40 = vld [vmem:[#allocation10 + $0xb0] sm:$0xff] }
 0x74e   :  { %5187 = vpow2.f32 %v4404_v7  ;;  %v4405_v11 = vmul.f32 -1.442695, %v1723_v10 }
 0x750   :  { %5189 = vpow2.f32 %v4405_v11 }
 0x75b   :  { %v5188_v12 = vpop.eup %5187 }
 0x75c   :  { %v1720_v13 = vadd.f32 1.0, %v5188_v12 }
 0x75d   :  { %v5190_v14 = vpop.eup %5189 }
 0x75e   :  { %5191 = vrcp.f32 %v1720_v13  ;;  %v1727_v15 = vadd.f32 1.0, %v5190_v14  ;;  %v1919_v14 = vld [vmem:[#allocation2 + $0x30] sm:$0xff] }
 0x760   :  { %5193 = vrcp.f32 %v1727_v15  ;;  %v1922_v15 = vld [vmem:[#allocation2 + $0x8] sm:$0xff] }
 0x76b   :  { %v5192_v44 = vpop.eup %5191 }
 0x76c   :  { %v1731_v57 = vmul.f32 %v5192_v44, %v1730_v56  ;;  %v2135_v44 = vld [vmem:[#allocation10 + $0xa8] sm:$0xff] }
 0x76d   :  { %v5194_v17 = vpop.eup %5193 }
 0x76e   :  { %v1732_v61 = vadd.f32 %v1731_v57, %v7474_v58  ;;  %v1734_v48 = vsub.f32 1.0, %v5194_v17  ;;  %v1736_v47 = vmul.f32 %v5194_v17, %v6343_v21  ;;  %v5332_v21 = vld [vmem:[%s7419_s3 + $0x18] sm:$0xff]  ;;  %v2134_v17 = vld [vmem:[#allocation10 + $0xa0] sm:$0xff] }
 0x76f   :  { %v2137_v57 = vld [vmem:[#allocation10 + $0xb8] sm:$0xff] }
 0x770   :  { %5195 = vtanh.f32 %v1732_v61  ;;  %v2133_v58 = vld [vmem:[#allocation10 + $0x98] sm:$0xff]  ;;  %v2132_v61 = vld [vmem:[#allocation10 + $0x90] sm:$0xff] }
 0x77d   :  { %v5196_v62 = vpop.eup %5195 }
 0x77e   :  { %v1735_v54 = vmul.f32 %v5196_v62, %v1734_v48  ;;  %v2130_v48 = vld [vmem:[#allocation10 + $0x80] sm:$0xff]  ;;  %v2129_v62 = vld [vmem:[#allocation10 + $0x78] sm:$0xff] }
 0x780   :  { %v6452_v28 = vadd.f32 %v1736_v47, %v1735_v54  ;;  %v2131_v54 = vld [vmem:[#allocation10 + $0x88] sm:$0xff] }
 0x781   :  { %v2127_v47 = vld [vmem:[#allocation10 + $0x68] sm:$0xff] }
 0x782   :  { %v1739_v38 = vsel %vm327_vm13, %v6452_v28, %v1738_v55  ;;  %v1742_v39 = vsel %vm327_vm13, %v1741_v31, %v6452_v28  ;;  %4406 = vmatmul.mubr.msk.f32.vlgmr.msra.gmra.mxu1 %vm118_vm11, %v6452_v28  ;;  %4873 = vmatmul.mubr.msk.f32.vlgmr.msra.gmra.mxu0 %vm118_vm11, %v6452_v28  ;;  %v2128_v55 = vld [vmem:[#allocation10 + $0x70] sm:$0xff] }
 0x783   :  { %1740 = vst.msk [vmem:[#allocation2 + $0x28] sm:$0xff] %vm118_vm11, %v1739_v38  ;;  %1743 = vst.msk [vmem:[#allocation2 + $0x10] sm:$0xff] %vm118_vm11, %v1742_v39  ;;  %1954 = vmatpush1.msra.mxu1 %v6360_v59  ;;  %4876 = vmatpush3.msra.mxu0 %v6366_v32  ;;  %v2124_v31 = vld [vmem:[#allocation10 + $0x50] sm:$0xff]  ;;  %v2123_v38 = vld [vmem:[#allocation10 + $0x48] sm:$0xff] }
 0x784   :  { %1955 = vmatprep.subr.mxu1 %v6372_v46  ;;  %4877 = vmatprep.subr.mxu0 %v7464_v16  ;;  %v2125_v39 = vld [vmem:[#allocation10 + $0x58] sm:$0xff] }
 0x785   :  { %1956 = vmatpush1.msra.mxu1 %v6379_v18  ;;  %4878 = vmatpush3.msra.mxu0 %v6385_v20 }
 0x786   :  { %1957 = vmatprep.subr.mxu1 %v6391_v49  ;;  %4879 = vmatprep.subr.mxu0 %v7464_v16 }
 0x787   :  { %1958 = vmatpush1.msra.mxu1 %v6398_v51  ;;  %4880 = vmatpush3.msra.mxu0 %v5323_v45  ;;  %v7475_v51 = vsel %vm6001_vm14, %v6046_v30, %v5944_v37  ;;  %v2121_v45 = vld [vmem:[#allocation10 + $0x38] sm:$0xff] }
 0x788   :  { %1959 = vmatprep.subr.mxu1 %v6405_v52  ;;  %4881 = vmatprep.subr.mxu0 %v7464_v16 }
 0x789   :  { %1960 = vmatpush1.msra.mxu1 %v6412_v53  ;;  %4882 = vmatpush3.msra.mxu0 %v5324_v34  ;;  %v2120_v34 = vld [vmem:[#allocation10 + $0x30] sm:$0xff] }
 0x78a   :  { %1961 = vmatprep.subr.mxu1 %v5325_v60  ;;  %4883 = vmatprep.subr.mxu0 %v7464_v16  ;;  %v2122_v60 = vld [vmem:[#allocation10 + $0x40] sm:$0xff] }
 0x78b   :  { %1962 = vmatpush1.msra.mxu1 %v5326_v26  ;;  %4884 = vmatpush3.msra.mxu0 %v5327_v36  ;;  %v2118_v26 = vld [vmem:[#allocation10 + $0x20] sm:$0xff]  ;;  %v2117_v36 = vld [vmem:[#allocation10 + $0x18] sm:$0xff] }
 0x78c   :  { %1963 = vmatprep.subr.mxu1 %v5328_v19  ;;  %4885 = vmatprep.subr.mxu0 %v7464_v16  ;;  %v2119_v19 = vld [vmem:[#allocation10 + $0x28] sm:$0xff] }
 0x78d   :  { %1964 = vmatpush1.msra.mxu1 %v5329_v1  ;;  %4886 = vmatpush3.msra.mxu0 %v5330_v22  ;;  %v2115_v1 = vld [vmem:[#allocation10 + $0x8] sm:$0xff]  ;;  %v2114_v22 = vld [vmem:[#allocation10] sm:$0xff] }
 0x78e   :  { %1965 = vmatprep.subr.mxu1 %v5331_v0  ;;  %4887 = vmatprep.subr.mxu0 %v7464_v16  ;;  %v2116_v0 = vld [vmem:[#allocation10 + $0x10] sm:$0xff] }
 0x78f   :  { %1966 = vmatpush1.msra.mxu1 %v5332_v21  ;;  %4888 = vmatpush3.msra.mxu0 %v5333_v50  ;;  %v6556_v21 = vld [vmem:[#allocation12 + $0xb0] sm:$0xff] }
 0x790   :  { %1967 = vmatprep.subr.mxu1 %v5334_v23  ;;  %4889 = vmatprep.subr.mxu0 %v7464_v16 }
 0x791   :  { %1968 = vmatpush1.msra.mxu1 %v5335_v29  ;;  %2001 = vmatprep.mubr.f32.mxu1 %v7464_v16 }
 0x792   :  { %4890 = vmatpush3.msra.mxu0 %v5336_v35  ;;  %4891 = vmatprep.mubr.msk.f32.mxu0 %vm5498_vm10, %v7464_v16 }
 0x793   :  { %2195 = vmatprep.subr.mxu1 %v2136_v40  ;;  %4894 = vmatprep.subr.mxu0 %v2137_v57  ;;  %v6590_v40 = vld [vmem:[#allocation12 + $0xb8] sm:$0xff] }
 0x842   :  { %v1822_v59 = vpop.f32.mrf.mxu1  ;;  %v1893_v32 = vpop.f32.mrf.mxu0 }
 0x843   :  { %v1897_v46 = vadd.f32 %v1822_v59, %v6054_v41  ;;  %v1911_v6 = vadd.f32 %v6088_v24, %v1893_v32 }
 0x844   :  { %v4874_v18 = vpop.f32.mrf.mxu0  ;;  %v1824_v49 = vpop.f32.mrf.mxu1 }
 0x845   :  { %v4408_v20 = vmul.f32 -1.442695, %v1897_v46  ;;  %v1904_v52 = vadd.f32 %v1824_v49, %v7475_v51  ;;  %v7477_v46 = vld [vmem:[#allocation21_spill] sm:$0xff]  ;;  %v7478_v18 = vld [vmem:[#allocation20_spill] sm:$0xff] }
 0x847   :  { %5197 = vpow2.f32 %v4408_v20  ;;  %v4409_v53 = vmul.f32 -1.442695, %v1904_v52  ;;  %v7479_v20 = vsel %vm6001_vm14, %v7477_v46, %v7478_v18 }
 0x849   :  { %5199 = vpow2.f32 %v4409_v53 }
 0x854   :  { %v5198_v63 = vpop.eup %5197 }
 0x855   :  { %v1901_v3 = vadd.f32 1.0, %v5198_v63 }
 0x856   :  { %v5200_v4 = vpop.eup %5199 }
 0x857   :  { %5201 = vrcp.f32 %v1901_v3  ;;  %v1908_v5 = vadd.f32 1.0, %v5200_v4 }
 0x859   :  { %5203 = vrcp.f32 %v1908_v5 }
 0x864   :  { %v5202_v41 = vpop.eup %5201 }
 0x865   :  { %v1912_v7 = vmul.f32 %v5202_v41, %v1911_v6  ;;  %v7480_v6 = vld [vmem:[#allocation19_spill] sm:$0xff] }
 0x866   :  { %v5204_v37 = vpop.eup %5203  ;;  %v7481_v41 = vsel %vm5949_vm12, %v5980_v33, %v7480_v6 }
 0x867   :  { %v1913_v9 = vadd.f32 %v1912_v7, %v7476_v8  ;;  %v1915_v30 = vsub.f32 1.0, %v5204_v37  ;;  %v1917_v12 = vmul.f32 %v5204_v37, %v6452_v28  ;;  %v2126_v28 = vld [vmem:[#allocation10 + $0x60] sm:$0xff] }
 0x869   :  { %5205 = vtanh.f32 %v1913_v9 }
 0x876   :  { %v5206_v10 = vpop.eup %5205 }
 0x877   :  { %v1916_v11 = vmul.f32 %v5206_v10, %v1915_v30 }
 0x879   :  { %v6540_v13 = vadd.f32 %v1917_v12, %v1916_v11  ;;  %v2100_v12 = vld [vmem:[#allocation2 + $0x38] sm:$0xff] }
 0x87b   :  { %v1920_v56 = vsel %vm327_vm13, %v6540_v13, %v1919_v14  ;;  %v1923_v27 = vsel %vm327_vm13, %v1922_v15, %v6540_v13  ;;  %4410 = vmatmul.mubr.msk.f32.vlgmr.msra.gmra.mxu1 %vm118_vm11, %v6540_v13  ;;  %4892 = vmatmul.mubr.msk.f32.vlgmr.msra.gmra.mxu0 %vm118_vm11, %v6540_v13  ;;  %v2103_v14 = vld [vmem:[#allocation2] sm:$0xff] }
 0x87c   :  { %1921 = vst.msk [vmem:[#allocation2 + $0x30] sm:$0xff] %vm118_vm11, %v1920_v56  ;;  %1924 = vst.msk [vmem:[#allocation2 + $0x8] sm:$0xff] %vm118_vm11, %v1923_v27  ;;  %2243 = vmatprep.mubr.f32.mxu1 %v7464_v16  ;;  %2196 = vmatpush1.msra.mxu1 %v2135_v44  ;;  %v6580_v56 = vld [vmem:[#allocation12 + $0xa8] sm:$0xff]  ;;  %v6588_v27 = vld [vmem:[#allocation12 + $0x98] sm:$0xff] }
 0x87d   :  { %2197 = vmatprep.subr.mxu1 %v2133_v58  ;;  %4895 = vmatpush3.msra.mxu0 %v2137_v57  ;;  %v6594_v44 = vld [vmem:[#allocation2 + $0x10] sm:$0xff]  ;;  %v6603_v58 = vld [vmem:[#allocation12 + $0x80] sm:$0xff] }
 0x87e   :  { %2198 = vmatpush1.msra.mxu1 %v2132_v61  ;;  %4896 = vmatprep.subr.mxu0 %v2134_v17  ;;  %v6597_v57 = vld [vmem:[#allocation12 + $0x90] sm:$0xff] }
 0x87f   :  { %2199 = vmatprep.subr.mxu1 %v2130_v48  ;;  %4897 = vmatpush3.msra.mxu0 %v2134_v17  ;;  %v6608_v61 = vld [vmem:[#allocation2 + $0x18] sm:$0xff]  ;;  %v6615_v48 = vld [vmem:[#allocation2 + $0x20] sm:$0xff] }
 0x880   :  { %2200 = vmatpush1.msra.mxu1 %v2129_v62  ;;  %4898 = vmatprep.subr.mxu0 %v2131_v54  ;;  %7482 = vst [vmem:[#allocation21_spill] sm:$0xff] %v6608_v61  ;;  %v6611_v17 = vld [vmem:[#allocation12 + $0x78] sm:$0xff]  ;;  %7483 = vst [vmem:[#allocation20_spill] sm:$0xff] %v6615_v48  ;;  %v6618_v62 = vld [vmem:[#allocation12 + $0x68] sm:$0xff] }
 0x881   :  { %2201 = vmatprep.subr.mxu1 %v2127_v47  ;;  %4899 = vmatpush3.msra.mxu0 %v2131_v54  ;;  %v6624_v54 = vld [vmem:[#allocation12 + $0x60] sm:$0xff] }
 0x882   :  { %2202 = vmatpush1.msra.mxu1 %v2126_v28  ;;  %4900 = vmatprep.subr.mxu0 %v2128_v55  ;;  %v6629_v47 = vld [vmem:[#allocation2 + $0x28] sm:$0xff]  ;;  %v6632_v28 = vld [vmem:[#allocation12 + $0x50] sm:$0xff] }
 0x883   :  { %2203 = vmatprep.subr.mxu1 %v2124_v31  ;;  %4901 = vmatpush3.msra.mxu0 %v2128_v55  ;;  %v6634_v55 = vld [vmem:[#allocation12 + $0xa0] sm:$0xff]  ;;  %v6638_v31 = vld [vmem:[#allocation2 + $0x30] sm:$0xff] }
 0x884   :  { %2204 = vmatpush1.msra.mxu1 %v2123_v38  ;;  %4902 = vmatprep.subr.mxu0 %v2125_v39  ;;  %v6641_v38 = vld [vmem:[#allocation12 + $0x48] sm:$0xff] }
 0x885   :  { %2205 = vmatprep.subr.mxu1 %v2121_v45  ;;  %4903 = vmatpush3.msra.mxu0 %v2125_v39  ;;  %v6647_v39 = vld [vmem:[#allocation12 + $0x38] sm:$0xff] }
 0x886   :  { %2206 = vmatpush1.msra.mxu1 %v2120_v34  ;;  %4904 = vmatprep.subr.mxu0 %v2122_v60  ;;  %v6655_v34 = vld [vmem:[#allocation12 + $0x30] sm:$0xff] }
 0x887   :  { %2207 = vmatprep.subr.mxu1 %v2118_v26  ;;  %4905 = vmatpush3.msra.mxu0 %v2122_v60  ;;  %v6660_v60 = vld [vmem:[#allocation12 + $0x20] sm:$0xff]  ;;  %v6663_v26 = vld [vmem:[#allocation12 + $0x18] sm:$0xff] }
 0x888   :  { %2208 = vmatpush1.msra.mxu1 %v2117_v36  ;;  %4906 = vmatprep.subr.mxu0 %v2119_v19  ;;  %v6667_v36 = vld [vmem:[#allocation12 + $0x8] sm:$0xff] }
 0x889   :  { %2209 = vmatprep.subr.mxu1 %v2115_v1  ;;  %4907 = vmatpush3.msra.mxu0 %v2119_v19  ;;  %v6670_v19 = vld [vmem:[#allocation12 + $0x88] sm:$0xff]  ;;  %v6675_v1 = vld [vmem:[#allocation12] sm:$0xff] }
 0x88a   :  { %2210 = vmatpush1.msra.mxu1 %v2114_v22  ;;  %4908 = vmatprep.subr.mxu0 %v2116_v0  ;;  %v6681_v22 = vld [vmem:[#allocation12 + $0x70] sm:$0xff] }
 0x88b   :  { %4909 = vmatpush3.msra.mxu0 %v2116_v0  ;;  %4922 = vmatprep.subr.mxu1 %v7464_v16  ;;  %v6688_v0 = vld [vmem:[#allocation12 + $0x58] sm:$0xff] }
 0x88c   :  { %2477 = vmatprep.subr.mxu0 %v6556_v21 }
 0x93b   :  { %v2003_v50 = vpop.f32.mrf.mxu1  ;;  %v2074_v23 = vpop.f32.mrf.mxu0 }
 0x93c   :  { %v2078_v29 = vadd.f32 %v2003_v50, %v6078_v43  ;;  %v2092_v4 = vadd.f32 %v6088_v24, %v2074_v23  ;;  %v6693_v50 = vld [vmem:[#allocation12 + $0x40] sm:$0xff]  ;;  %v6701_v23 = vld [vmem:[#allocation12 + $0x28] sm:$0xff] }
 0x93d   :  { %v4893_v35 = vpop.f32.mrf.mxu0  ;;  %v2005_v32 = vpop.f32.mrf.mxu1 }
 0x93e   :  { %v4412_v59 = vmul.f32 -1.442695, %v2078_v29  ;;  %v2085_v49 = vadd.f32 %v2005_v32, %v7479_v20  ;;  %v6706_v29 = vld [vmem:[#allocation12 + $0x10] sm:$0xff]  ;;  %v2138_v35 = vld [vmem:[%s7424_s8] sm:$0x7] }
 0x940   :  { %5207 = vpow2.f32 %v4412_v59  ;;  %v4413_v51 = vmul.f32 -1.442695, %v2085_v49  ;;  %v7484_v59 = vld [vmem:[#allocation18_spill] sm:$0xff] }
 0x941   :  { %v7485_v32 = vsub.s32 2, %v7484_v59 }
 0x942   :  { %5209 = vpow2.f32 %v4413_v51 }
 0x943   :  { %v2151_v46 = vrot.slane %v2138_v35, %v7485_v32 }
 0x94d   :  { %v5208_v52 = vpop.eup %5207 }
 0x94e   :  { %v2082_v53 = vadd.f32 1.0, %v5208_v52  ;;  %v7486_v52 = vsub.s32 0, %v7484_v59 }
 0x94f   :  { %v5210_v63 = vpop.eup %5209 }
 0x950   :  { %5211 = vrcp.f32 %v2082_v53  ;;  %v2089_v3 = vadd.f32 1.0, %v5210_v63  ;;  %v2143_v53 = vrot.slane %v2138_v35, %v7486_v52 }
 0x952   :  { %5213 = vrcp.f32 %v2089_v3 }
 0x95d   :  { %v5212_v43 = vpop.eup %5211 }
 0x95e   :  { %v2093_v5 = vmul.f32 %v5212_v43, %v2092_v4  ;;  %v7487_v4 = vsub.s32 1, %v7484_v59 }
 0x95f   :  { %v5214_v8 = vpop.eup %5213 }
 0x960   :  { %v2094_v7 = vadd.f32 %v2093_v5, %v7481_v41  ;;  %v2096_v9 = vsub.f32 1.0, %v5214_v8  ;;  %v2098_v10 = vmul.f32 %v5214_v8, %v6540_v13  ;;  %v6586_v13 = vld [vmem:[#allocation2 + $0x8] sm:$0xff]  ;;  %v6764_v43 = vrot.slane %v2138_v35, %v7487_v4 }
 0x962   :  { %5215 = vtanh.f32 %v2094_v7 }
 0x96f   :  { %v5216_v37 = vpop.eup %5215 }
 0x970   :  { %v2097_v30 = vmul.f32 %v5216_v37, %v2096_v9 }
 0x972   :  { %v2099_v11 = vadd.f32 %v2098_v10, %v2097_v30 }
 0x974   :  { %v2101_v24 = vsel %vm327_vm13, %v2099_v11, %v2100_v12  ;;  %v2104_v15 = vsel %vm327_vm13, %v2103_v14, %v2099_v11 }
 0x975   :  { %2102 = vst.msk [vmem:[#allocation2 + $0x38] sm:$0xff] %vm118_vm11, %v2101_v24  ;;  %2105 = vst.msk [vmem:[#allocation2] sm:$0xff] %vm118_vm11, %v2104_v15 }
 0x97c   :  { %v6578_v33 = vld [vmem:[#allocation2] sm:$0xff]  ;;  %v6652_v45 = vld [vmem:[#allocation2 + $0x38] sm:$0xff] }
 0x97d   :  { %4414 = vmatmul.mubr.msk.f32.vlgmr.msra.gmra.mxu1 %vm118_vm11, %v6578_v33  ;;  %4910 = vmatprep.mubr.msk.f32.mxu0 %vm118_vm11, %v6578_v33 }
 0x97e   :  { %4911 = vmatmul.mubr.msk.f32.vlgmr.msra.gmra.mxu0 %vm118_vm11, %v6586_v13  ;;  %2249 = vmatprep.mubr.f32.mxu1 %v7464_v16 }
 0x97f   :  { %4913 = vmatprep.mubr.msk.f32.mxu0 %vm118_vm11, %v6594_v44  ;;  %2478 = vmatpush1.msra.mxu0 %v6580_v56 }
 0x980   :  { %2479 = vmatprep.subr.mxu0 %v6588_v27  ;;  %4923 = vmatpush3.msra.mxu1 %v6590_v40 }
 0x981   :  { %4415 = vmatmul.mubr.msk.f32.gmra.mxu1 %vm118_vm11, %v6586_v13  ;;  %2480 = vmatpush1.msra.mxu0 %v6597_v57 }
 0x982   :  { %4914 = vmatmul.mubr.msk.f32.gmra.mxu0 %vm118_vm11, %v6608_v61  ;;  %2255 = vmatprep.mubr.f32.mxu1 %v7464_v16 }
 0x983   :  { %4916 = vmatprep.mubr.msk.f32.mxu0 %vm118_vm11, %v6615_v48  ;;  %2481 = vmatprep.subr.mxu0 %v6603_v58 }
 0x984   :  { %2482 = vmatpush1.msra.mxu0 %v6611_v17  ;;  %4924 = vmatprep.subr.mxu1 %v7464_v16 }
 0x985   :  { %4416 = vmatmul.mubr.msk.f32.gmra.mxu1 %vm118_vm11, %v6594_v44  ;;  %2483 = vmatprep.subr.mxu0 %v6618_v62 }
 0x986   :  { %4917 = vmatmul.mubr.msk.f32.gmra.mxu0 %vm118_vm11, %v6629_v47  ;;  %2261 = vmatprep.mubr.f32.mxu1 %v7464_v16 }
 0x987   :  { %4919 = vmatprep.mubr.msk.f32.mxu0 %vm118_vm11, %v6638_v31  ;;  %2484 = vmatpush1.msra.mxu0 %v6624_v54 }
 0x988   :  { %2485 = vmatprep.subr.mxu0 %v6632_v28  ;;  %4925 = vmatpush3.msra.mxu1 %v6634_v55 }
 0x989   :  { %4417 = vmatmul.mubr.msk.f32.gmra.mxu1 %vm118_vm11, %v6608_v61  ;;  %2486 = vmatpush1.msra.mxu0 %v6641_v38 }
 0x98a   :  { %4920 = vmatmul.mubr.msk.f32.gmra.mxu0 %vm118_vm11, %v6652_v45  ;;  %2267 = vmatprep.mubr.f32.mxu1 %v7464_v16 }
 0x98b   :  { %2487 = vmatprep.subr.mxu0 %v6647_v39  ;;  %2525 = vmatprep.mubr.f32.mxu0 %v7464_v16 }
 0x98c   :  { %2488 = vmatpush1.msra.mxu0 %v6655_v34  ;;  %4926 = vmatprep.subr.mxu1 %v7464_v16 }
 0x98d   :  { %4418 = vmatmul.mubr.msk.f32.gmra.mxu1 %vm118_vm11, %v6615_v48  ;;  %2489 = vmatprep.subr.mxu0 %v6660_v60 }
 0x98e   :  { %2273 = vmatprep.mubr.f32.mxu1 %v7464_v16  ;;  %2490 = vmatpush1.msra.mxu0 %v6663_v26 }
 0x98f   :  { %2491 = vmatprep.subr.mxu0 %v6667_v36  ;;  %4927 = vmatpush3.msra.mxu1 %v6670_v19 }
 0x990   :  { %2492 = vmatpush1.msra.mxu0 %v6675_v1  ;;  %4928 = vmatprep.subr.mxu1 %v7464_v16 }
 0x991   :  { %4419 = vmatmul.mubr.msk.f32.gmra.mxu1 %vm118_vm11, %v6629_v47  ;;  %2526 = vmatmul.mubr.f32.vlgmr.msra.gmra.mxu0 %v7464_v16 }
 0x992   :  { %2279 = vmatprep.mubr.f32.mxu1 %v7464_v16  ;;  %4929 = vmatpush3.msra.mxu1 %v6681_v22 }
 0x993   :  { %4930 = vmatprep.subr.mxu1 %v7464_v16  ;;  %2658 = vmatprep.subr.mxu0 %v6556_v21 }
 0x994   :  { %4931 = vmatpush3.msra.mxu1 %v6688_v0  ;;  %2659 = vmatpush1.msra.mxu0 %v6580_v56 }
 0x995   :  { %4420 = vmatmul.mubr.msk.f32.gmra.mxu1 %vm118_vm11, %v6638_v31  ;;  %4932 = vmatprep.subr.mxu1 %v7464_v16 }
 0x996   :  { %2285 = vmatprep.mubr.f32.mxu1 %v7464_v16  ;;  %4933 = vmatpush3.msra.mxu1 %v6693_v50 }
 0x997   :  { %4934 = vmatprep.subr.mxu1 %v7464_v16  ;;  %2660 = vmatprep.subr.mxu0 %v6588_v27 }
 0x998   :  { %4935 = vmatpush3.msra.mxu1 %v6701_v23  ;;  %2661 = vmatpush1.msra.mxu0 %v6597_v57 }
 0x999   :  { %4421 = vmatmul.mubr.msk.f32.gmra.mxu1 %vm118_vm11, %v6652_v45  ;;  %4936 = vmatprep.subr.mxu1 %v7464_v16 }
 0x99a   :  { %4937 = vmatpush3.msra.mxu1 %v6706_v29  ;;  %4938 = vmatprep.mubr.msk.f32.mxu1 %vm5498_vm10, %v7464_v16 }
 0x99b   :  { %4941 = vmatprep.subr.mxu1 %v7464_v16  ;;  %2662 = vmatprep.subr.mxu0 %v6603_v58 }
 0x99c   :  { %2663 = vmatpush1.msra.mxu0 %v6611_v17  ;;  %2706 = vmatprep.mubr.f32.mxu0 %v7464_v16 }
 0x99d   :  { %4939 = vmatmul.mubr.f32.vlgmr.msra.gmra.mxu1 %v7464_v16  ;;  %2664 = vmatprep.subr.mxu0 %v6618_v62 }
 0x99e   :  { %4942 = vmatpush3.msra.mxu1 %v6590_v40  ;;  %2665 = vmatpush1.msra.mxu0 %v6624_v54 }
 0x99f   :  { %4943 = vmatprep.subr.mxu1 %v7464_v16  ;;  %2666 = vmatprep.subr.mxu0 %v6632_v28 }
 0x9a0   :  { %4944 = vmatpush3.msra.mxu1 %v6634_v55  ;;  %2667 = vmatpush1.msra.mxu0 %v6641_v38 }
 0x9a1   :  { %4945 = vmatprep.subr.mxu1 %v7464_v16  ;;  %2668 = vmatprep.subr.mxu0 %v6647_v39 }
 0x9a2   :  { %4946 = vmatpush3.msra.mxu1 %v6670_v19  ;;  %2669 = vmatpush1.msra.mxu0 %v6655_v34 }
 0x9a3   :  { %4947 = vmatprep.subr.mxu1 %v7464_v16  ;;  %2670 = vmatprep.subr.mxu0 %v6660_v60 }
 0x9a4   :  { %4948 = vmatpush3.msra.mxu1 %v6681_v22  ;;  %2671 = vmatpush1.msra.mxu0 %v6663_v26 }
 0x9a5   :  { %4949 = vmatprep.subr.mxu1 %v7464_v16  ;;  %2672 = vmatprep.subr.mxu0 %v6667_v36 }
 0x9a6   :  { %4950 = vmatpush3.msra.mxu1 %v6688_v0  ;;  %2673 = vmatpush1.msra.mxu0 %v6675_v1 }
 0x9a7   :  { %4951 = vmatprep.subr.mxu1 %v7464_v16  ;;  %4957 = vmatprep.mubr.msk.f32.mxu1 %vm5498_vm10, %v7464_v16 }
 0x9a8   :  { %4952 = vmatpush3.msra.mxu1 %v6693_v50  ;;  %2839 = vmatprep.subr.mxu0 %v6556_v21 }
 0x9a9   :  { %4953 = vmatprep.subr.mxu1 %v7464_v16 }
 0x9aa   :  { %4954 = vmatpush3.msra.mxu1 %v6701_v23 }
 0x9ab   :  { %4955 = vmatprep.subr.mxu1 %v7464_v16 }
 0x9ac   :  { %4956 = vmatpush3.msra.mxu1 %v6706_v29 }
 0x9ad   :  { %4960 = vmatprep.subr.mxu1 %v7464_v16 }
 0xa3d   :  { %v2245_v18 = vpop.f32.mrf.mxu1 }
 0xa3e   :  { %v4912_v20 = vpop.f32.mrf.mxu0 }
 0xa3f   :  { %v6756_v49 = vadd.f32 %v4912_v20, %v2151_v46  ;;  %v6758_v51 = vpop.f32.mrf.mxu1 }
 0xa40   :  { %v2358_v63 = vpop.f32.mrf.mxu0 }
 0xa41   :  { %v2251_v3 = vpop.f32.mrf.mxu1  ;;  %v6788_v4 = vadd.f32 %v2358_v63, %v2151_v46 }
 0xa42   :  { %v2252_v5 = vadd.f32 %v2251_v3, %v2143_v53  ;;  %v4915_v6 = vpop.f32.mrf.mxu0 }
 0xa43   :  { %v6766_v41 = vadd.f32 %v4915_v6, %v2151_v46  ;;  %v2253_v7 = vpop.f32.mrf.mxu1 }
 0xa44   :  { %v6769_v8 = vadd.f32 %v2253_v7, %v6764_v43  ;;  %v2368_v9 = vpop.f32.mrf.mxu0 }
 0xa45   :  { %7488 = vst [vmem:[#allocation19_spill] sm:$0xff] %v6766_v41  ;;  %v6771_v37 = vadd.f32 %v2368_v9, %v2151_v46  ;;  %v2257_v30 = vpop.f32.mrf.mxu1 }
 0xa46   :  { %v2258_v10 = vadd.f32 %v2257_v30, %v2143_v53  ;;  %v4918_v11 = vpop.f32.mrf.mxu0 }
 0xa47   :  { %v6773_v12 = vadd.f32 %v4918_v11, %v2151_v46  ;;  %v2259_v14 = vpop.f32.mrf.mxu1 }
 0xa48   :  { %v6776_v24 = vadd.f32 %v2259_v14, %v6764_v43  ;;  %v2378_v15 = vpop.f32.mrf.mxu0 }
 0xa49   :  { %v6786_v32 = vadd.f32 %v2378_v15, %v2151_v46  ;;  %v2263_v20 = vpop.f32.mrf.mxu1 }
 0xa4a   :  { %v2264_v52 = vadd.f32 %v2263_v20, %v2143_v53  ;;  %v4921_v3 = vpop.f32.mrf.mxu0 }
 0xa4b   :  { %7489 = vst [vmem:[#allocation18_spill] sm:$0xff] %v6786_v32  ;;  %v6798_v9 = vadd.f32 %v4921_v3, %v2151_v46  ;;  %v2265_v30 = vpop.f32.mrf.mxu1  ;;  %v6876_v32 = vadd.f32 %v6758_v51, %v6764_v43 }
 0xa4c   :  { %v6801_v11 = vadd.f32 %v2265_v30, %v6764_v43  ;;  %v2388_v14 = vpop.f32.mrf.mxu0 }
 0xa4d   :  { %v6807_v15 = vadd.f32 %v2388_v14, %v2151_v46  ;;  %v2269_v20 = vpop.f32.mrf.mxu1  ;;  %7494 = vst [vmem:[#allocation26_spill] sm:$0xff] %v6876_v32  ;;  %v7519_v2 = vsel %vm5949_vm12, %v6798_v9, %v6788_v4 }
 0xa4e   :  { %v2270_v59 = vadd.f32 %v2269_v20, %v2143_v53 }
 0xa4f   :  { %v2271_v7 = vpop.f32.mrf.mxu1 }
 0xa50   :  { %v6818_v6 = vadd.f32 %v2271_v7, %v6764_v43  ;;  %v6822_v46 = vsel %vm327_vm13, %v2264_v52, %v2270_v59  ;;  %v6826_v14 = vsel %vm327_vm13, %v2270_v59, %v2264_v52 }
 0xa51   :  { %7491 = vst [vmem:[#allocation23_spill] sm:$0xff] %v6826_v14  ;;  %v2275_v20 = vpop.f32.mrf.mxu1 }
 0xa52   :  { %7490 = vst [vmem:[#allocation22_spill] sm:$0xff] %v6818_v6  ;;  %v2276_v63 = vadd.f32 %v2275_v20, %v2143_v53 }
 0xa53   :  { %v2277_v30 = vpop.f32.mrf.mxu1 }
 0xa54   :  { %v6837_v3 = vadd.f32 %v2277_v30, %v6764_v43  ;;  %v6841_v59 = vsel %vm327_vm13, %v2258_v10, %v2276_v63  ;;  %v6845_v52 = vsel %vm327_vm13, %v2276_v63, %v2258_v10 }
 0xa55   :  { %7492 = vst [vmem:[#allocation24_spill] sm:$0xff] %v6845_v52  ;;  %v2281_v20 = vpop.f32.mrf.mxu1  ;;  %v2246_v52 = vadd.f32 %v2245_v18, %v2143_v53  ;;  %v2527_v18 = vpop.f32.mrf.mxu0 }
 0xa56   :  { %v2282_v14 = vadd.f32 %v2281_v20, %v2143_v53 }
 0xa57   :  { %v2283_v7 = vpop.f32.mrf.mxu1 }
 0xa58   :  { %v6856_v48 = vadd.f32 %v2283_v7, %v6764_v43  ;;  %v6860_v10 = vsel %vm327_vm13, %v2252_v5, %v2282_v14  ;;  %v6864_v63 = vsel %vm327_vm13, %v2282_v14, %v2252_v5 }
 0xa59   :  { %7493 = vst [vmem:[#allocation25_spill] sm:$0xff] %v6864_v63  ;;  %v2287_v20 = vpop.f32.mrf.mxu1 }
 0xa5a   :  { %v2288_v35 = vadd.f32 %v2287_v20, %v2143_v53 }
 0xa5b   :  { %v2289_v61 = vpop.f32.mrf.mxu1 }
 0xa5c   :  { %v2458_v5 = vsel %vm327_vm13, %v2246_v52, %v2288_v35  ;;  %v6881_v53 = vadd.f32 %v2289_v61, %v6764_v43  ;;  %v6885_v14 = vsel %vm327_vm13, %v2288_v35, %v2246_v52  ;;  %v2529_v61 = vpop.f32.mrf.mxu0 }
 0xa5d   :  { %v2602_v20 = vadd.f32 %v2527_v18, %v2458_v5  ;;  %v2598_v30 = vpop.f32.mrf.mxu1  ;;  %v6898_v18 = vld [vmem:[%s7425_s9] ss:$0 sm:$0xff] }
 0xa5e   :  { %7495 = vst [vmem:[#allocation27_spill] sm:$0xff] %v6881_v53  ;;  %v2459_v41 = vsel %vm6001_vm14, %v6876_v32, %v6881_v53 }
 0xa5f   :  { %v4431_v51 = vmul.f32 -1.442695, %v2602_v20  ;;  %v4940_v63 = vpop.f32.mrf.mxu1  ;;  %v2609_v43 = vadd.f32 %v2529_v61, %v2459_v41  ;;  %v2616_v20 = vadd.f32 %v6898_v18, %v2598_v30  ;;  %v2460_v41 = vsel %vm5949_vm12, %v6788_v4, %v6798_v9 }
 0xa61   :  { %5217 = vpow2.f32 %v4431_v51  ;;  %v4432_v6 = vmul.f32 -1.442695, %v2609_v43 }
 0xa63   :  { %5219 = vpow2.f32 %v4432_v6 }
 0xa6e   :  { %v5218_v35 = vpop.eup %5217 }
 0xa6f   :  { %v2606_v52 = vadd.f32 1.0, %v5218_v35 }
 0xa70   :  { %v5220_v5 = vpop.eup %5219 }
 0xa71   :  { %5221 = vrcp.f32 %v2606_v52  ;;  %v2613_v63 = vadd.f32 1.0, %v5220_v5 }
 0xa73   :  { %5223 = vrcp.f32 %v2613_v63 }
 0xa7e   :  { %v5222_v7 = vpop.eup %5221 }
 0xa7f   :  { %v2617_v32 = vmul.f32 %v5222_v7, %v2616_v20 }
 0xa80   :  { %v5224_v51 = vpop.eup %5223 }
 0xa81   :  { %v2618_v6 = vadd.f32 %v2617_v32, %v2460_v41  ;;  %v2620_v61 = vsub.f32 1.0, %v5224_v51  ;;  %v2622_v52 = vmul.f32 0.0, %v5224_v51  ;;  %v7496_v41 = vsel %vm6001_vm14, %v6769_v8, %v6856_v48 }
 0xa83   :  { %5225 = vtanh.f32 %v2618_v6 }
 0xa90   :  { %v5226_v43 = vpop.eup %5225 }
 0xa91   :  { %v2621_v35 = vmul.f32 %v5226_v43, %v2620_v61 }
 0xa93   :  { %v6905_v53 = vadd.f32 %v2622_v52, %v2621_v35 }
 0xa95   :  { %v2625_v30 = vsel %vm327_vm13, %v6905_v53, %v6578_v33  ;;  %v2628_v7 = vsel %vm327_vm13, %v6652_v45, %v6905_v53  ;;  %4433 = vmatmul.mubr.msk.f32.vlgmr.msra.gmra.mxu0 %vm118_vm11, %v6905_v53  ;;  %4958 = vmatmul.mubr.msk.f32.vlgmr.msra.gmra.mxu1 %vm118_vm11, %v6905_v53 }
 0xa96   :  { %2626 = vst.msk [vmem:[#allocation2] sm:$0xff] %vm118_vm11, %v2625_v30  ;;  %2629 = vst.msk [vmem:[#allocation2 + $0x38] sm:$0xff] %vm118_vm11, %v2628_v7  ;;  %2840 = vmatpush1.msra.mxu0 %v6580_v56  ;;  %4961 = vmatpush3.msra.mxu1 %v6590_v40 }
 0xa97   :  { %2841 = vmatprep.subr.mxu0 %v6588_v27  ;;  %4962 = vmatprep.subr.mxu1 %v7464_v16 }
 0xa98   :  { %2842 = vmatpush1.msra.mxu0 %v6597_v57  ;;  %4963 = vmatpush3.msra.mxu1 %v6634_v55 }
 0xa99   :  { %2843 = vmatprep.subr.mxu0 %v6603_v58  ;;  %4964 = vmatprep.subr.mxu1 %v7464_v16 }
 0xa9a   :  { %2844 = vmatpush1.msra.mxu0 %v6611_v17  ;;  %4965 = vmatpush3.msra.mxu1 %v6670_v19 }
 0xa9b   :  { %2845 = vmatprep.subr.mxu0 %v6618_v62  ;;  %4966 = vmatprep.subr.mxu1 %v7464_v16 }
 0xa9c   :  { %2846 = vmatpush1.msra.mxu0 %v6624_v54  ;;  %4967 = vmatpush3.msra.mxu1 %v6681_v22 }
 0xa9d   :  { %2847 = vmatprep.subr.mxu0 %v6632_v28  ;;  %4968 = vmatprep.subr.mxu1 %v7464_v16 }
 0xa9e   :  { %2848 = vmatpush1.msra.mxu0 %v6641_v38  ;;  %4969 = vmatpush3.msra.mxu1 %v6688_v0 }
 0xa9f   :  { %2849 = vmatprep.subr.mxu0 %v6647_v39  ;;  %4970 = vmatprep.subr.mxu1 %v7464_v16 }
 0xaa0   :  { %2850 = vmatpush1.msra.mxu0 %v6655_v34  ;;  %4971 = vmatpush3.msra.mxu1 %v6693_v50 }
 0xaa1   :  { %2851 = vmatprep.subr.mxu0 %v6660_v60  ;;  %4972 = vmatprep.subr.mxu1 %v7464_v16 }
 0xaa2   :  { %2852 = vmatpush1.msra.mxu0 %v6663_v26  ;;  %4973 = vmatpush3.msra.mxu1 %v6701_v23 }
 0xaa3   :  { %2853 = vmatprep.subr.mxu0 %v6667_v36  ;;  %4974 = vmatprep.subr.mxu1 %v7464_v16 }
 0xaa4   :  { %2854 = vmatpush1.msra.mxu0 %v6675_v1  ;;  %2887 = vmatprep.mubr.f32.mxu0 %v7464_v16 }
 0xaa5   :  { %4975 = vmatpush3.msra.mxu1 %v6706_v29  ;;  %4976 = vmatprep.mubr.msk.f32.mxu1 %vm5498_vm10, %v7464_v16 }
 0xaa6   :  { %3020 = vmatprep.subr.mxu0 %v6556_v21  ;;  %4979 = vmatprep.subr.mxu1 %v7464_v16 }
 0xb55   :  { %v2708_v33 = vpop.f32.mrf.mxu0  ;;  %v2779_v45 = vpop.f32.mrf.mxu1 }
 0xb56   :  { %v2783_v32 = vadd.f32 %v2708_v33, %v6860_v10  ;;  %v2797_v30 = vadd.f32 %v6898_v18, %v2779_v45  ;;  %v7497_v33 = vsel %vm5949_vm12, %v6756_v49, %v6807_v15 }
 0xb57   :  { %v4959_v5 = vpop.f32.mrf.mxu1  ;;  %v2710_v20 = vpop.f32.mrf.mxu0 }
 0xb58   :  { %v4435_v63 = vmul.f32 -1.442695, %v2783_v32  ;;  %v2790_v6 = vadd.f32 %v2710_v20, %v7496_v41 }
 0xb5a   :  { %5227 = vpow2.f32 %v4435_v63  ;;  %v4436_v51 = vmul.f32 -1.442695, %v2790_v6 }
 0xb5c   :  { %5229 = vpow2.f32 %v4436_v51 }
 0xb67   :  { %v5228_v61 = vpop.eup %5227 }
 0xb68   :  { %v2787_v43 = vadd.f32 1.0, %v5228_v61 }
 0xb69   :  { %v5230_v35 = vpop.eup %5229 }
 0xb6a   :  { %5231 = vrcp.f32 %v2787_v43  ;;  %v2794_v52 = vadd.f32 1.0, %v5230_v35 }
 0xb6c   :  { %5233 = vrcp.f32 %v2794_v52 }
 0xb77   :  { %v5232_v10 = vpop.eup %5231 }
 0xb78   :  { %v2798_v7 = vmul.f32 %v5232_v10, %v2797_v30  ;;  %v7498_v30 = vsel %vm6001_vm14, %v6776_v24, %v6837_v3 }
 0xb79   :  { %v5234_v5 = vpop.eup %5233 }
 0xb7a   :  { %v2799_v32 = vadd.f32 %v2798_v7, %v7497_v33  ;;  %v2801_v63 = vsub.f32 1.0, %v5234_v5  ;;  %v2803_v6 = vmul.f32 %v5234_v5, %v6905_v53 }
 0xb7c   :  { %5235 = vtanh.f32 %v2799_v32 }
 0xb89   :  { %v5236_v20 = vpop.eup %5235 }
 0xb8a   :  { %v2802_v41 = vmul.f32 %v5236_v20, %v2801_v63 }
 0xb8c   :  { %v6969_v51 = vadd.f32 %v2803_v6, %v2802_v41  ;;  %v7499_v6 = vsel %vm5949_vm12, %v6771_v37, %v6773_v12 }
 0xb8e   :  { %v2806_v45 = vsel %vm327_vm13, %v6969_v51, %v6586_v13  ;;  %v2809_v61 = vsel %vm327_vm13, %v6638_v31, %v6969_v51  ;;  %4437 = vmatmul.mubr.msk.f32.vlgmr.msra.gmra.mxu0 %vm118_vm11, %v6969_v51  ;;  %4977 = vmatmul.mubr.msk.f32.vlgmr.msra.gmra.mxu1 %vm118_vm11, %v6969_v51 }
 0xb8f   :  { %2807 = vst.msk [vmem:[#allocation2 + $0x8] sm:$0xff] %vm118_vm11, %v2806_v45  ;;  %2810 = vst.msk [vmem:[#allocation2 + $0x30] sm:$0xff] %vm118_vm11, %v2809_v61  ;;  %3021 = vmatpush1.msra.mxu0 %v6580_v56  ;;  %4980 = vmatpush3.msra.mxu1 %v6590_v40 }
 0xb90   :  { %3022 = vmatprep.subr.mxu0 %v6588_v27  ;;  %4981 = vmatprep.subr.mxu1 %v7464_v16 }
 0xb91   :  { %3023 = vmatpush1.msra.mxu0 %v6597_v57  ;;  %4982 = vmatpush3.msra.mxu1 %v6634_v55 }
 0xb92   :  { %3024 = vmatprep.subr.mxu0 %v6603_v58  ;;  %4983 = vmatprep.subr.mxu1 %v7464_v16 }
 0xb93   :  { %3025 = vmatpush1.msra.mxu0 %v6611_v17  ;;  %4984 = vmatpush3.msra.mxu1 %v6670_v19 }
 0xb94   :  { %3026 = vmatprep.subr.mxu0 %v6618_v62  ;;  %4985 = vmatprep.subr.mxu1 %v7464_v16 }
 0xb95   :  { %3027 = vmatpush1.msra.mxu0 %v6624_v54  ;;  %4986 = vmatpush3.msra.mxu1 %v6681_v22 }
 0xb96   :  { %3028 = vmatprep.subr.mxu0 %v6632_v28  ;;  %4987 = vmatprep.subr.mxu1 %v7464_v16 }
 0xb97   :  { %3029 = vmatpush1.msra.mxu0 %v6641_v38  ;;  %4988 = vmatpush3.msra.mxu1 %v6688_v0 }
 0xb98   :  { %3030 = vmatprep.subr.mxu0 %v6647_v39  ;;  %4989 = vmatprep.subr.mxu1 %v7464_v16 }
 0xb99   :  { %3031 = vmatpush1.msra.mxu0 %v6655_v34  ;;  %4990 = vmatpush3.msra.mxu1 %v6693_v50 }
 0xb9a   :  { %3032 = vmatprep.subr.mxu0 %v6660_v60  ;;  %4991 = vmatprep.subr.mxu1 %v7464_v16 }
 0xb9b   :  { %3033 = vmatpush1.msra.mxu0 %v6663_v26  ;;  %4992 = vmatpush3.msra.mxu1 %v6701_v23 }
 0xb9c   :  { %3034 = vmatprep.subr.mxu0 %v6667_v36  ;;  %4993 = vmatprep.subr.mxu1 %v7464_v16 }
 0xb9d   :  { %3035 = vmatpush1.msra.mxu0 %v6675_v1  ;;  %3068 = vmatprep.mubr.f32.mxu0 %v7464_v16 }
 0xb9e   :  { %4994 = vmatpush3.msra.mxu1 %v6706_v29  ;;  %4995 = vmatprep.mubr.msk.f32.mxu1 %vm5498_vm10, %v7464_v16 }
 0xb9f   :  { %3201 = vmatprep.subr.mxu0 %v6556_v21  ;;  %4998 = vmatprep.subr.mxu1 %v7464_v16 }
 0xc4e   :  { %v2889_v13 = vpop.f32.mrf.mxu0  ;;  %v2960_v31 = vpop.f32.mrf.mxu1 }
 0xc4f   :  { %v2964_v53 = vadd.f32 %v2889_v13, %v6841_v59  ;;  %v2978_v20 = vadd.f32 %v6898_v18, %v2960_v31 }
 0xc50   :  { %v4978_v43 = vpop.f32.mrf.mxu1  ;;  %v2891_v52 = vpop.f32.mrf.mxu0 }
 0xc51   :  { %v4439_v35 = vmul.f32 -1.442695, %v2964_v53  ;;  %v2971_v10 = vadd.f32 %v2891_v52, %v7498_v30 }
 0xc53   :  { %5237 = vpow2.f32 %v4439_v35  ;;  %v4440_v7 = vmul.f32 -1.442695, %v2971_v10 }
 0xc55   :  { %5239 = vpow2.f32 %v4440_v7 }
 0xc60   :  { %v5238_v33 = vpop.eup %5237 }
 0xc61   :  { %v2968_v32 = vadd.f32 1.0, %v5238_v33 }
 0xc62   :  { %v5240_v5 = vpop.eup %5239 }
 0xc63   :  { %5241 = vrcp.f32 %v2968_v32  ;;  %v2975_v63 = vadd.f32 1.0, %v5240_v5  ;;  %v7500_v32 = vld [vmem:[#allocation22_spill] sm:$0xff] }
 0xc64   :  { %v7501_v5 = vsel %vm6001_vm14, %v6801_v11, %v7500_v32 }
 0xc65   :  { %5243 = vrcp.f32 %v2975_v63 }
 0xc70   :  { %v5242_v59 = vpop.eup %5241 }
 0xc71   :  { %v2979_v41 = vmul.f32 %v5242_v59, %v2978_v20 }
 0xc72   :  { %v5244_v61 = vpop.eup %5243 }
 0xc73   :  { %v2980_v45 = vadd.f32 %v2979_v41, %v7499_v6  ;;  %v2982_v13 = vsub.f32 1.0, %v5244_v61  ;;  %v2984_v35 = vmul.f32 %v5244_v61, %v6969_v51 }
 0xc75   :  { %5245 = vtanh.f32 %v2980_v45 }
 0xc82   :  { %v5246_v53 = vpop.eup %5245 }
 0xc83   :  { %v2983_v43 = vmul.f32 %v5246_v53, %v2982_v13  ;;  %v7502_v53 = vld [vmem:[#allocation19_spill] sm:$0xff] }
 0xc85   :  { %v7033_v52 = vadd.f32 %v2984_v35, %v2983_v43  ;;  %v7503_v43 = vld [vmem:[#allocation18_spill] sm:$0xff] }
 0xc86   :  { %v7504_v35 = vsel %vm5949_vm12, %v7502_v53, %v7503_v43 }
 0xc87   :  { %v2987_v31 = vsel %vm327_vm13, %v7033_v52, %v6594_v44  ;;  %v2990_v30 = vsel %vm327_vm13, %v6629_v47, %v7033_v52  ;;  %4441 = vmatmul.mubr.msk.f32.vlgmr.msra.gmra.mxu0 %vm118_vm11, %v7033_v52  ;;  %4996 = vmatmul.mubr.msk.f32.vlgmr.msra.gmra.mxu1 %vm118_vm11, %v7033_v52 }
 0xc88   :  { %2988 = vst.msk [vmem:[#allocation2 + $0x10] sm:$0xff] %vm118_vm11, %v2987_v31  ;;  %2991 = vst.msk [vmem:[#allocation2 + $0x28] sm:$0xff] %vm118_vm11, %v2990_v30  ;;  %3202 = vmatpush1.msra.mxu0 %v6580_v56  ;;  %4999 = vmatpush3.msra.mxu1 %v6590_v40 }
 0xc89   :  { %3203 = vmatprep.subr.mxu0 %v6588_v27  ;;  %5000 = vmatprep.subr.mxu1 %v7464_v16 }
 0xc8a   :  { %3204 = vmatpush1.msra.mxu0 %v6597_v57  ;;  %5001 = vmatpush3.msra.mxu1 %v6634_v55 }
 0xc8b   :  { %3205 = vmatprep.subr.mxu0 %v6603_v58  ;;  %5002 = vmatprep.subr.mxu1 %v7464_v16 }
 0xc8c   :  { %3206 = vmatpush1.msra.mxu0 %v6611_v17  ;;  %5003 = vmatpush3.msra.mxu1 %v6670_v19 }
 0xc8d   :  { %3207 = vmatprep.subr.mxu0 %v6618_v62  ;;  %5004 = vmatprep.subr.mxu1 %v7464_v16 }
 0xc8e   :  { %3208 = vmatpush1.msra.mxu0 %v6624_v54  ;;  %5005 = vmatpush3.msra.mxu1 %v6681_v22 }
 0xc8f   :  { %3209 = vmatprep.subr.mxu0 %v6632_v28  ;;  %5006 = vmatprep.subr.mxu1 %v7464_v16 }
 0xc90   :  { %3210 = vmatpush1.msra.mxu0 %v6641_v38  ;;  %5007 = vmatpush3.msra.mxu1 %v6688_v0 }
 0xc91   :  { %3211 = vmatprep.subr.mxu0 %v6647_v39  ;;  %5008 = vmatprep.subr.mxu1 %v7464_v16 }
 0xc92   :  { %3212 = vmatpush1.msra.mxu0 %v6655_v34  ;;  %5009 = vmatpush3.msra.mxu1 %v6693_v50 }
 0xc93   :  { %3213 = vmatprep.subr.mxu0 %v6660_v60  ;;  %5010 = vmatprep.subr.mxu1 %v7464_v16 }
 0xc94   :  { %3214 = vmatpush1.msra.mxu0 %v6663_v26  ;;  %5011 = vmatpush3.msra.mxu1 %v6701_v23 }
 0xc95   :  { %3215 = vmatprep.subr.mxu0 %v6667_v36  ;;  %5012 = vmatprep.subr.mxu1 %v7464_v16 }
 0xc96   :  { %3216 = vmatpush1.msra.mxu0 %v6675_v1  ;;  %3249 = vmatprep.mubr.f32.mxu0 %v7464_v16 }
 0xc97   :  { %5013 = vmatpush3.msra.mxu1 %v6706_v29  ;;  %5014 = vmatprep.mubr.msk.f32.mxu1 %vm5498_vm10, %v7464_v16 }
 0xc98   :  { %3382 = vmatprep.subr.mxu0 %v6556_v21  ;;  %5017 = vmatprep.subr.mxu1 %v7464_v16 }
 0xd47   :  { %v3070_v44 = vpop.f32.mrf.mxu0  ;;  %v3141_v47 = vpop.f32.mrf.mxu1 }
 0xd48   :  { %v3145_v51 = vadd.f32 %v3070_v44, %v6822_v46  ;;  %v3159_v61 = vadd.f32 %v6898_v18, %v3141_v47 }
 0xd49   :  { %v4997_v10 = vpop.f32.mrf.mxu1  ;;  %v3072_v33 = vpop.f32.mrf.mxu0 }
 0xd4a   :  { %v4443_v7 = vmul.f32 -1.442695, %v3145_v51  ;;  %v3152_v63 = vadd.f32 %v3072_v33, %v7501_v5  ;;  %v7505_v5 = vld [vmem:[#allocation21_spill] sm:$0xff] }
 0xd4c   :  { %5247 = vpow2.f32 %v4443_v7  ;;  %v4444_v20 = vmul.f32 -1.442695, %v3152_v63  ;;  %v7506_v63 = vld [vmem:[#allocation20_spill] sm:$0xff] }
 0xd4e   :  { %5249 = vpow2.f32 %v4444_v20 }
 0xd59   :  { %v5248_v59 = vpop.eup %5247 }
 0xd5a   :  { %v3149_v41 = vadd.f32 1.0, %v5248_v59 }
 0xd5b   :  { %v5250_v6 = vpop.eup %5249 }
 0xd5c   :  { %5251 = vrcp.f32 %v3149_v41  ;;  %v3156_v45 = vadd.f32 1.0, %v5250_v6  ;;  %v7507_v41 = vld [vmem:[#allocation23_spill] sm:$0xff] }
 0xd5e   :  { %5253 = vrcp.f32 %v3156_v45 }
 0xd69   :  { %v5252_v46 = vpop.eup %5251 }
 0xd6a   :  { %v3160_v13 = vmul.f32 %v5252_v46, %v3159_v61 }
 0xd6b   :  { %v5254_v30 = vpop.eup %5253 }
 0xd6c   :  { %v3161_v31 = vadd.f32 %v3160_v13, %v7504_v35  ;;  %v3163_v44 = vsub.f32 1.0, %v5254_v30  ;;  %v3165_v7 = vmul.f32 %v5254_v30, %v7033_v52  ;;  %v7508_v13 = vsel %vm6001_vm14, %v7500_v32, %v6801_v11 }
 0xd6e   :  { %5255 = vtanh.f32 %v3161_v31 }
 0xd7b   :  { %v5256_v51 = vpop.eup %5255 }
 0xd7c   :  { %v3164_v10 = vmul.f32 %v5256_v51, %v3163_v44 }
 0xd7e   :  { %v7097_v33 = vadd.f32 %v3165_v7, %v3164_v10 }
 0xd80   :  { %v3168_v47 = vsel %vm327_vm13, %v7097_v33, %v7505_v5  ;;  %v3171_v20 = vsel %vm327_vm13, %v7506_v63, %v7097_v33  ;;  %4445 = vmatmul.mubr.msk.f32.vlgmr.msra.gmra.mxu0 %vm118_vm11, %v7097_v33  ;;  %5015 = vmatmul.mubr.msk.f32.vlgmr.msra.gmra.mxu1 %vm118_vm11, %v7097_v33 }
 0xd81   :  { %3169 = vst.msk [vmem:[#allocation2 + $0x18] sm:$0xff] %vm118_vm11, %v3168_v47  ;;  %3172 = vst.msk [vmem:[#allocation2 + $0x20] sm:$0xff] %vm118_vm11, %v3171_v20  ;;  %3383 = vmatpush1.msra.mxu0 %v6580_v56  ;;  %5018 = vmatpush3.msra.mxu1 %v6590_v40  ;;  %v7509_v47 = vsel %vm5949_vm12, %v7503_v43, %v7502_v53 }
 0xd82   :  { %3384 = vmatprep.subr.mxu0 %v6588_v27  ;;  %5019 = vmatprep.subr.mxu1 %v7464_v16 }
 0xd83   :  { %3385 = vmatpush1.msra.mxu0 %v6597_v57  ;;  %5020 = vmatpush3.msra.mxu1 %v6634_v55 }
 0xd84   :  { %3386 = vmatprep.subr.mxu0 %v6603_v58  ;;  %5021 = vmatprep.subr.mxu1 %v7464_v16 }
 0xd85   :  { %3387 = vmatpush1.msra.mxu0 %v6611_v17  ;;  %5022 = vmatpush3.msra.mxu1 %v6670_v19 }
 0xd86   :  { %3388 = vmatprep.subr.mxu0 %v6618_v62  ;;  %5023 = vmatprep.subr.mxu1 %v7464_v16 }
 0xd87   :  { %3389 = vmatpush1.msra.mxu0 %v6624_v54  ;;  %5024 = vmatpush3.msra.mxu1 %v6681_v22 }
 0xd88   :  { %3390 = vmatprep.subr.mxu0 %v6632_v28  ;;  %5025 = vmatprep.subr.mxu1 %v7464_v16 }
 0xd89   :  { %3391 = vmatpush1.msra.mxu0 %v6641_v38  ;;  %5026 = vmatpush3.msra.mxu1 %v6688_v0 }
 0xd8a   :  { %3392 = vmatprep.subr.mxu0 %v6647_v39  ;;  %5027 = vmatprep.subr.mxu1 %v7464_v16 }
 0xd8b   :  { %3393 = vmatpush1.msra.mxu0 %v6655_v34  ;;  %5028 = vmatpush3.msra.mxu1 %v6693_v50 }
 0xd8c   :  { %3394 = vmatprep.subr.mxu0 %v6660_v60  ;;  %5029 = vmatprep.subr.mxu1 %v7464_v16 }
 0xd8d   :  { %3395 = vmatpush1.msra.mxu0 %v6663_v26  ;;  %5030 = vmatpush3.msra.mxu1 %v6701_v23 }
 0xd8e   :  { %3396 = vmatprep.subr.mxu0 %v6667_v36  ;;  %5031 = vmatprep.subr.mxu1 %v7464_v16 }
 0xd8f   :  { %3397 = vmatpush1.msra.mxu0 %v6675_v1  ;;  %3430 = vmatprep.mubr.f32.mxu0 %v7464_v16 }
 0xd90   :  { %5032 = vmatpush3.msra.mxu1 %v6706_v29  ;;  %5033 = vmatprep.mubr.msk.f32.mxu1 %vm5498_vm10, %v7464_v16 }
 0xd91   :  { %3563 = vmatprep.subr.mxu0 %v6556_v21  ;;  %5036 = vmatprep.subr.mxu1 %v7464_v16 }
 0xe40   :  { %v3251_v52 = vpop.f32.mrf.mxu0  ;;  %v3322_v59 = vpop.f32.mrf.mxu1 }
 0xe41   :  { %v3326_v6 = vadd.f32 %v3251_v52, %v7507_v41  ;;  %v3340_v10 = vadd.f32 %v6898_v18, %v3322_v59  ;;  %v3351_v59 = vld [vmem:[#allocation2 + $0x18] sm:$0xff] }
 0xe42   :  { %v5016_v45 = vpop.f32.mrf.mxu1  ;;  %v3253_v46 = vpop.f32.mrf.mxu0 }
 0xe43   :  { %v4447_v61 = vmul.f32 -1.442695, %v3326_v6  ;;  %v3333_v35 = vadd.f32 %v3253_v46, %v7508_v13  ;;  %v3348_v45 = vld [vmem:[#allocation2 + $0x20] sm:$0xff]  ;;  %v3532_v46 = vld [vmem:[#allocation2 + $0x10] sm:$0xff] }
 0xe45   :  { %5257 = vpow2.f32 %v4447_v61  ;;  %v4448_v31 = vmul.f32 -1.442695, %v3333_v35  ;;  %v5339_v35 = vld [vmem:[#allocation12 + $0xb8] sm:$0xff] }
 0xe47   :  { %5259 = vpow2.f32 %v4448_v31  ;;  %v5340_v31 = vld [vmem:[#allocation12 + $0x98] sm:$0xff] }
 0xe52   :  { %v5258_v30 = vpop.eup %5257 }
 0xe53   :  { %v3330_v21 = vadd.f32 1.0, %v5258_v30  ;;  %v5341_v30 = vld [vmem:[#allocation12 + $0x90] sm:$0xff] }
 0xe54   :  { %v5260_v44 = vpop.eup %5259 }
 0xe55   :  { %5261 = vrcp.f32 %v3330_v21  ;;  %v3337_v51 = vadd.f32 1.0, %v5260_v44  ;;  %v5342_v21 = vld [vmem:[#allocation12 + $0xa0] sm:$0xff] }
 0xe56   :  { %v5343_v44 = vld [vmem:[#allocation12 + $0x80] sm:$0xff] }
 0xe57   :  { %5263 = vrcp.f32 %v3337_v51  ;;  %v5344_v51 = vld [vmem:[#allocation12 + $0x78] sm:$0xff] }
 0xe62   :  { %v5262_v7 = vpop.eup %5261 }
 0xe63   :  { %v3341_v5 = vmul.f32 %v5262_v7, %v3340_v10  ;;  %v5345_v10 = vld [vmem:[#allocation12 + $0x88] sm:$0xff] }
 0xe64   :  { %v5264_v11 = vpop.eup %5263  ;;  %v5346_v7 = vld [vmem:[#allocation12 + $0x68] sm:$0xff] }
 0xe65   :  { %v3342_v63 = vadd.f32 %v3341_v5, %v7509_v47  ;;  %v3344_v32 = vsub.f32 1.0, %v5264_v11  ;;  %v3346_v41 = vmul.f32 %v5264_v11, %v7097_v33  ;;  %v3529_v33 = vld [vmem:[#allocation2 + $0x28] sm:$0xff]  ;;  %v5348_v47 = vld [vmem:[#allocation12 + $0x70] sm:$0xff] }
 0xe66   :  { %v5347_v5 = vld [vmem:[#allocation12 + $0x60] sm:$0xff]  ;;  %v5350_v11 = vld [vmem:[#allocation12 + $0x48] sm:$0xff] }
 0xe67   :  { %5265 = vtanh.f32 %v3342_v63  ;;  %v5349_v63 = vld [vmem:[#allocation12 + $0x50] sm:$0xff] }
 0xe74   :  { %v5266_v20 = vpop.eup %5265 }
 0xe75   :  { %v3345_v52 = vmul.f32 %v5266_v20, %v3344_v32  ;;  %v5351_v32 = vld [vmem:[#allocation12 + $0x58] sm:$0xff] }
 0xe76   :  { %v5352_v20 = vld [vmem:[#allocation12 + $0x38] sm:$0xff] }
 0xe77   :  { %v7161_v6 = vadd.f32 %v3346_v41, %v3345_v52  ;;  %v5353_v52 = vld [vmem:[#allocation12 + $0x30] sm:$0xff]  ;;  %v5354_v41 = vld [vmem:[#allocation12 + $0x40] sm:$0xff] }
 0xe79   :  { %v3349_v61 = vsel %vm327_vm13, %v7161_v6, %v3348_v45  ;;  %v3352_v53 = vsel %vm327_vm13, %v3351_v59, %v7161_v6  ;;  %4449 = vmatmul.mubr.msk.f32.vlgmr.msra.gmra.mxu0 %vm118_vm11, %v7161_v6  ;;  %5034 = vmatmul.mubr.msk.f32.vlgmr.msra.gmra.mxu1 %vm118_vm11, %v7161_v6  ;;  %v5356_v45 = vld [vmem:[#allocation12 + $0x18] sm:$0xff]  ;;  %v5357_v59 = vld [vmem:[#allocation12 + $0x28] sm:$0xff] }
 0xe7a   :  { %3350 = vst.msk [vmem:[#allocation2 + $0x20] sm:$0xff] %vm118_vm11, %v3349_v61  ;;  %3353 = vst.msk [vmem:[#allocation2 + $0x18] sm:$0xff] %vm118_vm11, %v3352_v53  ;;  %3564 = vmatpush1.msra.mxu0 %v6580_v56  ;;  %5037 = vmatpush3.msra.mxu1 %v6590_v40  ;;  %v5337_v56 = vld [vmem:[#allocation12 + $0xb0] sm:$0xff]  ;;  %v5358_v61 = vld [vmem:[#allocation12 + $0x8] sm:$0xff] }
 0xe7b   :  { %3565 = vmatprep.subr.mxu0 %v6588_v27  ;;  %5038 = vmatprep.subr.mxu1 %v7464_v16  ;;  %v5359_v53 = vld [vmem:[#allocation12] sm:$0xff] }
 0xe7c   :  { %3566 = vmatpush1.msra.mxu0 %v6597_v57  ;;  %5039 = vmatpush3.msra.mxu1 %v6634_v55  ;;  %v7510_v57 = vld [vmem:[#allocation24_spill] sm:$0xff] }
 0xe7d   :  { %3567 = vmatprep.subr.mxu0 %v6603_v58  ;;  %5040 = vmatprep.subr.mxu1 %v7464_v16 }
 0xe7e   :  { %3568 = vmatpush1.msra.mxu0 %v6611_v17  ;;  %5041 = vmatpush3.msra.mxu1 %v6670_v19 }
 0xe7f   :  { %3569 = vmatprep.subr.mxu0 %v6618_v62  ;;  %5042 = vmatprep.subr.mxu1 %v7464_v16 }
 0xe80   :  { %3570 = vmatpush1.msra.mxu0 %v6624_v54  ;;  %5043 = vmatpush3.msra.mxu1 %v6681_v22  ;;  %v7512_v22 = vsel %vm5949_vm12, %v6773_v12, %v6771_v37  ;;  %v5338_v12 = vld [vmem:[#allocation12 + $0xa8] sm:$0xff] }
 0xe81   :  { %3571 = vmatprep.subr.mxu0 %v6632_v28  ;;  %5044 = vmatprep.subr.mxu1 %v7464_v16  ;;  %v7511_v28 = vsel %vm6001_vm14, %v6837_v3, %v6776_v24 }
 0xe82   :  { %3572 = vmatpush1.msra.mxu0 %v6641_v38  ;;  %5045 = vmatpush3.msra.mxu1 %v6688_v0 }
 0xe83   :  { %3573 = vmatprep.subr.mxu0 %v6647_v39  ;;  %5046 = vmatprep.subr.mxu1 %v7464_v16 }
 0xe84   :  { %3574 = vmatpush1.msra.mxu0 %v6655_v34  ;;  %5047 = vmatpush3.msra.mxu1 %v6693_v50 }
 0xe85   :  { %3575 = vmatprep.subr.mxu0 %v6660_v60  ;;  %5048 = vmatprep.subr.mxu1 %v7464_v16 }
 0xe86   :  { %3576 = vmatpush1.msra.mxu0 %v6663_v26  ;;  %5049 = vmatpush3.msra.mxu1 %v6701_v23 }
 0xe87   :  { %3577 = vmatprep.subr.mxu0 %v6667_v36  ;;  %5050 = vmatprep.subr.mxu1 %v7464_v16 }
 0xe88   :  { %3578 = vmatpush1.msra.mxu0 %v6675_v1  ;;  %3611 = vmatprep.mubr.f32.mxu0 %v7464_v16 }
 0xe89   :  { %5051 = vmatpush3.msra.mxu1 %v6706_v29  ;;  %5052 = vmatprep.mubr.msk.f32.mxu1 %vm5498_vm10, %v7464_v16 }
 0xe8a   :  { %3744 = vmatprep.subr.mxu0 %v5337_v56  ;;  %5055 = vmatprep.subr.mxu1 %v7464_v16  ;;  %v5360_v56 = vld [vmem:[#allocation12 + $0x10] sm:$0xff] }
 0xf39   :  { %v3432_v27 = vpop.f32.mrf.mxu0  ;;  %v3503_v40 = vpop.f32.mrf.mxu1 }
 0xf3a   :  { %v3507_v58 = vadd.f32 %v3432_v27, %v7510_v57  ;;  %v3521_v36 = vadd.f32 %v6898_v18, %v3503_v40  ;;  %v7513_v57 = vld [vmem:[#allocation25_spill] sm:$0xff] }
 0xf3b   :  { %v5035_v17 = vpop.f32.mrf.mxu1  ;;  %v3434_v54 = vpop.f32.mrf.mxu0 }
 0xf3c   :  { %v4451_v62 = vmul.f32 -1.442695, %v3507_v58  ;;  %v3514_v55 = vadd.f32 %v3434_v54, %v7511_v28  ;;  %v7514_v28 = vsel %vm6001_vm14, %v6856_v48, %v6769_v8 }
 0xf3e   :  { %5267 = vpow2.f32 %v4451_v62  ;;  %v4452_v38 = vmul.f32 -1.442695, %v3514_v55 }
 0xf40   :  { %5269 = vpow2.f32 %v4452_v38 }
 0xf4b   :  { %v5268_v39 = vpop.eup %5267 }
 0xf4c   :  { %v3511_v34 = vadd.f32 1.0, %v5268_v39 }
 0xf4d   :  { %v5270_v60 = vpop.eup %5269 }
 0xf4e   :  { %5271 = vrcp.f32 %v3511_v34  ;;  %v3518_v26 = vadd.f32 1.0, %v5270_v60 }
 0xf50   :  { %5273 = vrcp.f32 %v3518_v26 }
 0xf5b   :  { %v5272_v19 = vpop.eup %5271 }
 0xf5c   :  { %v3522_v1 = vmul.f32 %v5272_v19, %v3521_v36 }
 0xf5d   :  { %v5274_v50 = vpop.eup %5273 }
 0xf5e   :  { %v3523_v0 = vadd.f32 %v3522_v1, %v7512_v22  ;;  %v3525_v23 = vsub.f32 1.0, %v5274_v50  ;;  %v3527_v3 = vmul.f32 %v5274_v50, %v7161_v6  ;;  %v5355_v6 = vld [vmem:[#allocation12 + $0x20] sm:$0xff]  ;;  %v7515_v1 = vsel %vm5949_vm12, %v6807_v15, %v6756_v49 }
 0xf60   :  { %5275 = vtanh.f32 %v3523_v0 }
 0xf6d   :  { %v5276_v29 = vpop.eup %5275 }
 0xf6e   :  { %v3526_v24 = vmul.f32 %v5276_v29, %v3525_v23 }
 0xf70   :  { %v7222_v43 = vadd.f32 %v3527_v3, %v3526_v24  ;;  %v3710_v24 = vld [vmem:[#allocation2 + $0x30] sm:$0xff]  ;;  %v3713_v3 = vld [vmem:[#allocation2 + $0x8] sm:$0xff] }
 0xf72   :  { %v3530_v13 = vsel %vm327_vm13, %v7222_v43, %v3529_v33  ;;  %v3533_v37 = vsel %vm327_vm13, %v3532_v46, %v7222_v43  ;;  %4453 = vmatmul.mubr.msk.f32.vlgmr.msra.gmra.mxu0 %vm118_vm11, %v7222_v43  ;;  %5053 = vmatmul.mubr.msk.f32.vlgmr.msra.gmra.mxu1 %vm118_vm11, %v7222_v43 }
 0xf73   :  { %3531 = vst.msk [vmem:[#allocation2 + $0x28] sm:$0xff] %vm118_vm11, %v3530_v13  ;;  %3534 = vst.msk [vmem:[#allocation2 + $0x10] sm:$0xff] %vm118_vm11, %v3533_v37  ;;  %3745 = vmatpush1.msra.mxu0 %v5338_v12  ;;  %5056 = vmatpush3.msra.mxu1 %v5339_v35 }
 0xf74   :  { %3746 = vmatprep.subr.mxu0 %v5340_v31  ;;  %5057 = vmatprep.subr.mxu1 %v7464_v16 }
 0xf75   :  { %3747 = vmatpush1.msra.mxu0 %v5341_v30  ;;  %5058 = vmatpush3.msra.mxu1 %v5342_v21 }
 0xf76   :  { %3748 = vmatprep.subr.mxu0 %v5343_v44  ;;  %5059 = vmatprep.subr.mxu1 %v7464_v16 }
 0xf77   :  { %3749 = vmatpush1.msra.mxu0 %v5344_v51  ;;  %5060 = vmatpush3.msra.mxu1 %v5345_v10  ;;  %v7516_v10 = vld [vmem:[#allocation27_spill] sm:$0xff] }
 0xf78   :  { %3750 = vmatprep.subr.mxu0 %v5346_v7  ;;  %5061 = vmatprep.subr.mxu1 %v7464_v16  ;;  %v7517_v7 = vld [vmem:[#allocation26_spill] sm:$0xff] }
 0xf79   :  { %3751 = vmatpush1.msra.mxu0 %v5347_v5  ;;  %5062 = vmatpush3.msra.mxu1 %v5348_v47  ;;  %v7518_v5 = vsel %vm6001_vm14, %v7516_v10, %v7517_v7 }
 0xf7a   :  { %3752 = vmatprep.subr.mxu0 %v5349_v63  ;;  %5063 = vmatprep.subr.mxu1 %v7464_v16  ;;  %v3899_v9 = vld [vmem:[#allocation2 + $0x10] sm:$0xff]  ;;  %v3902_v25 = vld [vmem:[#allocation2 + $0x28] sm:$0xff] }
 0xf7b   :  { %3753 = vmatpush1.msra.mxu0 %v5350_v11  ;;  %5064 = vmatpush3.msra.mxu1 %v5351_v32 }
 0xf7c   :  { %3754 = vmatprep.subr.mxu0 %v5352_v20  ;;  %5065 = vmatprep.subr.mxu1 %v7464_v16 }
 0xf7d   :  { %3755 = vmatpush1.msra.mxu0 %v5353_v52  ;;  %5066 = vmatpush3.msra.mxu1 %v5354_v41 }
 0xf7e   :  { %3756 = vmatprep.subr.mxu0 %v5355_v6  ;;  %5067 = vmatprep.subr.mxu1 %v7464_v16 }
 0xf7f   :  { %3757 = vmatpush1.msra.mxu0 %v5356_v45  ;;  %5068 = vmatpush3.msra.mxu1 %v5357_v59 }
 0xf80   :  { %3758 = vmatprep.subr.mxu0 %v5358_v61  ;;  %5069 = vmatprep.subr.mxu1 %v7464_v16 }
 0xf81   :  { %3759 = vmatpush1.msra.mxu0 %v5359_v53  ;;  %3792 = vmatprep.mubr.f32.mxu0 %v7464_v16 }
 0xf82   :  { %5070 = vmatpush3.msra.mxu1 %v5360_v56  ;;  %5071 = vmatprep.mubr.msk.f32.mxu1 %vm5498_vm10, %v7464_v16 }
0x1032   :  { %v3613_v27 = vpop.f32.mrf.mxu0  ;;  %v3684_v40 = vpop.f32.mrf.mxu1 }
0x1033   :  { %v3688_v58 = vadd.f32 %v3613_v27, %v7513_v57  ;;  %v3702_v26 = vadd.f32 %v6898_v18, %v3684_v40  ;;  %v3891_v57 = vld [vmem:[#allocation2 + $0x38] sm:$0xff] }
0x1034   :  { %v5054_v17 = vpop.f32.mrf.mxu1  ;;  %v3615_v54 = vpop.f32.mrf.mxu0 }
0x1035   :  { %v4455_v62 = vmul.f32 -1.442695, %v3688_v58  ;;  %v3695_v55 = vadd.f32 %v3615_v54, %v7514_v28  ;;  %v3894_v58 = vld [vmem:[#allocation2] sm:$0xff]  ;;  %v3900_v28 = vld [vmem:[#allocation2 + $0x18] sm:$0xff] }
0x1037   :  { %5277 = vpow2.f32 %v4455_v62  ;;  %v4456_v38 = vmul.f32 -1.442695, %v3695_v55  ;;  %v3911_v62 = vsel %vm118_vm11, %v3899_v9, 0.0 }
0x1039   :  { %5279 = vpow2.f32 %v4456_v38  ;;  %v3914_v38 = vsel %vm118_vm11, %v3900_v28, 0.0 }
0x1044   :  { %v5278_v39 = vpop.eup %5277 }
0x1045   :  { %v3692_v34 = vadd.f32 1.0, %v5278_v39 }
0x1046   :  { %v5280_v16 = vpop.eup %5279 }
0x1047   :  { %5281 = vrcp.f32 %v3692_v34  ;;  %v3699_v60 = vadd.f32 1.0, %v5280_v16  ;;  %v3920_v34 = vsel %vm118_vm11, %v3902_v25, 0.0 }
0x1049   :  { %5283 = vrcp.f32 %v3699_v60 }
0x1054   :  { %v5282_v36 = vpop.eup %5281 }
0x1055   :  { %v3703_v19 = vmul.f32 %v5282_v36, %v3702_v26 }
0x1056   :  { %v5284_v48 = vpop.eup %5283 }
0x1057   :  { %v3704_v22 = vadd.f32 %v3703_v19, %v7515_v1  ;;  %v3706_v8 = vsub.f32 1.0, %v5284_v48  ;;  %v3708_v23 = vmul.f32 %v5284_v48, %v7222_v43  ;;  %v7268_v43 = vld [vmem:[#allocation2 + $0x20] sm:$0xff] }
0x1058   :  { %v3917_v13 = vsel %vm118_vm11, %v7268_v43, 0.0 }
0x1059   :  { %5285 = vtanh.f32 %v3704_v22 }
0x1066   :  { %v5286_v0 = vpop.eup %5285 }
0x1067   :  { %v3707_v50 = vmul.f32 %v5286_v0, %v3706_v8 }
0x1069   :  { %v3709_v29 = vadd.f32 %v3708_v23, %v3707_v50 }
0x106b   :  { %v3711_v33 = vsel %vm327_vm13, %v3709_v29, %v3710_v24  ;;  %v3714_v46 = vsel %vm327_vm13, %v3713_v3, %v3709_v29  ;;  %4457 = vmatmul.mubr.msk.f32.vlgmr.msra.gmra.mxu0 %vm118_vm11, %v3709_v29  ;;  %5072 = vmatmul.mubr.msk.f32.vlgmr.msra.gmra.mxu1 %vm118_vm11, %v3709_v29 }
0x106c   :  { %3712 = vst.msk [vmem:[#allocation2 + $0x30] sm:$0xff] %vm118_vm11, %v3711_v33  ;;  %3715 = vst.msk [vmem:[#allocation2 + $0x8] sm:$0xff] %vm118_vm11, %v3714_v46 }
0x1073   :  { %v3898_v49 = vld [vmem:[#allocation2 + $0x8] sm:$0xff]  ;;  %v7272_v37 = vld [vmem:[#allocation2 + $0x30] sm:$0xff] }
0x1074   :  { %v3908_v15 = vsel %vm118_vm11, %v3898_v49, 0.0  ;;  %v3923_v12 = vsel %vm118_vm11, %v7272_v37, 0.0 }
0x1075   :  { %3909 = vadd.xlane.f32.xlu1 %v3908_v15 }
0x1079   :  { %3918 = vadd.xlane.f32.xlu1 %v3917_v13 }
0x107d   :  { %3924 = vadd.xlane.f32.xlu1 %v3923_v12 }
0x10fe   :  { %v3910_v54 = vpop.xlane.xlu1 %3909 }
0x10ff   :  { %v3931_v55 = vmul.f32 0.015625, %v3910_v54 }
0x1101   :  { %v7297_v39 = vsub.f32 %v3898_v49, %v3931_v55 }
0x1102   :  { %v3919_v19 = vpop.xlane.xlu1 %3918 }
0x1103   :  { %v3947_v26 = vmul.f32 %v7297_v39, %v7297_v39  ;;  %v3934_v48 = vmul.f32 0.015625, %v3919_v19 }
0x1105   :  { %v3957_v36 = vsel %vm118_vm11, %v3947_v26, 0.0  ;;  %v7309_v24 = vsub.f32 %v7268_v43, %v3934_v48 }
0x1106   :  { %v3925_v0 = vpop.xlane.xlu1 %3924 }
0x1107   :  { %v3936_v3 = vmul.f32 0.015625, %v3925_v0  ;;  %v3950_v43 = vmul.f32 %v7309_v24, %v7309_v24 }
0x1109   :  { %v7317_v12 = vsub.f32 %v7272_v37, %v3936_v3  ;;  %v3966_v10 = vsel %vm118_vm11, %v3950_v43, 0.0 }
0x110b   :  { %v3952_v7 = vmul.f32 %v7317_v12, %v7317_v12 }
0x112b   :  { %v3794_v35 = vpop.f32.mrf.mxu0  ;;  %v3865_v31 = vpop.f32.mrf.mxu1 }
0x112c   :  { %v3869_v30 = vadd.f32 %v3794_v35, %v6885_v14  ;;  %v3883_v41 = vadd.f32 %v6898_v18, %v3865_v31 }
0x112d   :  { %v5073_v21 = vpop.f32.mrf.mxu1  ;;  %v3796_v51 = vpop.f32.mrf.mxu0 }
0x112e   :  { %v4459_v44 = vmul.f32 -1.442695, %v3869_v30  ;;  %v3876_v47 = vadd.f32 %v3796_v51, %v7518_v5 }
0x1130   :  { %5287 = vpow2.f32 %v4459_v44  ;;  %v4460_v63 = vmul.f32 -1.442695, %v3876_v47 }
0x1132   :  { %5289 = vpow2.f32 %v4460_v63 }
0x113d   :  { %v5288_v11 = vpop.eup %5287 }
0x113e   :  { %v3873_v32 = vadd.f32 1.0, %v5288_v11 }
0x113f   :  { %v5290_v20 = vpop.eup %5289 }
0x1140   :  { %5291 = vrcp.f32 %v3873_v32  ;;  %v3880_v52 = vadd.f32 1.0, %v5290_v20  ;;  %v3972_v32 = vsel %vm118_vm11, %v3952_v7, 0.0 }
0x1142   :  { %5293 = vrcp.f32 %v3880_v52 }
0x114d   :  { %v5292_v14 = vpop.eup %5291 }
0x114e   :  { %v3884_v6 = vmul.f32 %v5292_v14, %v3883_v41  ;;  %v4047_v14 = vld [vmem:[%s7428_s12 + $0x38] sm:$0xff] }
0x114f   :  { %v5294_v59 = vpop.eup %5293  ;;  %5074 = vmatprep.subr.mxu0 %v4047_v14 }
0x1150   :  { %v3885_v45 = vadd.f32 %v3884_v6, %v7519_v2  ;;  %v3887_v61 = vsub.f32 1.0, %v5294_v59  ;;  %v3889_v27 = vmul.f32 %v5294_v59, %v3709_v29  ;;  %5075 = vmatpush3.msra.mxu0 %v4047_v14  ;;  %v4046_v6 = vld [vmem:[%s7428_s12 + $0x30] sm:$0xff]  ;;  %v4045_v2 = vld [vmem:[%s7428_s12 + $0x28] sm:$0xff]  ;;  %v4043_v59 = vld [vmem:[%s7428_s12 + $0x18] sm:$0xff] }
0x1151   :  { %5076 = vmatprep.subr.mxu0 %v4046_v6 }
0x1152   :  { %5295 = vtanh.f32 %v3885_v45  ;;  %5077 = vmatpush3.msra.mxu0 %v4046_v6  ;;  %v4044_v45 = vld [vmem:[%s7428_s12 + $0x20] sm:$0xff] }
0x1153   :  { %5078 = vmatprep.subr.mxu0 %v4045_v2 }
0x1154   :  { %5079 = vmatpush3.msra.mxu0 %v4045_v2 }
0x1155   :  { %5080 = vmatprep.subr.mxu0 %v4044_v45 }
0x1156   :  { %5081 = vmatpush3.msra.mxu0 %v4044_v45 }
0x1157   :  { %5082 = vmatprep.subr.mxu0 %v4043_v59 }
0x1158   :  { %5083 = vmatpush3.msra.mxu0 %v4043_v59 }
0x115f   :  { %v5296_v53 = vpop.eup %5295 }
0x1160   :  { %v3888_v56 = vmul.f32 %v5296_v53, %v3887_v61  ;;  %v4042_v61 = vld [vmem:[%s7428_s12 + $0x10] sm:$0xff]  ;;  %v4041_v53 = vld [vmem:[%s7428_s12 + $0x8] sm:$0xff] }
0x1161   :  { %5084 = vmatprep.subr.mxu0 %v4042_v61 }
0x1162   :  { %v3890_v40 = vadd.f32 %v3889_v27, %v3888_v56  ;;  %5085 = vmatpush3.msra.mxu0 %v4042_v61  ;;  %v4040_v56 = vld [vmem:[%s7428_s12] sm:$0xff]  ;;  %v4187_v27 = vld [vmem:[%s7430_s14 + $0x18] sm:$0xff]  ;;  %v4185_v61 = vld [vmem:[%s7430_s14 + $0x8] sm:$0xff] }
0x1163   :  { %5086 = vmatprep.subr.mxu0 %v4041_v53  ;;  %5102 = vmatprep.subr.mxu1 %v4187_v27 }
0x1164   :  { %v3892_v18 = vsel %vm327_vm13, %v3890_v40, %v3891_v57  ;;  %v3895_v17 = vsel %vm327_vm13, %v3894_v58, %v3890_v40  ;;  %5087 = vmatpush3.msra.mxu0 %v4041_v53  ;;  %5103 = vmatpush3.msra.mxu1 %v4187_v27 }
0x1165   :  { %3893 = vst.msk [vmem:[#allocation2 + $0x38] sm:$0xff] %vm118_vm11, %v3892_v18  ;;  %3896 = vst.msk [vmem:[#allocation2] sm:$0xff] %vm118_vm11, %v3895_v17  ;;  %5088 = vmatprep.subr.mxu0 %v4040_v56 }
0x1166   :  { %5089 = vmatpush3.msra.mxu0 %v4040_v56  ;;  %v4463_v56 = vld [vmem:[%s7429_s13] ss:$0 sm:$0xff] }
0x116c   :  { %v3897_v42 = vld [vmem:[#allocation2] sm:$0xff]  ;;  %v3904_v16 = vld [vmem:[#allocation2 + $0x38] sm:$0xff] }
0x116d   :  { %v3905_v4 = vsel %vm118_vm11, %v3897_v42, 0.0  ;;  %v3926_v60 = vsel %vm118_vm11, %v3904_v16, 0.0 }
0x116e   :  { %3906 = vadd.xlane.f32.xlu0 %v3905_v4 }
0x1172   :  { %3912 = vadd.xlane.f32.xlu0 %v3911_v62 }
0x1176   :  { %3915 = vadd.xlane.f32.xlu0 %v3914_v38 }
0x117a   :  { %3921 = vadd.xlane.f32.xlu0 %v3920_v34 }
0x117e   :  { %3927 = vadd.xlane.f32.xlu0 %v3926_v60 }
0x1182   :  { %3958 = vadd.xlane.f32.xlu0 %v3957_v36 }
0x11f7   :  { %v3907_v1 = vpop.xlane.xlu0 %3906 }
0x11f8   :  { %v3930_v22 = vmul.f32 0.015625, %v3907_v1 }
0x11fa   :  { %v7304_v8 = vsub.f32 %v3897_v42, %v3930_v22 }
0x11fb   :  { %v3913_v50 = vpop.xlane.xlu0 %3912 }
0x11fc   :  { %v3932_v23 = vmul.f32 0.015625, %v3913_v50  ;;  %v3946_v29 = vmul.f32 %v7304_v8, %v7304_v8 }
0x11fe   :  { %v7311_v33 = vsub.f32 %v3899_v9, %v3932_v23  ;;  %v3954_v46 = vsel %vm118_vm11, %v3946_v29, 0.0  ;;  %v4461_v23 = vld [vmem:[%s7426_s10] ss:$0 sm:$0xff] }
0x11ff   :  { %3955 = vadd.xlane.f32.xlu1 %v3954_v46  ;;  %v3916_v49 = vpop.xlane.xlu0 %3915 }
0x1200   :  { %v3933_v15 = vmul.f32 0.015625, %v3916_v49  ;;  %v3948_v13 = vmul.f32 %v7311_v33, %v7311_v33 }
0x1202   :  { %v7319_v35 = vsub.f32 %v3900_v28, %v3933_v15  ;;  %v3960_v31 = vsel %vm118_vm11, %v3948_v13, 0.0  ;;  %v4462_v13 = vld [vmem:[%s7427_s11] ss:$0 sm:$0xff] }
0x1203   :  { %3961 = vadd.xlane.f32.xlu1 %v3960_v31  ;;  %v3922_v30 = vpop.xlane.xlu0 %3921 }
0x1204   :  { %v3935_v21 = vmul.f32 0.015625, %v3922_v30  ;;  %v3949_v44 = vmul.f32 %v7319_v35, %v7319_v35 }
0x1206   :  { %v7326_v51 = vsub.f32 %v3902_v25, %v3935_v21  ;;  %v3963_v37 = vsel %vm118_vm11, %v3949_v44, 0.0 }
0x1207   :  { %3967 = vadd.xlane.f32.xlu1 %v3966_v10  ;;  %3964 = vadd.xlane.f32.xlu0 %v3963_v37  ;;  %v3928_v5 = vpop.xlane.xlu0 %3927 }
0x1208   :  { %v3937_v47 = vmul.f32 0.015625, %v3928_v5  ;;  %v3951_v63 = vmul.f32 %v7326_v51, %v7326_v51 }
0x120a   :  { %v7334_v11 = vsub.f32 %v3904_v16, %v3937_v47  ;;  %v3969_v20 = vsel %vm118_vm11, %v3951_v63, 0.0 }
0x120b   :  { %3973 = vadd.xlane.f32.xlu1 %v3972_v32  ;;  %3970 = vadd.xlane.f32.xlu0 %v3969_v20  ;;  %v3959_v40 = vpop.xlane.xlu0 %3958 }
0x120c   :  { %v3953_v52 = vmul.f32 %v7334_v11, %v7334_v11  ;;  %v3979_v57 = vmul.f32 0.015625, %v3959_v40 }
0x120e   :  { %v3975_v41 = vsel %vm118_vm11, %v3953_v52, 0.0  ;;  %v3987_v58 = vadd.f32 1e-05, %v3979_v57 }
0x120f   :  { %3976 = vadd.xlane.f32.xlu0 %v3975_v41 }
0x1210   :  { %5297 = vrsqrt.f32 %v3987_v58 }
0x121d   :  { %v5298_v26 = vpop.eup %5297 }
0x121e   :  { %v4003_v48 = vmul.f32 %v5298_v26, %v7297_v39 }
0x1220   :  { %v4018_v49 = vmul.f32 %v4461_v23, %v4003_v48 }
0x1222   :  { %v4033_v30 = vadd.f32 %v4462_v13, %v4018_v49 }
0x1288   :  { %v3956_v18 = vpop.xlane.xlu1 %3955 }
0x1289   :  { %v3978_v17 = vmul.f32 0.015625, %v3956_v18 }
0x128b   :  { %v3986_v42 = vadd.f32 1e-05, %v3978_v17 }
0x128c   :  { %v3962_v4 = vpop.xlane.xlu1 %3961 }
0x128d   :  { %5299 = vrsqrt.f32 %v3986_v42  ;;  %v3980_v9 = vmul.f32 0.015625, %v3962_v4 }
0x128f   :  { %v3988_v62 = vadd.f32 1e-05, %v3980_v9 }
0x1290   :  { %v3968_v54 = vpop.xlane.xlu1 %3967  ;;  %v3965_v28 = vpop.xlane.xlu0 %3964 }
0x1291   :  { %5301 = vrsqrt.f32 %v3988_v62  ;;  %v3982_v55 = vmul.f32 0.015625, %v3968_v54  ;;  %v3981_v38 = vmul.f32 0.015625, %v3965_v28 }
0x1293   :  { %v3990_v25 = vadd.f32 1e-05, %v3982_v55  ;;  %v3989_v34 = vadd.f32 1e-05, %v3981_v38 }
0x1294   :  { %v3974_v16 = vpop.xlane.xlu1 %3973  ;;  %v3971_v60 = vpop.xlane.xlu0 %3970 }
0x1295   :  { %5303 = vrsqrt.f32 %v3990_v25  ;;  %v3984_v36 = vmul.f32 0.015625, %v3974_v16  ;;  %v3983_v19 = vmul.f32 0.015625, %v3971_v60 }
0x1296   :  { %5305 = vrsqrt.f32 %v3989_v34  ;;  %v4472_v34 = vld [vmem:[%s7431_s15] ss:$0 sm:$0xff]  ;;  %s5461_s15 = scalar_lea.vmem %s4338_s22, 1024 }
0x1297   :  { %v3992_v1 = vadd.f32 1e-05, %v3984_v36  ;;  %v3991_v22 = vadd.f32 1e-05, %v3983_v19  ;;  %p5462_p11 = scmp.ne.s32.totalorder %s4338_s22, %s5461_s15  ;;  %p5467_p13 = scmp.lt.s32.totalorder %s5461_s15, %s5461_s15 }
0x1298   :  { %v3977_v0 = vpop.xlane.xlu0 %3976 }
0x1299   :  { %5307 = vrsqrt.f32 %v3992_v1  ;;  %v3985_v50 = vmul.f32 0.015625, %v3977_v0  ;;  %p5468_p0 = por %p5467_p13, %p5466_p12 }
0x129a   :  { %v5300_v29 = vpop.eup %5299  ;;  %5309 = vrsqrt.f32 %v3991_v22 }
0x129b   :  { %v3993_v3 = vadd.f32 1e-05, %v3985_v50  ;;  %v4002_v46 = vmul.f32 %v5300_v29, %v7304_v8  ;;  %p5469_p1 = pnand %p5468_p0, %p5462_p11 }
0x129d   :  { %5311 = vrsqrt.f32 %v3993_v3  ;;  %v4017_v15 = vmul.f32 %v4461_v23, %v4002_v46 }
0x129e   :  { %v5302_v39 = vpop.eup %5301 }
0x129f   :  { %v4032_v31 = vadd.f32 %v4462_v13, %v4017_v15  ;;  %v4004_v43 = vmul.f32 %v5302_v39, %v7311_v33 }
0x12a1   :  { %5090 = vmatprep.mubr.msk.f32.mxu0 %vm118_vm11, %v4032_v31  ;;  %v4019_v21 = vmul.f32 %v4461_v23, %v4004_v43 }
0x12a2   :  { %v5304_v44 = vpop.eup %5303  ;;  %5091 = vmatmul.mubr.msk.f32.vlgmr.msra.gmra.mxu0 %vm118_vm11, %v4033_v30 }
0x12a3   :  { %v5306_v10 = vpop.eup %5305  ;;  %v4034_v8 = vadd.f32 %v4462_v13, %v4019_v21  ;;  %v4006_v37 = vmul.f32 %v5304_v44, %v7309_v24 }
0x12a4   :  { %v4005_v7 = vmul.f32 %v5306_v10, %v7319_v35 }
0x12a5   :  { %5093 = vmatprep.mubr.msk.f32.mxu0 %vm118_vm11, %v4034_v8  ;;  %v4021_v5 = vmul.f32 %v4461_v23, %v4006_v37 }
0x12a6   :  { %v5308_v47 = vpop.eup %5307  ;;  %v4020_v63 = vmul.f32 %v4461_v23, %v4005_v7 }
0x12a7   :  { %v5310_v32 = vpop.eup %5309  ;;  %v4036_v33 = vadd.f32 %v4462_v13, %v4021_v5  ;;  %v4008_v20 = vmul.f32 %v5308_v47, %v7317_v12 }
0x12a8   :  { %v4035_v52 = vadd.f32 %v4462_v13, %v4020_v63  ;;  %v4007_v41 = vmul.f32 %v5310_v32, %v7326_v51  ;;  %v4186_v51 = vld [vmem:[%s7430_s14 + $0x10] sm:$0xff] }
0x12a9   :  { %v4023_v14 = vmul.f32 %v4461_v23, %v4008_v20  ;;  %5104 = vmatprep.subr.mxu1 %v4186_v51 }
0x12aa   :  { %v5312_v6 = vpop.eup %5311  ;;  %5094 = vmatmul.mubr.msk.f32.gmra.mxu0 %vm118_vm11, %v4035_v52  ;;  %v4022_v2 = vmul.f32 %v4461_v23, %v4007_v41  ;;  %5105 = vmatpush3.msra.mxu1 %v4186_v51 }
0x12ab   :  { %5096 = vmatprep.mubr.msk.f32.mxu0 %vm118_vm11, %v4036_v33  ;;  %v4038_v24 = vadd.f32 %v4462_v13, %v4023_v14  ;;  %v4009_v35 = vmul.f32 %v5312_v6, %v7334_v11  ;;  %5106 = vmatprep.subr.mxu1 %v4185_v61  ;;  %v4184_v11 = vld [vmem:[%s7430_s14] sm:$0xff] }
0x12ac   :  { %v4037_v45 = vadd.f32 %v4462_v13, %v4022_v2  ;;  %5107 = vmatpush3.msra.mxu1 %v4185_v61 }
0x12ad   :  { %v4024_v59 = vmul.f32 %v4461_v23, %v4009_v35  ;;  %5108 = vmatprep.subr.mxu1 %v4184_v11 }
0x12ae   :  { %5097 = vmatmul.mubr.msk.f32.gmra.mxu0 %vm118_vm11, %v4037_v45  ;;  %5109 = vmatpush3.msra.mxu1 %v4184_v11 }
0x12af   :  { %5099 = vmatprep.mubr.msk.f32.mxu0 %vm118_vm11, %v4038_v24  ;;  %v4039_v12 = vadd.f32 %v4462_v13, %v4024_v59 }
0x12b2   :  { %5100 = vmatmul.mubr.msk.f32.gmra.mxu0 %vm118_vm11, %v4039_v12 }
0x1362   :  { %v5092_v53 = vpop.f32.mrf.mxu0 }
0x1363   :  { %v4151_v57 = vadd.f32 %v5092_v53, %v4463_v56 }
0x1364   :  { %v4145_v27 = vpop.f32.mrf.mxu0 }
0x1365   :  { %v4146_v40 = vadd.f32 %v4463_v56, %v4145_v27 }
0x1367   :  { %5110 = vmatprep.mubr.msk.f32.mxu1 %vm360_vm9, %v4146_v40 }
0x1368   :  { %5111 = vmatmul.mubr.msk.f32.vlgmr.msra.gmra.mxu1 %vm360_vm9, %v4151_v57 }
0x136a   :  { %v5095_v58 = vpop.f32.mrf.mxu0 }
0x136b   :  { %v4161_v42 = vadd.f32 %v5095_v58, %v4463_v56 }
0x136c   :  { %v4155_v18 = vpop.f32.mrf.mxu0 }
0x136d   :  { %v4156_v17 = vadd.f32 %v4463_v56, %v4155_v18 }
0x136e   :  { %v5098_v4 = vpop.f32.mrf.mxu0 }
0x136f   :  { %5113 = vmatprep.mubr.msk.f32.mxu1 %vm360_vm9, %v4156_v17  ;;  %v4171_v54 = vadd.f32 %v5098_v4, %v4463_v56 }
0x1370   :  { %v4165_v9 = vpop.f32.mrf.mxu0  ;;  %5114 = vmatmul.mubr.msk.f32.gmra.mxu1 %vm360_vm9, %v4161_v42 }
0x1371   :  { %v4166_v62 = vadd.f32 %v4463_v56, %v4165_v9 }
0x1372   :  { %v5101_v28 = vpop.f32.mrf.mxu0 }
0x1373   :  { %5116 = vmatprep.mubr.msk.f32.mxu1 %vm360_vm9, %v4166_v62  ;;  %v4181_v25 = vadd.f32 %v5101_v28, %v4463_v56 }
0x1374   :  { %v4175_v55 = vpop.f32.mrf.mxu0  ;;  %5117 = vmatmul.mubr.msk.f32.gmra.mxu1 %vm360_vm9, %v4171_v54 }
0x1375   :  { %v4176_v38 = vadd.f32 %v4463_v56, %v4175_v55 }
0x1377   :  { %5119 = vmatprep.mubr.msk.f32.mxu1 %vm360_vm9, %v4176_v38 }
0x1378   :  { %5120 = vmatmul.mubr.msk.f32.gmra.mxu1 %vm360_vm9, %v4181_v25 }
0x1428   :  { %v5112_v16 = vpop.f32.mrf.mxu1 }
0x1429   :  { %v4291_v60 = vadd.f32 %v5112_v16, %v4472_v34 }
0x142a   :  { %v4285_v26 = vpop.f32.mrf.mxu1 }
0x142b   :  { %4325 = vst [vmem:[#allocation13 + $0x8] sm:$0xff] %v4291_v60  ;;  %v4286_v36 = vadd.f32 %v4472_v34, %v4285_v26 }
0x142d   :  { %4324 = vst [vmem:[#allocation13] sm:$0xff] %v4286_v36 }
0x1430   :  { %v5115_v19 = vpop.f32.mrf.mxu1 }
0x1431   :  { %v4301_v1 = vadd.f32 %v5115_v19, %v4472_v34 }
0x1432   :  { %v4295_v22 = vpop.f32.mrf.mxu1 }
0x1433   :  { %4327 = vst [vmem:[#allocation13 + $0x18] sm:$0xff] %v4301_v1  ;;  %v4296_v48 = vadd.f32 %v4472_v34, %v4295_v22 }
0x1434   :  { %v5118_v0 = vpop.f32.mrf.mxu1 }
0x1435   :  { %4326 = vst [vmem:[#allocation13 + $0x10] sm:$0xff] %v4296_v48  ;;  %v4311_v50 = vadd.f32 %v5118_v0, %v4472_v34 }
0x1436   :  { %v4305_v23 = vpop.f32.mrf.mxu1 }
0x1437   :  { %4329 = vst [vmem:[#allocation13 + $0x28] sm:$0xff] %v4311_v50  ;;  %v4306_v29 = vadd.f32 %v4472_v34, %v4305_v23 }
0x1438   :  { %v5121_v3 = vpop.f32.mrf.mxu1 }
0x1439   :  { %4328 = vst [vmem:[#allocation13 + $0x20] sm:$0xff] %v4306_v29  ;;  %v4321_v46 = vadd.f32 %v5121_v3, %v4472_v34 }
0x143a   :  { %v4315_v49 = vpop.f32.mrf.mxu1 }
0x143b   :  { %4331 = vst [vmem:[#allocation13 + $0x38] sm:$0xff] %v4321_v46  ;;  %v4316_v15 = vadd.f32 %v4472_v34, %v4315_v49 }
0x143d   :  { %4330 = vst [vmem:[#allocation13 + $0x30] sm:$0xff] %v4316_v15 }
0x143e   :  { %5472 = shalt.err (!%p5469_p1)
}
0x143f   :  { %s5500_s23 = smov 128   ;;  %s5501_s24 = smov 8  }
0x1440   :  { %4343 = dma.vmem_to_hbm [thread:$0]  %s4338_s22, 1024, %s7432_s16, [#allocation6], %s5500_s23, %s5500_s23, %s5501_s24  }
0x1441   :  { %5487 = dma.done.wait [#allocation6], 1024  }
0x1442   :  { %5488 = vsyncadd [#allocation6], 4294966272 }
0x1443   :  { %4347 = vsyncpa [#allocation5], 1 }
0x1444   :  { %4348 = vsyncpa [#allocation8], 1 }
0x1445   :  { %4349 = vsyncpa [#allocation11], 1 }
0x1446   :  { %4350 = vsyncpa [#allocation6], 1 }

</bundles_post_ra>
